<compile_context>
chip_gen: v5e
topology: v5e:2x2
jax: 0.10.0
libtpu: 0.0.40
codegen_flags: <defaults>
</compile_context>

<pallas_src>
import functools

import jax
import jax.numpy as jnp
from jax.experimental import pallas as pl
from jax.experimental.pallas import tpu as pltpu

PRIMITIVES = ["zero", "identity", "ffn_relu"]  # TODO(synk): real PRIMITIVES/OPS unknown.
NUM_OPS = len(PRIMITIVES)

MXU_DTYPE = jnp.bfloat16  # matmul-operand dtype (fp32 accumulation on MXU)

SMEM_SPEC = pl.BlockSpec(memory_space=pltpu.MemorySpace.SMEM)
VMEM_SPEC = pl.BlockSpec(memory_space=pltpu.MemorySpace.VMEM)


def _round_up(x, m):
    return ((x + m - 1) // m) * m


def _dot(a, b):
    """MXU matmul: bf16 operands, fp32 accumulate."""
    return jnp.dot(a.astype(MXU_DTYPE), b.astype(MXU_DTYPE),
                   preferred_element_type=jnp.float32)


# --------------------------------------------------------------------------- #
# Shared DARTS-cell body (runs fully in VMEM on one row tile).
# --------------------------------------------------------------------------- #
def _cell_weighted_sum(x, ws_ref, bs_ref, alpha_ref, sel_ref, steps):
    """states[0]=x; states[i+1]=sum_{j<=i} mixed_op(states[j]); returns
    sum_k sel[k] * states[k].

    mixed_op(h, a) = a[zero]*0 + a[identity]*h + a[ffn]*relu(h @ W_e + b_e)
    """
    states = [x]
    offset = 0
    for i in range(steps):
        s = None
        for j in range(i + 1):
            e = offset + j
            h = states[j]
            y = jnp.maximum(_dot(h, ws_ref[e]) + bs_ref[e], 0.0)
            out = alpha_ref[e, 1] * h + alpha_ref[e, 2] * y
            s = out if s is None else s + out
        offset += i + 1
        states.append(s)
    acc = sel_ref[0] * states[0]
    for k in range(1, steps + 1):
        acc = acc + sel_ref[k] * states[k]
    return acc


# --------------------------------------------------------------------------- #
# Kernels
# --------------------------------------------------------------------------- #
def _ehr_cell_kernel(steps, alpha_ref, sel_ref, x_ref, ws_ref, bs_ref, o_ref):
    o_ref[...] = _cell_weighted_sum(x_ref[...], ws_ref, bs_ref,
                                    alpha_ref, sel_ref, steps)


def _time_cell_kernel(steps, alpha_ref, sel_ref, t_ref, w1_ref, b1_ref,
                      w2_ref, b2_ref, ws_ref, bs_ref, o_ref):
    # Fused time-feature branch: Linear(1,64) -> 1 - tanh(.^2) -> Linear(64,D)
    t = t_ref[...]                                  # (TILE_N, 1)
    h = t * w1_ref[...] + b1_ref[...]               # (TILE_N, 64)
    f = 1.0 - jnp.tanh(h * h)
    tf = _dot(f, w2_ref[...]) + b2_ref[...]         # (TILE_N, D)
    o_ref[...] = _cell_weighted_sum(tf, ws_ref, bs_ref, alpha_ref, sel_ref, steps)


def _fuse_cell_kernel(steps, alpha_ref, comb_ref, ehr_ref, time_ref,
                      we_ref, wt_ref, cb_ref, ws_ref, bs_ref,
                      wih_ref, bih_ref, xg_ref):
    # catfc on the concatenated feature == ehr @ W[:D] + time @ W[D:] + b
    fused = _dot(ehr_ref[...], we_ref[...]) + _dot(time_ref[...], wt_ref[...]) \
        + cb_ref[...]
    # fuse cell + `combine` (Linear(steps+1, 1, bias=False)) weighted sum
    final = _cell_weighted_sum(fused, ws_ref, bs_ref, alpha_ref, comb_ref, steps)
    # GRU input projection fused here as well: xg = final @ W_ih^T + b_ih
    xg_ref[...] = _dot(final, wih_ref[...]) + bih_ref[...]


def _gru_kernel(tc, xg_ref, whh_ref, bhh_ref, o_ref, h_scratch):
    # xg_ref block: (B, Tc, 3D) batch-first — no transposes around the GRU.
    @pl.when(pl.program_id(0) == 0)
    def _():
        h_scratch[...] = jnp.zeros_like(h_scratch)

    d = h_scratch.shape[-1]
    whh = whh_ref[...].astype(MXU_DTYPE)            # hoisted out of the loop
    bhh = bhh_ref[...]
    xg = xg_ref[...]                                # (B, Tc, 3D)
    h = h_scratch[...]
    for tt in range(tc):                            # unrolled recurrence
        xg_t = xg[:, tt, :]                         # (B, 3D)
        hg = jnp.dot(h.astype(MXU_DTYPE), whh,
                     preferred_element_type=jnp.float32) + bhh
        xr, xz, xn = xg_t[:, :d], xg_t[:, d:2 * d], xg_t[:, 2 * d:]
        hr, hz, hn = hg[:, :d], hg[:, d:2 * d], hg[:, 2 * d:]
        r = jax.nn.sigmoid(xr + hr)
        z = jax.nn.sigmoid(xz + hz)
        n = jnp.tanh(xn + r * hn)
        h = (1.0 - z) * n + z * h
        o_ref[:, tt:tt + 1, :] = h[:, None, :]
    h_scratch[...] = h


def _attn_cls_kernel(f_ref, valid_ref, ww_ref, bw_ref, wc_ref, bc_ref, o_ref):
    f = f_ref[...]                                          # (B, T, D)
    ww = ww_ref[...]                                        # (1, D)
    scores = jnp.sum(f * ww[None, :, :], axis=-1) + bw_ref[...]   # (B, T)
    valid = valid_ref[...] > 0.5
    scores = jnp.where(valid, scores, -jnp.inf)
    m = jnp.max(scores, axis=1, keepdims=True)
    m = jnp.where(m > -jnp.inf, m, 0.0)                     # guard length==0 rows
    e = jnp.exp(scores - m)
    denom = jnp.sum(e, axis=1, keepdims=True)
    att = e * pl.reciprocal(jnp.where(denom > 0.0, denom, 1.0), approx=True)
    weighted = jnp.sum(f * att[:, :, None], axis=1)         # (B, D)
    o_ref[...] = jnp.dot(weighted, wc_ref[...],
                         preferred_element_type=jnp.float32) + bc_ref[...]


# --------------------------------------------------------------------------- #
# pallas_call wrappers
# --------------------------------------------------------------------------- #
def pallas_ehr_cell(x_rows, ws, bs, alphas, sel, steps, tile_n):
    n_pad, d = x_rows.shape
    ne = ws.shape[0]
    return pl.pallas_call(
        functools.partial(_ehr_cell_kernel, steps),
        out_shape=jax.ShapeDtypeStruct((n_pad, d), jnp.float32),
        grid=(n_pad // tile_n,),
        in_specs=[
            SMEM_SPEC,                                        # alphas (E, NUM_OPS)
            SMEM_SPEC,                                        # sel    (steps+1,)
            pl.BlockSpec((tile_n, d), lambda i: (i, 0)),      # x rows
            pl.BlockSpec((ne, d, d), lambda i: (0, 0, 0)),    # edge weights
            pl.BlockSpec((ne, 1, d), lambda i: (0, 0, 0)),    # edge biases
        ],
        out_specs=pl.BlockSpec((tile_n, d), lambda i: (i, 0)),
        compiler_params=pltpu.CompilerParams(
            dimension_semantics=("parallel",)),
    )(alphas, sel, x_rows, ws, bs)


def pallas_time_cell(t_rows, w1, b1, w2, b2, ws, bs, alphas, sel, steps, tile_n):
    n_pad = t_rows.shape[0]
    d = w2.shape[1]
    hdim = w1.shape[1]
    ne = ws.shape[0]
    return pl.pallas_call(
        functools.partial(_time_cell_kernel, steps),
        out_shape=jax.ShapeDtypeStruct((n_pad, d), jnp.float32),
        grid=(n_pad // tile_n,),
        in_specs=[
            SMEM_SPEC,                                        # alphas
            SMEM_SPEC,                                        # sel
            pl.BlockSpec((tile_n, 1), lambda i: (i, 0)),      # normalized times
            pl.BlockSpec((1, hdim), lambda i: (0, 0)),        # selection_layer W
            pl.BlockSpec((1, hdim), lambda i: (0, 0)),        # selection_layer b
            pl.BlockSpec((hdim, d), lambda i: (0, 0)),        # time_layer W
            pl.BlockSpec((1, d), lambda i: (0, 0)),           # time_layer b
            pl.BlockSpec((ne, d, d), lambda i: (0, 0, 0)),
            pl.BlockSpec((ne, 1, d), lambda i: (0, 0, 0)),
        ],
        out_specs=pl.BlockSpec((tile_n, d), lambda i: (i, 0)),
        compiler_params=pltpu.CompilerParams(
            dimension_semantics=("parallel",)),
    )(alphas, sel, t_rows, w1, b1, w2, b2, ws, bs)


def pallas_fuse_cell(ehr_rows, time_rows, we, wt, cb, ws, bs, alphas, comb,
                     wih, bih, steps, tile_n):
    n_pad, d = ehr_rows.shape
    g = wih.shape[1]
    ne = ws.shape[0]
    return pl.pallas_call(
        functools.partial(_fuse_cell_kernel, steps),
        out_shape=jax.ShapeDtypeStruct((n_pad, g), jnp.float32),
        grid=(n_pad // tile_n,),
        in_specs=[
            SMEM_SPEC,                                        # alphas_fuse
            SMEM_SPEC,                                        # combine weights
            pl.BlockSpec((tile_n, d), lambda i: (i, 0)),      # ehr feature rows
            pl.BlockSpec((tile_n, d), lambda i: (i, 0)),      # time feature rows
            pl.BlockSpec((d, d), lambda i: (0, 0)),           # catfc W (ehr half)
            pl.BlockSpec((d, d), lambda i: (0, 0)),           # catfc W (time half)
            pl.BlockSpec((1, d), lambda i: (0, 0)),           # catfc b
            pl.BlockSpec((ne, d, d), lambda i: (0, 0, 0)),
            pl.BlockSpec((ne, 1, d), lambda i: (0, 0, 0)),
            pl.BlockSpec((d, g), lambda i: (0, 0)),           # GRU W_ih^T
            pl.BlockSpec((1, g), lambda i: (0, 0)),           # GRU b_ih
        ],
        out_specs=pl.BlockSpec((tile_n, g), lambda i: (i, 0)),
        compiler_params=pltpu.CompilerParams(
            dimension_semantics=("parallel",)),
    )(alphas, comb, ehr_rows, time_rows, we, wt, cb, ws, bs, wih, bih)


def pallas_gru(xg_btg, whh, bhh, tc):
    b, t_pad, g = xg_btg.shape
    d = g // 3
    return pl.pallas_call(
        functools.partial(_gru_kernel, tc),
        out_shape=jax.ShapeDtypeStruct((b, t_pad, d), jnp.float32),
        grid=(t_pad // tc,),
        in_specs=[
            pl.BlockSpec((b, tc, g), lambda i: (0, i, 0)),    # batch-first xg
            pl.BlockSpec((d, g), lambda i: (0, 0)),           # W_hh^T
            pl.BlockSpec((1, g), lambda i: (0, 0)),           # b_hh
        ],
        out_specs=pl.BlockSpec((b, tc, d), lambda i: (0, i, 0)),
        scratch_shapes=[pltpu.VMEM((b, d), jnp.float32)],
        compiler_params=pltpu.CompilerParams(
            dimension_semantics=("arbitrary",)),
    )(xg_btg, whh, bhh.reshape(1, g))


def pallas_attn_classify(f, valid, ww, bw, wc, bc):
    b, _, d = f.shape
    c = wc.shape[1]
    return pl.pallas_call(
        _attn_cls_kernel,
        out_shape=jax.ShapeDtypeStruct((b, c), jnp.float32),
        in_specs=[VMEM_SPEC] * 6,
        out_specs=VMEM_SPEC,
    )(f, valid, ww.reshape(1, d), bw.reshape(1, 1), wc, bc.reshape(1, c))


# --------------------------------------------------------------------------- #
# Forward pass (JAX glue around the fused Pallas kernels)
# --------------------------------------------------------------------------- #
def network_forward(params, input_seqs, masks, lengths, seq_time_step):
    del masks  # ops in the chosen search space do not consume masks
    b, t, _ = input_seqs.shape
    d = params["d_model"]
    steps = params["steps"]
    n = b * t

    # Row tiling over the flattened (B*T) axis.
    tile_n = 256 if n >= 256 else _round_up(n, 8)
    n_pad = _round_up(n, tile_n)

    # Embedding lookup + sum over codes per visit (gather kept in JAX glue).
    # TODO(synk): gather has no clean single-kernel Pallas equivalent here.
    x = jnp.take(params["emb"], input_seqs, axis=0).sum(axis=2)      # (B, T, D)
    # emb_dropout: identity at inference time.
    x_rows = x.reshape(n, d).astype(jnp.float32)
    t_rows = (seq_time_step.astype(jnp.float32) / 180.0).reshape(n, 1)
    if n_pad != n:
        x_rows = jnp.pad(x_rows, ((0, n_pad - n), (0, 0)))
        t_rows = jnp.pad(t_rows, ((0, n_pad - n), (0, 0)))

    a_ehr = jax.nn.softmax(params["alphas_ehr"], axis=-1)
    a_time = jax.nn.softmax(params["alphas_time"], axis=-1)
    a_fuse = jax.nn.softmax(params["alphas_fuse"], axis=-1)
    a_sel = jax.nn.softmax(params["alphas_select"], axis=-1)

    # Fused cells: all edges + a_sel weighted state sum in one kernel each.
    ehr_feat = pallas_ehr_cell(x_rows, params["ehr_ws"], params["ehr_bs"],
                               a_ehr, a_sel[0], steps, tile_n)
    time_feat = pallas_time_cell(t_rows, params["sel_w"], params["sel_b"],
                                 params["time_w"], params["time_b"],
                                 params["time_ws"], params["time_bs"],
                                 a_time, a_sel[1], steps, tile_n)

    # catfc + fuse cell + combine + GRU input projection, fused.
    xg_rows = pallas_fuse_cell(
        ehr_feat, time_feat,
        params["catfc_w"][:d], params["catfc_w"][d:],
        params["catfc_b"].reshape(1, d),
        params["fuse_ws"], params["fuse_bs"], a_fuse, params["combine_w"],
        params["gru_wih"], params["gru_bih"].reshape(1, 3 * d),
        steps, tile_n)

    # GRU recurrence, batch-first, time chunked.
    xg = xg_rows[:n].reshape(b, t, 3 * d)
    tc = min(16, _round_up(t, 8))
    t_pad = _round_up(t, tc)
    if t_pad != t:
        xg = jnp.pad(xg, ((0, 0), (0, t_pad - t), (0, 0)))
    rnn_out = pallas_gru(xg, params["gru_whh"], params["gru_bhh"], tc)[:, :t, :]

    # Masked attention pooling + classifier (fused kernel).
    valid = (jnp.arange(t)[None, :] < lengths[:, None]).astype(jnp.float32)
    logits = pallas_attn_classify(rnn_out, valid, params["weight_w"],
                                  params["weight_b"], params["cls_w"],
                                  params["cls_b"])
    return logits


# --------------------------------------------------------------------------- #
# Deterministic parameter construction
# --------------------------------------------------------------------------- #
def init_params(key, vocab_size, d_model, steps, num_classes=2):
    keys = iter(jax.random.split(key, 128))

    def u(shape, scale):
        return jax.random.uniform(next(keys), shape, jnp.float32, -scale, scale)

    def lin(din, dout, scale=0.1):
        return u((din, dout), scale), u((dout,), scale)

    k_edges = sum(i + 1 for i in range(steps))

    def cell_params():
        ws, bs = [], []
        for _ in range(k_edges):
            w, bvec = lin(d_model, d_model)
            ws.append(w)
            bs.append(bvec)
        return (jnp.stack(ws),                                   # (E, D, D)
                jnp.stack(bs).reshape(k_edges, 1, d_model))      # (E, 1, D)

    sel_w, sel_b = lin(1, 64)
    time_w, time_b = lin(64, d_model)
    catfc_w, catfc_b = lin(2 * d_model, d_model)
    gru_wih, gru_bih = lin(d_model, 3 * d_model)
    gru_whh, gru_bhh = lin(d_model, 3 * d_model)
    weight_w, weight_b = lin(d_model, 1)
    cls_w, cls_b = lin(d_model, num_classes)
    ehr_ws, ehr_bs = cell_params()
    time_ws, time_bs = cell_params()
    fuse_ws, fuse_bs = cell_params()

    return {
        "d_model": d_model,
        "steps": steps,
        "emb": u((vocab_size + 1, d_model), 0.04),
        "sel_w": sel_w.reshape(1, 64), "sel_b": sel_b.reshape(1, 64),
        "time_w": time_w, "time_b": time_b.reshape(1, d_model),
        "catfc_w": catfc_w, "catfc_b": catfc_b,
        "combine_w": u((steps + 1,), 0.5),
        "gru_wih": gru_wih, "gru_bih": gru_bih,
        "gru_whh": gru_whh, "gru_bhh": gru_bhh,
        "weight_w": weight_w, "weight_b": weight_b,
        "cls_w": cls_w, "cls_b": cls_b,
        "ehr_ws": ehr_ws, "ehr_bs": ehr_bs,
        "time_ws": time_ws, "time_bs": time_bs,
        "fuse_ws": fuse_ws, "fuse_bs": fuse_bs,
        "alphas_ehr": 0.001 * jnp.ones((k_edges, NUM_OPS), jnp.float32),
        "alphas_time": 0.001 * jnp.ones((k_edges, NUM_OPS), jnp.float32),
        "alphas_fuse": 0.001 * jnp.ones((k_edges, NUM_OPS), jnp.float32),
        "alphas_select": 0.001 * jnp.ones((2, steps + 1), jnp.float32),
    }


if __name__ == "__main__":
    B, T, C = 2, 8, 4          # batch, seq_len, codes-per-visit
    VOCAB, D, STEPS = 20, 32, 2

    root = jax.random.PRNGKey(0)
    k_param, k_seq, k_time = jax.random.split(root, 3)

    params = init_params(k_param, VOCAB, D, STEPS)

    input_seqs = jax.random.randint(k_seq, (B, T, C), 0, VOCAB, dtype=jnp.int32)
    lengths = jnp.array([T, 5], dtype=jnp.int32)
    seq_time_step = jax.random.uniform(k_time, (B, T), jnp.float32, 0.0, 365.0)
    masks = (jnp.arange(T)[None, :] < lengths[:, None]).astype(jnp.float32)[..., None]

    fwd = jax.jit(functools.partial(network_forward, params))
    logits = fwd(input_seqs, masks, lengths, seq_time_step)
    jax.block_until_ready(logits)
    assert logits.shape == (B, 2)
    print("KERNEL_OK")
</pallas_src>

<mosaic_0001>
module attributes {stable_mosaic.version = 11 : i64} {
  func.func @_ehr_cell_kernel(%arg0: i32, %arg1: memref<3x3xf32, #tpu.memory_space<smem>>, %arg2: memref<3xf32, #tpu.memory_space<smem>>, %arg3: memref<16x32xf32, #tpu.memory_space<vmem>>, %arg4: memref<3x32x32xf32, #tpu.memory_space<vmem>>, %arg5: memref<3x1x32xf32, #tpu.memory_space<vmem>>, %arg6: memref<16x32xf32, #tpu.memory_space<vmem>>) attributes {dimension_semantics = [#tpu.dimension_semantics<parallel>], iteration_bounds = array<i64: 1>, scalar_prefetch = 0 : i64, scratch_operands = 0 : i64, tpu.core_type = #tpu.core_type<tc>, window_params = [{transform_indices = @transform_0, window_bounds = array<i64: 3, 3>}, {transform_indices = @transform_1, window_bounds = array<i64: 3>}, {transform_indices = @transform_2, window_bounds = array<i64: 16, 32>}, {pipeline_mode = #tpu.pipeline_mode<synchronous>, transform_indices = @transform_3, window_bounds = array<i64: 3, 32, 32>}, {pipeline_mode = #tpu.pipeline_mode<synchronous>, transform_indices = @transform_4, window_bounds = array<i64: 3, 1, 32>}, {transform_indices = @transform_5, window_bounds = array<i64: 16, 32>}]} {
    %c0 = arith.constant 0 : index
    %c0_0 = arith.constant 0 : index
    %0 = vector.load %arg3[%c0, %c0_0] : memref<16x32xf32, #tpu.memory_space<vmem>>, vector<16x32xf32>
    %c0_1 = arith.constant 0 : index
    %c0_2 = arith.constant 0 : index
    %c0_3 = arith.constant 0 : index
    %1 = vector.load %arg4[%c0_1, %c0_2, %c0_3] : memref<3x32x32xf32, #tpu.memory_space<vmem>>, vector<1x32x32xf32>
    %2 = vector.shape_cast %1 : vector<1x32x32xf32> to vector<32x32xf32>
    %3 = arith.truncf %0 : vector<16x32xf32> to vector<16x32xbf16>
    %4 = arith.truncf %2 : vector<32x32xf32> to vector<32x32xbf16>
    %cst = arith.constant dense<0.000000e+00> : vector<16x32xf32>
    %5 = tpu.matmul %3, %4, %cst {dimension_numbers = #tpu.dot_dimension_numbers<[1], [0], [0], [1], [0, 0, 1, 1], [], []>} : vector<16x32xbf16>, vector<32x32xbf16>, vector<16x32xf32> -> vector<16x32xf32>
    %c0_4 = arith.constant 0 : index
    %c0_5 = arith.constant 0 : index
    %c0_6 = arith.constant 0 : index
    %6 = vector.load %arg5[%c0_4, %c0_5, %c0_6] : memref<3x1x32xf32, #tpu.memory_space<vmem>>, vector<1x1x32xf32>
    %7 = vector.shape_cast %6 : vector<1x1x32xf32> to vector<1x32xf32>
    %8 = vector.broadcast %7 : vector<1x32xf32> to vector<16x32xf32>
    %9 = arith.addf %5, %8 : vector<16x32xf32>
    %cst_7 = arith.constant 0.000000e+00 : f32
    %10 = vector.broadcast %cst_7 : f32 to vector<16x32xf32>
    %11 = arith.maximumf %9, %10 : vector<16x32xf32>
    %c0_8 = arith.constant 0 : index
    %c1 = arith.constant 1 : index
    %12 = memref.load %arg1[%c0_8, %c1] : memref<3x3xf32, #tpu.memory_space<smem>>
    %13 = vector.broadcast %12 : f32 to vector<16x32xf32>
    %14 = arith.mulf %13, %0 : vector<16x32xf32>
    %c0_9 = arith.constant 0 : index
    %c2 = arith.constant 2 : index
    %15 = memref.load %arg1[%c0_9, %c2] : memref<3x3xf32, #tpu.memory_space<smem>>
    %16 = vector.broadcast %15 : f32 to vector<16x32xf32>
    %17 = arith.mulf %16, %11 : vector<16x32xf32>
    %18 = arith.addf %14, %17 : vector<16x32xf32>
    %c1_10 = arith.constant 1 : index
    %c0_11 = arith.constant 0 : index
    %c0_12 = arith.constant 0 : index
    %19 = vector.load %arg4[%c1_10, %c0_11, %c0_12] : memref<3x32x32xf32, #tpu.memory_space<vmem>>, vector<1x32x32xf32>
    %20 = vector.shape_cast %19 : vector<1x32x32xf32> to vector<32x32xf32>
    %21 = arith.truncf %0 : vector<16x32xf32> to vector<16x32xbf16>
    %22 = arith.truncf %20 : vector<32x32xf32> to vector<32x32xbf16>
    %cst_13 = arith.constant dense<0.000000e+00> : vector<16x32xf32>
    %23 = tpu.matmul %21, %22, %cst_13 {dimension_numbers = #tpu.dot_dimension_numbers<[1], [0], [0], [1], [0, 0, 1, 1], [], []>} : vector<16x32xbf16>, vector<32x32xbf16>, vector<16x32xf32> -> vector<16x32xf32>
    %c1_14 = arith.constant 1 : index
    %c0_15 = arith.constant 0 : index
    %c0_16 = arith.constant 0 : index
    %24 = vector.load %arg5[%c1_14, %c0_15, %c0_16] : memref<3x1x32xf32, #tpu.memory_space<vmem>>, vector<1x1x32xf32>
    %25 = vector.shape_cast %24 : vector<1x1x32xf32> to vector<1x32xf32>
    %26 = vector.broadcast %25 : vector<1x32xf32> to vector<16x32xf32>
    %27 = arith.addf %23, %26 : vector<16x32xf32>
    %cst_17 = arith.constant 0.000000e+00 : f32
    %28 = vector.broadcast %cst_17 : f32 to vector<16x32xf32>
    %29 = arith.maximumf %27, %28 : vector<16x32xf32>
    %c1_18 = arith.constant 1 : index
    %c1_19 = arith.constant 1 : index
    %30 = memref.load %arg1[%c1_18, %c1_19] : memref<3x3xf32, #tpu.memory_space<smem>>
    %31 = vector.broadcast %30 : f32 to vector<16x32xf32>
    %32 = arith.mulf %31, %0 : vector<16x32xf32>
    %c1_20 = arith.constant 1 : index
    %c2_21 = arith.constant 2 : index
    %33 = memref.load %arg1[%c1_20, %c2_21] : memref<3x3xf32, #tpu.memory_space<smem>>
    %34 = vector.broadcast %33 : f32 to vector<16x32xf32>
    %35 = arith.mulf %34, %29 : vector<16x32xf32>
    %36 = arith.addf %32, %35 : vector<16x32xf32>
    %c2_22 = arith.constant 2 : index
    %c0_23 = arith.constant 0 : index
    %c0_24 = arith.constant 0 : index
    %37 = vector.load %arg4[%c2_22, %c0_23, %c0_24] : memref<3x32x32xf32, #tpu.memory_space<vmem>>, vector<1x32x32xf32>
    %38 = vector.shape_cast %37 : vector<1x32x32xf32> to vector<32x32xf32>
    %39 = arith.truncf %18 : vector<16x32xf32> to vector<16x32xbf16>
    %40 = arith.truncf %38 : vector<32x32xf32> to vector<32x32xbf16>
    %cst_25 = arith.constant dense<0.000000e+00> : vector<16x32xf32>
    %41 = tpu.matmul %39, %40, %cst_25 {dimension_numbers = #tpu.dot_dimension_numbers<[1], [0], [0], [1], [0, 0, 1, 1], [], []>} : vector<16x32xbf16>, vector<32x32xbf16>, vector<16x32xf32> -> vector<16x32xf32>
    %c2_26 = arith.constant 2 : index
    %c0_27 = arith.constant 0 : index
    %c0_28 = arith.constant 0 : index
    %42 = vector.load %arg5[%c2_26, %c0_27, %c0_28] : memref<3x1x32xf32, #tpu.memory_space<vmem>>, vector<1x1x32xf32>
    %43 = vector.shape_cast %42 : vector<1x1x32xf32> to vector<1x32xf32>
    %44 = vector.broadcast %43 : vector<1x32xf32> to vector<16x32xf32>
    %45 = arith.addf %41, %44 : vector<16x32xf32>
    %cst_29 = arith.constant 0.000000e+00 : f32
    %46 = vector.broadcast %cst_29 : f32 to vector<16x32xf32>
    %47 = arith.maximumf %45, %46 : vector<16x32xf32>
    %c2_30 = arith.constant 2 : index
    %c1_31 = arith.constant 1 : index
    %48 = memref.load %arg1[%c2_30, %c1_31] : memref<3x3xf32, #tpu.memory_space<smem>>
    %49 = vector.broadcast %48 : f32 to vector<16x32xf32>
    %50 = arith.mulf %49, %18 : vector<16x32xf32>
    %c2_32 = arith.constant 2 : index
    %c2_33 = arith.constant 2 : index
    %51 = memref.load %arg1[%c2_32, %c2_33] : memref<3x3xf32, #tpu.memory_space<smem>>
    %52 = vector.broadcast %51 : f32 to vector<16x32xf32>
    %53 = arith.mulf %52, %47 : vector<16x32xf32>
    %54 = arith.addf %50, %53 : vector<16x32xf32>
    %55 = arith.addf %36, %54 : vector<16x32xf32>
    %c0_34 = arith.constant 0 : index
    %56 = memref.load %arg2[%c0_34] : memref<3xf32, #tpu.memory_space<smem>>
    %57 = vector.broadcast %56 : f32 to vector<16x32xf32>
    %58 = arith.mulf %57, %0 : vector<16x32xf32>
    %c1_35 = arith.constant 1 : index
    %59 = memref.load %arg2[%c1_35] : memref<3xf32, #tpu.memory_space<smem>>
    %60 = vector.broadcast %59 : f32 to vector<16x32xf32>
    %61 = arith.mulf %60, %18 : vector<16x32xf32>
    %62 = arith.addf %58, %61 : vector<16x32xf32>
    %c2_36 = arith.constant 2 : index
    %63 = memref.load %arg2[%c2_36] : memref<3xf32, #tpu.memory_space<smem>>
    %64 = vector.broadcast %63 : f32 to vector<16x32xf32>
    %65 = arith.mulf %64, %55 : vector<16x32xf32>
    %66 = arith.addf %62, %65 : vector<16x32xf32>
    %c0_37 = arith.constant 0 : index
    %c0_38 = arith.constant 0 : index
    %67 = vector.load %arg6[%c0_37, %c0_38] : memref<16x32xf32, #tpu.memory_space<vmem>>, vector<16x32xf32>
    tpu.vector_store %arg6[%c0_37, %c0_38], %66 {strides = array<i32>} : memref<16x32xf32, #tpu.memory_space<vmem>>, vector<16x32xf32>,
    return
  }
  func.func @transform_0(%arg0: i32) -> (i32, i32) {
    %c0_i32 = arith.constant 0 : i32
    %c0_i32_0 = arith.constant 0 : i32
    %c0_i32_1 = arith.constant 0 : i32
    return %c0_i32, %c0_i32_0 : i32, i32
  }
  func.func @transform_1(%arg0: i32) -> i32 {
    %c0_i32 = arith.constant 0 : i32
    %c0_i32_0 = arith.constant 0 : i32
    return %c0_i32 : i32
  }
  func.func @transform_2(%arg0: i32) -> (i32, i32) {
    %c0_i32 = arith.constant 0 : i32
    %c0_i32_0 = arith.constant 0 : i32
    return %arg0, %c0_i32 : i32, i32
  }
  func.func @transform_3(%arg0: i32) -> (i32, i32, i32) {
    %c0_i32 = arith.constant 0 : i32
    %c0_i32_0 = arith.constant 0 : i32
    %c0_i32_1 = arith.constant 0 : i32
    %c0_i32_2 = arith.constant 0 : i32
    return %c0_i32, %c0_i32_0, %c0_i32_1 : i32, i32, i32
  }
  func.func @transform_4(%arg0: i32) -> (i32, i32, i32) {
    %c0_i32 = arith.constant 0 : i32
    %c0_i32_0 = arith.constant 0 : i32
    %c0_i32_1 = arith.constant 0 : i32
    %c0_i32_2 = arith.constant 0 : i32
    return %c0_i32, %c0_i32_0, %c0_i32_1 : i32, i32, i32
  }
  func.func @transform_5(%arg0: i32) -> (i32, i32) {
    %c0_i32 = arith.constant 0 : i32
    %c0_i32_0 = arith.constant 0 : i32
    return %arg0, %c0_i32 : i32, i32
  }
}

module attributes {stable_mosaic.version = 11 : i64} {
  func.func @_fuse_cell_kernel(%arg0: i32, %arg1: memref<3x3xf32, #tpu.memory_space<smem>>, %arg2: memref<3xf32, #tpu.memory_space<smem>>, %arg3: memref<16x32xf32, #tpu.memory_space<vmem>>, %arg4: memref<16x32xf32, #tpu.memory_space<vmem>>, %arg5: memref<32x32xf32, #tpu.memory_space<vmem>>, %arg6: memref<32x32xf32, #tpu.memory_space<vmem>>, %arg7: memref<1x32xf32, #tpu.memory_space<vmem>>, %arg8: memref<3x32x32xf32, #tpu.memory_space<vmem>>, %arg9: memref<3x1x32xf32, #tpu.memory_space<vmem>>, %arg10: memref<32x96xf32, #tpu.memory_space<vmem>>, %arg11: memref<1x96xf32, #tpu.memory_space<vmem>>, %arg12: memref<16x96xf32, #tpu.memory_space<vmem>>) attributes {dimension_semantics = [#tpu.dimension_semantics<parallel>], iteration_bounds = array<i64: 1>, scalar_prefetch = 0 : i64, scratch_operands = 0 : i64, tpu.core_type = #tpu.core_type<tc>, window_params = [{transform_indices = @transform_0, window_bounds = array<i64: 3, 3>}, {transform_indices = @transform_1, window_bounds = array<i64: 3>}, {transform_indices = @transform_2, window_bounds = array<i64: 16, 32>}, {transform_indices = @transform_3, window_bounds = array<i64: 16, 32>}, {pipeline_mode = #tpu.pipeline_mode<synchronous>, transform_indices = @transform_4, window_bounds = array<i64: 32, 32>}, {pipeline_mode = #tpu.pipeline_mode<synchronous>, transform_indices = @transform_5, window_bounds = array<i64: 32, 32>}, {pipeline_mode = #tpu.pipeline_mode<synchronous>, transform_indices = @transform_6, window_bounds = array<i64: 1, 32>}, {pipeline_mode = #tpu.pipeline_mode<synchronous>, transform_indices = @transform_7, window_bounds = array<i64: 3, 32, 32>}, {pipeline_mode = #tpu.pipeline_mode<synchronous>, transform_indices = @transform_8, window_bounds = array<i64: 3, 1, 32>}, {pipeline_mode = #tpu.pipeline_mode<synchronous>, transform_indices = @transform_9, window_bounds = array<i64: 32, 96>}, {pipeline_mode = #tpu.pipeline_mode<synchronous>, transform_indices = @transform_10, window_bounds = array<i64: 1, 96>}, {transform_indices = @transform_11, window_bounds = array<i64: 16, 96>}]} {
    %c0 = arith.constant 0 : index
    %c0_0 = arith.constant 0 : index
    %0 = vector.load %arg3[%c0, %c0_0] : memref<16x32xf32, #tpu.memory_space<vmem>>, vector<16x32xf32>
    %c0_1 = arith.constant 0 : index
    %c0_2 = arith.constant 0 : index
    %1 = vector.load %arg5[%c0_1, %c0_2] : memref<32x32xf32, #tpu.memory_space<vmem>>, vector<32x32xf32>
    %2 = arith.truncf %0 : vector<16x32xf32> to vector<16x32xbf16>
    %3 = arith.truncf %1 : vector<32x32xf32> to vector<32x32xbf16>
    %cst = arith.constant dense<0.000000e+00> : vector<16x32xf32>
    %4 = tpu.matmul %2, %3, %cst {dimension_numbers = #tpu.dot_dimension_numbers<[1], [0], [0], [1], [0, 0, 1, 1], [], []>} : vector<16x32xbf16>, vector<32x32xbf16>, vector<16x32xf32> -> vector<16x32xf32>
    %c0_3 = arith.constant 0 : index
    %c0_4 = arith.constant 0 : index
    %5 = vector.load %arg4[%c0_3, %c0_4] : memref<16x32xf32, #tpu.memory_space<vmem>>, vector<16x32xf32>
    %c0_5 = arith.constant 0 : index
    %c0_6 = arith.constant 0 : index
    %6 = vector.load %arg6[%c0_5, %c0_6] : memref<32x32xf32, #tpu.memory_space<vmem>>, vector<32x32xf32>
    %7 = arith.truncf %5 : vector<16x32xf32> to vector<16x32xbf16>
    %8 = arith.truncf %6 : vector<32x32xf32> to vector<32x32xbf16>
    %cst_7 = arith.constant dense<0.000000e+00> : vector<16x32xf32>
    %9 = tpu.matmul %7, %8, %cst_7 {dimension_numbers = #tpu.dot_dimension_numbers<[1], [0], [0], [1], [0, 0, 1, 1], [], []>} : vector<16x32xbf16>, vector<32x32xbf16>, vector<16x32xf32> -> vector<16x32xf32>
    %10 = arith.addf %4, %9 : vector<16x32xf32>
    %c0_8 = arith.constant 0 : index
    %c0_9 = arith.constant 0 : index
    %11 = vector.load %arg7[%c0_8, %c0_9] : memref<1x32xf32, #tpu.memory_space<vmem>>, vector<1x32xf32>
    %12 = vector.broadcast %11 : vector<1x32xf32> to vector<16x32xf32>
    %13 = arith.addf %10, %12 : vector<16x32xf32>
    %c0_10 = arith.constant 0 : index
    %c0_11 = arith.constant 0 : index
    %c0_12 = arith.constant 0 : index
    %14 = vector.load %arg8[%c0_10, %c0_11, %c0_12] : memref<3x32x32xf32, #tpu.memory_space<vmem>>, vector<1x32x32xf32>
    %15 = vector.shape_cast %14 : vector<1x32x32xf32> to vector<32x32xf32>
    %16 = arith.truncf %13 : vector<16x32xf32> to vector<16x32xbf16>
    %17 = arith.truncf %15 : vector<32x32xf32> to vector<32x32xbf16>
    %cst_13 = arith.constant dense<0.000000e+00> : vector<16x32xf32>
    %18 = tpu.matmul %16, %17, %cst_13 {dimension_numbers = #tpu.dot_dimension_numbers<[1], [0], [0], [1], [0, 0, 1, 1], [], []>} : vector<16x32xbf16>, vector<32x32xbf16>, vector<16x32xf32> -> vector<16x32xf32>
    %c0_14 = arith.constant 0 : index
    %c0_15 = arith.constant 0 : index
    %c0_16 = arith.constant 0 : index
    %19 = vector.load %arg9[%c0_14, %c0_15, %c0_16] : memref<3x1x32xf32, #tpu.memory_space<vmem>>, vector<1x1x32xf32>
    %20 = vector.shape_cast %19 : vector<1x1x32xf32> to vector<1x32xf32>
    %21 = vector.broadcast %20 : vector<1x32xf32> to vector<16x32xf32>
    %22 = arith.addf %18, %21 : vector<16x32xf32>
    %cst_17 = arith.constant 0.000000e+00 : f32
    %23 = vector.broadcast %cst_17 : f32 to vector<16x32xf32>
    %24 = arith.maximumf %22, %23 : vector<16x32xf32>
    %c0_18 = arith.constant 0 : index
    %c1 = arith.constant 1 : index
    %25 = memref.load %arg1[%c0_18, %c1] : memref<3x3xf32, #tpu.memory_space<smem>>
    %26 = vector.broadcast %25 : f32 to vector<16x32xf32>
    %27 = arith.mulf %26, %13 : vector<16x32xf32>
    %c0_19 = arith.constant 0 : index
    %c2 = arith.constant 2 : index
    %28 = memref.load %arg1[%c0_19, %c2] : memref<3x3xf32, #tpu.memory_space<smem>>
    %29 = vector.broadcast %28 : f32 to vector<16x32xf32>
    %30 = arith.mulf %29, %24 : vector<16x32xf32>
    %31 = arith.addf %27, %30 : vector<16x32xf32>
    %c1_20 = arith.constant 1 : index
    %c0_21 = arith.constant 0 : index
    %c0_22 = arith.constant 0 : index
    %32 = vector.load %arg8[%c1_20, %c0_21, %c0_22] : memref<3x32x32xf32, #tpu.memory_space<vmem>>, vector<1x32x32xf32>
    %33 = vector.shape_cast %32 : vector<1x32x32xf32> to vector<32x32xf32>
    %34 = arith.truncf %13 : vector<16x32xf32> to vector<16x32xbf16>
    %35 = arith.truncf %33 : vector<32x32xf32> to vector<32x32xbf16>
    %cst_23 = arith.constant dense<0.000000e+00> : vector<16x32xf32>
    %36 = tpu.matmul %34, %35, %cst_23 {dimension_numbers = #tpu.dot_dimension_numbers<[1], [0], [0], [1], [0, 0, 1, 1], [], []>} : vector<16x32xbf16>, vector<32x32xbf16>, vector<16x32xf32> -> vector<16x32xf32>
    %c1_24 = arith.constant 1 : index
    %c0_25 = arith.constant 0 : index
    %c0_26 = arith.constant 0 : index
    %37 = vector.load %arg9[%c1_24, %c0_25, %c0_26] : memref<3x1x32xf32, #tpu.memory_space<vmem>>, vector<1x1x32xf32>
    %38 = vector.shape_cast %37 : vector<1x1x32xf32> to vector<1x32xf32>
    %39 = vector.broadcast %38 : vector<1x32xf32> to vector<16x32xf32>
    %40 = arith.addf %36, %39 : vector<16x32xf32>
    %cst_27 = arith.constant 0.000000e+00 : f32
    %41 = vector.broadcast %cst_27 : f32 to vector<16x32xf32>
    %42 = arith.maximumf %40, %41 : vector<16x32xf32>
    %c1_28 = arith.constant 1 : index
    %c1_29 = arith.constant 1 : index
    %43 = memref.load %arg1[%c1_28, %c1_29] : memref<3x3xf32, #tpu.memory_space<smem>>
    %44 = vector.broadcast %43 : f32 to vector<16x32xf32>
    %45 = arith.mulf %44, %13 : vector<16x32xf32>
    %c1_30 = arith.constant 1 : index
    %c2_31 = arith.constant 2 : index
    %46 = memref.load %arg1[%c1_30, %c2_31] : memref<3x3xf32, #tpu.memory_space<smem>>
    %47 = vector.broadcast %46 : f32 to vector<16x32xf32>
    %48 = arith.mulf %47, %42 : vector<16x32xf32>
    %49 = arith.addf %45, %48 : vector<16x32xf32>
    %c2_32 = arith.constant 2 : index
    %c0_33 = arith.constant 0 : index
    %c0_34 = arith.constant 0 : index
    %50 = vector.load %arg8[%c2_32, %c0_33, %c0_34] : memref<3x32x32xf32, #tpu.memory_space<vmem>>, vector<1x32x32xf32>
    %51 = vector.shape_cast %50 : vector<1x32x32xf32> to vector<32x32xf32>
    %52 = arith.truncf %31 : vector<16x32xf32> to vector<16x32xbf16>
    %53 = arith.truncf %51 : vector<32x32xf32> to vector<32x32xbf16>
    %cst_35 = arith.constant dense<0.000000e+00> : vector<16x32xf32>
    %54 = tpu.matmul %52, %53, %cst_35 {dimension_numbers = #tpu.dot_dimension_numbers<[1], [0], [0], [1], [0, 0, 1, 1], [], []>} : vector<16x32xbf16>, vector<32x32xbf16>, vector<16x32xf32> -> vector<16x32xf32>
    %c2_36 = arith.constant 2 : index
    %c0_37 = arith.constant 0 : index
    %c0_38 = arith.constant 0 : index
    %55 = vector.load %arg9[%c2_36, %c0_37, %c0_38] : memref<3x1x32xf32, #tpu.memory_space<vmem>>, vector<1x1x32xf32>
    %56 = vector.shape_cast %55 : vector<1x1x32xf32> to vector<1x32xf32>
    %57 = vector.broadcast %56 : vector<1x32xf32> to vector<16x32xf32>
    %58 = arith.addf %54, %57 : vector<16x32xf32>
    %cst_39 = arith.constant 0.000000e+00 : f32
    %59 = vector.broadcast %cst_39 : f32 to vector<16x32xf32>
    %60 = arith.maximumf %58, %59 : vector<16x32xf32>
    %c2_40 = arith.constant 2 : index
    %c1_41 = arith.constant 1 : index
    %61 = memref.load %arg1[%c2_40, %c1_41] : memref<3x3xf32, #tpu.memory_space<smem>>
    %62 = vector.broadcast %61 : f32 to vector<16x32xf32>
    %63 = arith.mulf %62, %31 : vector<16x32xf32>
    %c2_42 = arith.constant 2 : index
    %c2_43 = arith.constant 2 : index
    %64 = memref.load %arg1[%c2_42, %c2_43] : memref<3x3xf32, #tpu.memory_space<smem>>
    %65 = vector.broadcast %64 : f32 to vector<16x32xf32>
    %66 = arith.mulf %65, %60 : vector<16x32xf32>
    %67 = arith.addf %63, %66 : vector<16x32xf32>
    %68 = arith.addf %49, %67 : vector<16x32xf32>
    %c0_44 = arith.constant 0 : index
    %69 = memref.load %arg2[%c0_44] : memref<3xf32, #tpu.memory_space<smem>>
    %70 = vector.broadcast %69 : f32 to vector<16x32xf32>
    %71 = arith.mulf %70, %13 : vector<16x32xf32>
    %c1_45 = arith.constant 1 : index
    %72 = memref.load %arg2[%c1_45] : memref<3xf32, #tpu.memory_space<smem>>
    %73 = vector.broadcast %72 : f32 to vector<16x32xf32>
    %74 = arith.mulf %73, %31 : vector<16x32xf32>
    %75 = arith.addf %71, %74 : vector<16x32xf32>
    %c2_46 = arith.constant 2 : index
    %76 = memref.load %arg2[%c2_46] : memref<3xf32, #tpu.memory_space<smem>>
    %77 = vector.broadcast %76 : f32 to vector<16x32xf32>
    %78 = arith.mulf %77, %68 : vector<16x32xf32>
    %79 = arith.addf %75, %78 : vector<16x32xf32>
    %c0_47 = arith.constant 0 : index
    %c0_48 = arith.constant 0 : index
    %80 = vector.load %arg10[%c0_47, %c0_48] : memref<32x96xf32, #tpu.memory_space<vmem>>, vector<32x96xf32>
    %81 = arith.truncf %79 : vector<16x32xf32> to vector<16x32xbf16>
    %82 = arith.truncf %80 : vector<32x96xf32> to vector<32x96xbf16>
    %cst_49 = arith.constant dense<0.000000e+00> : vector<16x96xf32>
    %83 = tpu.matmul %81, %82, %cst_49 {dimension_numbers = #tpu.dot_dimension_numbers<[1], [0], [0], [1], [0, 0, 1, 1], [], []>} : vector<16x32xbf16>, vector<32x96xbf16>, vector<16x96xf32> -> vector<16x96xf32>
    %c0_50 = arith.constant 0 : index
    %c0_51 = arith.constant 0 : index
    %84 = vector.load %arg11[%c0_50, %c0_51] : memref<1x96xf32, #tpu.memory_space<vmem>>, vector<1x96xf32>
    %85 = vector.broadcast %84 : vector<1x96xf32> to vector<16x96xf32>
    %86 = arith.addf %83, %85 : vector<16x96xf32>
    %c0_52 = arith.constant 0 : index
    %c0_53 = arith.constant 0 : index
    %87 = vector.load %arg12[%c0_52, %c0_53] : memref<16x96xf32, #tpu.memory_space<vmem>>, vector<16x96xf32>
    tpu.vector_store %arg12[%c0_52, %c0_53], %86 {strides = array<i32>} : memref<16x96xf32, #tpu.memory_space<vmem>>, vector<16x96xf32>,
    return
  }
  func.func @transform_0(%arg0: i32) -> (i32, i32) {
    %c0_i32 = arith.constant 0 : i32
    %c0_i32_0 = arith.constant 0 : i32
    %c0_i32_1 = arith.constant 0 : i32
    return %c0_i32, %c0_i32_0 : i32, i32
  }
  func.func @transform_1(%arg0: i32) -> i32 {
    %c0_i32 = arith.constant 0 : i32
    %c0_i32_0 = arith.constant 0 : i32
    return %c0_i32 : i32
  }
  func.func @transform_2(%arg0: i32) -> (i32, i32) {
    %c0_i32 = arith.constant 0 : i32
    %c0_i32_0 = arith.constant 0 : i32
    return %arg0, %c0_i32 : i32, i32
  }
  func.func @transform_3(%arg0: i32) -> (i32, i32) {
    %c0_i32 = arith.constant 0 : i32
    %c0_i32_0 = arith.constant 0 : i32
    return %arg0, %c0_i32 : i32, i32
  }
  func.func @transform_4(%arg0: i32) -> (i32, i32) {
    %c0_i32 = arith.constant 0 : i32
    %c0_i32_0 = arith.constant 0 : i32
    %c0_i32_1 = arith.constant 0 : i32
    return %c0_i32, %c0_i32_0 : i32, i32
  }
  func.func @transform_5(%arg0: i32) -> (i32, i32) {
    %c0_i32 = arith.constant 0 : i32
    %c0_i32_0 = arith.constant 0 : i32
    %c0_i32_1 = arith.constant 0 : i32
    return %c0_i32, %c0_i32_0 : i32, i32
  }
  func.func @transform_6(%arg0: i32) -> (i32, i32) {
    %c0_i32 = arith.constant 0 : i32
    %c0_i32_0 = arith.constant 0 : i32
    %c0_i32_1 = arith.constant 0 : i32
    return %c0_i32, %c0_i32_0 : i32, i32
  }
  func.func @transform_7(%arg0: i32) -> (i32, i32, i32) {
    %c0_i32 = arith.constant 0 : i32
    %c0_i32_0 = arith.constant 0 : i32
    %c0_i32_1 = arith.constant 0 : i32
    %c0_i32_2 = arith.constant 0 : i32
    return %c0_i32, %c0_i32_0, %c0_i32_1 : i32, i32, i32
  }
  func.func @transform_8(%arg0: i32) -> (i32, i32, i32) {
    %c0_i32 = arith.constant 0 : i32
    %c0_i32_0 = arith.constant 0 : i32
    %c0_i32_1 = arith.constant 0 : i32
    %c0_i32_2 = arith.constant 0 : i32
    return %c0_i32, %c0_i32_0, %c0_i32_1 : i32, i32, i32
  }
  func.func @transform_9(%arg0: i32) -> (i32, i32) {
    %c0_i32 = arith.constant 0 : i32
    %c0_i32_0 = arith.constant 0 : i32
    %c0_i32_1 = arith.constant 0 : i32
    return %c0_i32, %c0_i32_0 : i32, i32
  }
  func.func @transform_10(%arg0: i32) -> (i32, i32) {
    %c0_i32 = arith.constant 0 : i32
    %c0_i32_0 = arith.constant 0 : i32
    %c0_i32_1 = arith.constant 0 : i32
    return %c0_i32, %c0_i32_0 : i32, i32
  }
  func.func @transform_11(%arg0: i32) -> (i32, i32) {
    %c0_i32 = arith.constant 0 : i32
    %c0_i32_0 = arith.constant 0 : i32
    return %arg0, %c0_i32 : i32, i32
  }
}

module attributes {stable_mosaic.version = 11 : i64} {
  func.func @_time_cell_kernel(%arg0: i32, %arg1: memref<3x3xf32, #tpu.memory_space<smem>>, %arg2: memref<3xf32, #tpu.memory_space<smem>>, %arg3: memref<16x1xf32, #tpu.memory_space<vmem>>, %arg4: memref<1x64xf32, #tpu.memory_space<vmem>>, %arg5: memref<1x64xf32, #tpu.memory_space<vmem>>, %arg6: memref<64x32xf32, #tpu.memory_space<vmem>>, %arg7: memref<1x32xf32, #tpu.memory_space<vmem>>, %arg8: memref<3x32x32xf32, #tpu.memory_space<vmem>>, %arg9: memref<3x1x32xf32, #tpu.memory_space<vmem>>, %arg10: memref<16x32xf32, #tpu.memory_space<vmem>>) attributes {dimension_semantics = [#tpu.dimension_semantics<parallel>], iteration_bounds = array<i64: 1>, scalar_prefetch = 0 : i64, scratch_operands = 0 : i64, tpu.core_type = #tpu.core_type<tc>, window_params = [{transform_indices = @transform_0, window_bounds = array<i64: 3, 3>}, {transform_indices = @transform_1, window_bounds = array<i64: 3>}, {transform_indices = @transform_2, window_bounds = array<i64: 16, 1>}, {pipeline_mode = #tpu.pipeline_mode<synchronous>, transform_indices = @transform_3, window_bounds = array<i64: 1, 64>}, {pipeline_mode = #tpu.pipeline_mode<synchronous>, transform_indices = @transform_4, window_bounds = array<i64: 1, 64>}, {pipeline_mode = #tpu.pipeline_mode<synchronous>, transform_indices = @transform_5, window_bounds = array<i64: 64, 32>}, {pipeline_mode = #tpu.pipeline_mode<synchronous>, transform_indices = @transform_6, window_bounds = array<i64: 1, 32>}, {pipeline_mode = #tpu.pipeline_mode<synchronous>, transform_indices = @transform_7, window_bounds = array<i64: 3, 32, 32>}, {pipeline_mode = #tpu.pipeline_mode<synchronous>, transform_indices = @transform_8, window_bounds = array<i64: 3, 1, 32>}, {transform_indices = @transform_9, window_bounds = array<i64: 16, 32>}]} {
    %c0 = arith.constant 0 : index
    %c0_0 = arith.constant 0 : index
    %0 = vector.load %arg3[%c0, %c0_0] : memref<16x1xf32, #tpu.memory_space<vmem>>, vector<16x1xf32>
    %c0_1 = arith.constant 0 : index
    %c0_2 = arith.constant 0 : index
    %1 = vector.load %arg4[%c0_1, %c0_2] : memref<1x64xf32, #tpu.memory_space<vmem>>, vector<1x64xf32>
    %2 = vector.broadcast %0 : vector<16x1xf32> to vector<16x64xf32>
    %3 = vector.broadcast %1 : vector<1x64xf32> to vector<16x64xf32>
    %4 = arith.mulf %2, %3 : vector<16x64xf32>
    %c0_3 = arith.constant 0 : index
    %c0_4 = arith.constant 0 : index
    %5 = vector.load %arg5[%c0_3, %c0_4] : memref<1x64xf32, #tpu.memory_space<vmem>>, vector<1x64xf32>
    %6 = vector.broadcast %5 : vector<1x64xf32> to vector<16x64xf32>
    %7 = arith.addf %4, %6 : vector<16x64xf32>
    %8 = arith.mulf %7, %7 : vector<16x64xf32>
    %9 = math.tanh %8 : vector<16x64xf32>
    %cst = arith.constant 1.000000e+00 : f32
    %10 = vector.broadcast %cst : f32 to vector<16x64xf32>
    %11 = arith.subf %10, %9 : vector<16x64xf32>
    %c0_5 = arith.constant 0 : index
    %c0_6 = arith.constant 0 : index
    %12 = vector.load %arg6[%c0_5, %c0_6] : memref<64x32xf32, #tpu.memory_space<vmem>>, vector<64x32xf32>
    %13 = arith.truncf %11 : vector<16x64xf32> to vector<16x64xbf16>
    %14 = arith.truncf %12 : vector<64x32xf32> to vector<64x32xbf16>
    %cst_7 = arith.constant dense<0.000000e+00> : vector<16x32xf32>
    %15 = tpu.matmul %13, %14, %cst_7 {dimension_numbers = #tpu.dot_dimension_numbers<[1], [0], [0], [1], [0, 0, 1, 1], [], []>} : vector<16x64xbf16>, vector<64x32xbf16>, vector<16x32xf32> -> vector<16x32xf32>
    %c0_8 = arith.constant 0 : index
    %c0_9 = arith.constant 0 : index
    %16 = vector.load %arg7[%c0_8, %c0_9] : memref<1x32xf32, #tpu.memory_space<vmem>>, vector<1x32xf32>
    %17 = vector.broadcast %16 : vector<1x32xf32> to vector<16x32xf32>
    %18 = arith.addf %15, %17 : vector<16x32xf32>
    %c0_10 = arith.constant 0 : index
    %c0_11 = arith.constant 0 : index
    %c0_12 = arith.constant 0 : index
    %19 = vector.load %arg8[%c0_10, %c0_11, %c0_12] : memref<3x32x32xf32, #tpu.memory_space<vmem>>, vector<1x32x32xf32>
    %20 = vector.shape_cast %19 : vector<1x32x32xf32> to vector<32x32xf32>
    %21 = arith.truncf %18 : vector<16x32xf32> to vector<16x32xbf16>
    %22 = arith.truncf %20 : vector<32x32xf32> to vector<32x32xbf16>
    %cst_13 = arith.constant dense<0.000000e+00> : vector<16x32xf32>
    %23 = tpu.matmul %21, %22, %cst_13 {dimension_numbers = #tpu.dot_dimension_numbers<[1], [0], [0], [1], [0, 0, 1, 1], [], []>} : vector<16x32xbf16>, vector<32x32xbf16>, vector<16x32xf32> -> vector<16x32xf32>
    %c0_14 = arith.constant 0 : index
    %c0_15 = arith.constant 0 : index
    %c0_16 = arith.constant 0 : index
    %24 = vector.load %arg9[%c0_14, %c0_15, %c0_16] : memref<3x1x32xf32, #tpu.memory_space<vmem>>, vector<1x1x32xf32>
    %25 = vector.shape_cast %24 : vector<1x1x32xf32> to vector<1x32xf32>
    %26 = vector.broadcast %25 : vector<1x32xf32> to vector<16x32xf32>
    %27 = arith.addf %23, %26 : vector<16x32xf32>
    %cst_17 = arith.constant 0.000000e+00 : f32
    %28 = vector.broadcast %cst_17 : f32 to vector<16x32xf32>
    %29 = arith.maximumf %27, %28 : vector<16x32xf32>
    %c0_18 = arith.constant 0 : index
    %c1 = arith.constant 1 : index
    %30 = memref.load %arg1[%c0_18, %c1] : memref<3x3xf32, #tpu.memory_space<smem>>
    %31 = vector.broadcast %30 : f32 to vector<16x32xf32>
    %32 = arith.mulf %31, %18 : vector<16x32xf32>
    %c0_19 = arith.constant 0 : index
    %c2 = arith.constant 2 : index
    %33 = memref.load %arg1[%c0_19, %c2] : memref<3x3xf32, #tpu.memory_space<smem>>
    %34 = vector.broadcast %33 : f32 to vector<16x32xf32>
    %35 = arith.mulf %34, %29 : vector<16x32xf32>
    %36 = arith.addf %32, %35 : vector<16x32xf32>
    %c1_20 = arith.constant 1 : index
    %c0_21 = arith.constant 0 : index
    %c0_22 = arith.constant 0 : index
    %37 = vector.load %arg8[%c1_20, %c0_21, %c0_22] : memref<3x32x32xf32, #tpu.memory_space<vmem>>, vector<1x32x32xf32>
    %38 = vector.shape_cast %37 : vector<1x32x32xf32> to vector<32x32xf32>
    %39 = arith.truncf %18 : vector<16x32xf32> to vector<16x32xbf16>
    %40 = arith.truncf %38 : vector<32x32xf32> to vector<32x32xbf16>
    %cst_23 = arith.constant dense<0.000000e+00> : vector<16x32xf32>
    %41 = tpu.matmul %39, %40, %cst_23 {dimension_numbers = #tpu.dot_dimension_numbers<[1], [0], [0], [1], [0, 0, 1, 1], [], []>} : vector<16x32xbf16>, vector<32x32xbf16>, vector<16x32xf32> -> vector<16x32xf32>
    %c1_24 = arith.constant 1 : index
    %c0_25 = arith.constant 0 : index
    %c0_26 = arith.constant 0 : index
    %42 = vector.load %arg9[%c1_24, %c0_25, %c0_26] : memref<3x1x32xf32, #tpu.memory_space<vmem>>, vector<1x1x32xf32>
    %43 = vector.shape_cast %42 : vector<1x1x32xf32> to vector<1x32xf32>
    %44 = vector.broadcast %43 : vector<1x32xf32> to vector<16x32xf32>
    %45 = arith.addf %41, %44 : vector<16x32xf32>
    %cst_27 = arith.constant 0.000000e+00 : f32
    %46 = vector.broadcast %cst_27 : f32 to vector<16x32xf32>
    %47 = arith.maximumf %45, %46 : vector<16x32xf32>
    %c1_28 = arith.constant 1 : index
    %c1_29 = arith.constant 1 : index
    %48 = memref.load %arg1[%c1_28, %c1_29] : memref<3x3xf32, #tpu.memory_space<smem>>
    %49 = vector.broadcast %48 : f32 to vector<16x32xf32>
    %50 = arith.mulf %49, %18 : vector<16x32xf32>
    %c1_30 = arith.constant 1 : index
    %c2_31 = arith.constant 2 : index
    %51 = memref.load %arg1[%c1_30, %c2_31] : memref<3x3xf32, #tpu.memory_space<smem>>
    %52 = vector.broadcast %51 : f32 to vector<16x32xf32>
    %53 = arith.mulf %52, %47 : vector<16x32xf32>
    %54 = arith.addf %50, %53 : vector<16x32xf32>
    %c2_32 = arith.constant 2 : index
    %c0_33 = arith.constant 0 : index
    %c0_34 = arith.constant 0 : index
    %55 = vector.load %arg8[%c2_32, %c0_33, %c0_34] : memref<3x32x32xf32, #tpu.memory_space<vmem>>, vector<1x32x32xf32>
    %56 = vector.shape_cast %55 : vector<1x32x32xf32> to vector<32x32xf32>
    %57 = arith.truncf %36 : vector<16x32xf32> to vector<16x32xbf16>
    %58 = arith.truncf %56 : vector<32x32xf32> to vector<32x32xbf16>
    %cst_35 = arith.constant dense<0.000000e+00> : vector<16x32xf32>
    %59 = tpu.matmul %57, %58, %cst_35 {dimension_numbers = #tpu.dot_dimension_numbers<[1], [0], [0], [1], [0, 0, 1, 1], [], []>} : vector<16x32xbf16>, vector<32x32xbf16>, vector<16x32xf32> -> vector<16x32xf32>
    %c2_36 = arith.constant 2 : index
    %c0_37 = arith.constant 0 : index
    %c0_38 = arith.constant 0 : index
    %60 = vector.load %arg9[%c2_36, %c0_37, %c0_38] : memref<3x1x32xf32, #tpu.memory_space<vmem>>, vector<1x1x32xf32>
    %61 = vector.shape_cast %60 : vector<1x1x32xf32> to vector<1x32xf32>
    %62 = vector.broadcast %61 : vector<1x32xf32> to vector<16x32xf32>
    %63 = arith.addf %59, %62 : vector<16x32xf32>
    %cst_39 = arith.constant 0.000000e+00 : f32
    %64 = vector.broadcast %cst_39 : f32 to vector<16x32xf32>
    %65 = arith.maximumf %63, %64 : vector<16x32xf32>
    %c2_40 = arith.constant 2 : index
    %c1_41 = arith.constant 1 : index
    %66 = memref.load %arg1[%c2_40, %c1_41] : memref<3x3xf32, #tpu.memory_space<smem>>
    %67 = vector.broadcast %66 : f32 to vector<16x32xf32>
    %68 = arith.mulf %67, %36 : vector<16x32xf32>
    %c2_42 = arith.constant 2 : index
    %c2_43 = arith.constant 2 : index
    %69 = memref.load %arg1[%c2_42, %c2_43] : memref<3x3xf32, #tpu.memory_space<smem>>
    %70 = vector.broadcast %69 : f32 to vector<16x32xf32>
    %71 = arith.mulf %70, %65 : vector<16x32xf32>
    %72 = arith.addf %68, %71 : vector<16x32xf32>
    %73 = arith.addf %54, %72 : vector<16x32xf32>
    %c0_44 = arith.constant 0 : index
    %74 = memref.load %arg2[%c0_44] : memref<3xf32, #tpu.memory_space<smem>>
    %75 = vector.broadcast %74 : f32 to vector<16x32xf32>
    %76 = arith.mulf %75, %18 : vector<16x32xf32>
    %c1_45 = arith.constant 1 : index
    %77 = memref.load %arg2[%c1_45] : memref<3xf32, #tpu.memory_space<smem>>
    %78 = vector.broadcast %77 : f32 to vector<16x32xf32>
    %79 = arith.mulf %78, %36 : vector<16x32xf32>
    %80 = arith.addf %76, %79 : vector<16x32xf32>
    %c2_46 = arith.constant 2 : index
    %81 = memref.load %arg2[%c2_46] : memref<3xf32, #tpu.memory_space<smem>>
    %82 = vector.broadcast %81 : f32 to vector<16x32xf32>
    %83 = arith.mulf %82, %73 : vector<16x32xf32>
    %84 = arith.addf %80, %83 : vector<16x32xf32>
    %c0_47 = arith.constant 0 : index
    %c0_48 = arith.constant 0 : index
    %85 = vector.load %arg10[%c0_47, %c0_48] : memref<16x32xf32, #tpu.memory_space<vmem>>, vector<16x32xf32>
    tpu.vector_store %arg10[%c0_47, %c0_48], %84 {strides = array<i32>} : memref<16x32xf32, #tpu.memory_space<vmem>>, vector<16x32xf32>,
    return
  }
  func.func @transform_0(%arg0: i32) -> (i32, i32) {
    %c0_i32 = arith.constant 0 : i32
    %c0_i32_0 = arith.constant 0 : i32
    %c0_i32_1 = arith.constant 0 : i32
    return %c0_i32, %c0_i32_0 : i32, i32
  }
  func.func @transform_1(%arg0: i32) -> i32 {
    %c0_i32 = arith.constant 0 : i32
    %c0_i32_0 = arith.constant 0 : i32
    return %c0_i32 : i32
  }
  func.func @transform_2(%arg0: i32) -> (i32, i32) {
    %c0_i32 = arith.constant 0 : i32
    %c0_i32_0 = arith.constant 0 : i32
    return %arg0, %c0_i32 : i32, i32
  }
  func.func @transform_3(%arg0: i32) -> (i32, i32) {
    %c0_i32 = arith.constant 0 : i32
    %c0_i32_0 = arith.constant 0 : i32
    %c0_i32_1 = arith.constant 0 : i32
    return %c0_i32, %c0_i32_0 : i32, i32
  }
  func.func @transform_4(%arg0: i32) -> (i32, i32) {
    %c0_i32 = arith.constant 0 : i32
    %c0_i32_0 = arith.constant 0 : i32
    %c0_i32_1 = arith.constant 0 : i32
    return %c0_i32, %c0_i32_0 : i32, i32
  }
  func.func @transform_5(%arg0: i32) -> (i32, i32) {
    %c0_i32 = arith.constant 0 : i32
    %c0_i32_0 = arith.constant 0 : i32
    %c0_i32_1 = arith.constant 0 : i32
    return %c0_i32, %c0_i32_0 : i32, i32
  }
  func.func @transform_6(%arg0: i32) -> (i32, i32) {
    %c0_i32 = arith.constant 0 : i32
    %c0_i32_0 = arith.constant 0 : i32
    %c0_i32_1 = arith.constant 0 : i32
    return %c0_i32, %c0_i32_0 : i32, i32
  }
  func.func @transform_7(%arg0: i32) -> (i32, i32, i32) {
    %c0_i32 = arith.constant 0 : i32
    %c0_i32_0 = arith.constant 0 : i32
    %c0_i32_1 = arith.constant 0 : i32
    %c0_i32_2 = arith.constant 0 : i32
    return %c0_i32, %c0_i32_0, %c0_i32_1 : i32, i32, i32
  }
  func.func @transform_8(%arg0: i32) -> (i32, i32, i32) {
    %c0_i32 = arith.constant 0 : i32
    %c0_i32_0 = arith.constant 0 : i32
    %c0_i32_1 = arith.constant 0 : i32
    %c0_i32_2 = arith.constant 0 : i32
    return %c0_i32, %c0_i32_0, %c0_i32_1 : i32, i32, i32
  }
  func.func @transform_9(%arg0: i32) -> (i32, i32) {
    %c0_i32 = arith.constant 0 : i32
    %c0_i32_0 = arith.constant 0 : i32
    return %arg0, %c0_i32 : i32, i32
  }
}

module attributes {stable_mosaic.version = 11 : i64} {
  func.func @_gru_kernel(%arg0: i32, %arg1: memref<2x8x96xf32, #tpu.memory_space<vmem>>, %arg2: memref<32x96xf32, #tpu.memory_space<vmem>>, %arg3: memref<1x96xf32, #tpu.memory_space<vmem>>, %arg4: memref<2x8x32xf32, #tpu.memory_space<vmem>>, %arg5: memref<2x32xf32, #tpu.memory_space<vmem>>) attributes {dimension_semantics = [#tpu.dimension_semantics<arbitrary>], iteration_bounds = array<i64: 1>, scalar_prefetch = 0 : i64, scratch_operands = 1 : i64, tpu.core_type = #tpu.core_type<tc>, window_params = [{transform_indices = @transform_0, window_bounds = array<i64: 2, 8, 96>}, {pipeline_mode = #tpu.pipeline_mode<synchronous>, transform_indices = @transform_1, window_bounds = array<i64: 32, 96>}, {pipeline_mode = #tpu.pipeline_mode<synchronous>, transform_indices = @transform_2, window_bounds = array<i64: 1, 96>}, {transform_indices = @transform_3, window_bounds = array<i64: 2, 8, 32>}]} {
    %c0_i32 = arith.constant 0 : i32
    %0 = arith.cmpi eq, %arg0, %c0_i32 : i32
    %1 = arith.extui %0 : i1 to i32
    %c0_i32_0 = arith.constant 0 : i32
    %2 = arith.cmpi ne, %1, %c0_i32_0 : i32
    scf.if %2 {
      %cst_59 = arith.constant 0.000000e+00 : f32
      %281 = vector.broadcast %cst_59 : f32 to vector<2x32xf32>
      %c0_60 = arith.constant 0 : index
      %c0_61 = arith.constant 0 : index
      %282 = vector.load %arg5[%c0_60, %c0_61] : memref<2x32xf32, #tpu.memory_space<vmem>>, vector<2x32xf32>
      tpu.vector_store %arg5[%c0_60, %c0_61], %281 {strides = array<i32>} : memref<2x32xf32, #tpu.memory_space<vmem>>, vector<2x32xf32>,
    } else {
    }
    %c0 = arith.constant 0 : index
    %c0_1 = arith.constant 0 : index
    %3 = vector.load %arg2[%c0, %c0_1] : memref<32x96xf32, #tpu.memory_space<vmem>>, vector<32x96xf32>
    %4 = arith.truncf %3 : vector<32x96xf32> to vector<32x96xbf16>
    %c0_2 = arith.constant 0 : index
    %c0_3 = arith.constant 0 : index
    %5 = vector.load %arg3[%c0_2, %c0_3] : memref<1x96xf32, #tpu.memory_space<vmem>>, vector<1x96xf32>
    %c0_4 = arith.constant 0 : index
    %c0_5 = arith.constant 0 : index
    %c0_6 = arith.constant 0 : index
    %6 = vector.load %arg1[%c0_4, %c0_5, %c0_6] : memref<2x8x96xf32, #tpu.memory_space<vmem>>, vector<2x8x96xf32>
    %c0_7 = arith.constant 0 : index
    %c0_8 = arith.constant 0 : index
    %7 = vector.load %arg5[%c0_7, %c0_8] : memref<2x32xf32, #tpu.memory_space<vmem>>, vector<2x32xf32>
    %8 = vector.extract_strided_slice %6 {offsets = [0, 0, 0], sizes = [2, 1, 96], strides = [1, 1, 1]} : vector<2x8x96xf32> to vector<2x1x96xf32>
    %9 = vector.shape_cast %8 : vector<2x1x96xf32> to vector<2x96xf32>
    %10 = arith.truncf %7 : vector<2x32xf32> to vector<2x32xbf16>
    %cst = arith.constant dense<0.000000e+00> : vector<2x96xf32>
    %11 = tpu.matmul %10, %4, %cst {dimension_numbers = #tpu.dot_dimension_numbers<[1], [0], [0], [1], [0, 0, 1, 1], [], []>} : vector<2x32xbf16>, vector<32x96xbf16>, vector<2x96xf32> -> vector<2x96xf32>
    %12 = vector.broadcast %5 : vector<1x96xf32> to vector<2x96xf32>
    %13 = arith.addf %11, %12 : vector<2x96xf32>
    %14 = vector.extract_strided_slice %9 {offsets = [0, 0], sizes = [2, 32], strides = [1, 1]} : vector<2x96xf32> to vector<2x32xf32>
    %15 = vector.extract_strided_slice %9 {offsets = [0, 32], sizes = [2, 32], strides = [1, 1]} : vector<2x96xf32> to vector<2x32xf32>
    %16 = vector.extract_strided_slice %9 {offsets = [0, 64], sizes = [2, 32], strides = [1, 1]} : vector<2x96xf32> to vector<2x32xf32>
    %17 = vector.extract_strided_slice %13 {offsets = [0, 0], sizes = [2, 32], strides = [1, 1]} : vector<2x96xf32> to vector<2x32xf32>
    %18 = vector.extract_strided_slice %13 {offsets = [0, 32], sizes = [2, 32], strides = [1, 1]} : vector<2x96xf32> to vector<2x32xf32>
    %19 = vector.extract_strided_slice %13 {offsets = [0, 64], sizes = [2, 32], strides = [1, 1]} : vector<2x96xf32> to vector<2x32xf32>
    %20 = arith.addf %14, %17 : vector<2x32xf32>
    %21 = arith.negf %20 : vector<2x32xf32>
    %22 = math.exp %21 : vector<2x32xf32>
    %cst_9 = arith.constant 1.000000e+00 : f32
    %23 = vector.broadcast %cst_9 : f32 to vector<2x32xf32>
    %24 = arith.addf %23, %22 : vector<2x32xf32>
    %25 = arith.divf %23, %24 : vector<2x32xf32>
    %26 = arith.addf %15, %18 : vector<2x32xf32>
    %27 = arith.negf %26 : vector<2x32xf32>
    %28 = math.exp %27 : vector<2x32xf32>
    %cst_10 = arith.constant 1.000000e+00 : f32
    %29 = vector.broadcast %cst_10 : f32 to vector<2x32xf32>
    %30 = arith.addf %29, %28 : vector<2x32xf32>
    %31 = arith.divf %29, %30 : vector<2x32xf32>
    %32 = arith.mulf %25, %19 : vector<2x32xf32>
    %33 = arith.addf %16, %32 : vector<2x32xf32>
    %34 = math.tanh %33 : vector<2x32xf32>
    %cst_11 = arith.constant 1.000000e+00 : f32
    %35 = vector.broadcast %cst_11 : f32 to vector<2x32xf32>
    %36 = arith.subf %35, %31 : vector<2x32xf32>
    %37 = arith.mulf %36, %34 : vector<2x32xf32>
    %38 = arith.mulf %31, %7 : vector<2x32xf32>
    %39 = arith.addf %37, %38 : vector<2x32xf32>
    %40 = vector.shape_cast %39 : vector<2x32xf32> to vector<2x1x32xf32>
    %c0_12 = arith.constant 0 : index
    %c0_13 = arith.constant 0 : index
    %c0_14 = arith.constant 0 : index
    %41 = vector.load %arg4[%c0_12, %c0_13, %c0_14] : memref<2x8x32xf32, #tpu.memory_space<vmem>>, vector<2x1x32xf32>
    tpu.vector_store %arg4[%c0_12, %c0_13, %c0_14], %40 {strides = array<i32>} : memref<2x8x32xf32, #tpu.memory_space<vmem>>, vector<2x1x32xf32>,
    %42 = vector.extract_strided_slice %6 {offsets = [0, 1, 0], sizes = [2, 1, 96], strides = [1, 1, 1]} : vector<2x8x96xf32> to vector<2x1x96xf32>
    %43 = vector.shape_cast %42 : vector<2x1x96xf32> to vector<2x96xf32>
    %44 = arith.truncf %39 : vector<2x32xf32> to vector<2x32xbf16>
    %cst_15 = arith.constant dense<0.000000e+00> : vector<2x96xf32>
    %45 = tpu.matmul %44, %4, %cst_15 {dimension_numbers = #tpu.dot_dimension_numbers<[1], [0], [0], [1], [0, 0, 1, 1], [], []>} : vector<2x32xbf16>, vector<32x96xbf16>, vector<2x96xf32> -> vector<2x96xf32>
    %46 = vector.broadcast %5 : vector<1x96xf32> to vector<2x96xf32>
    %47 = arith.addf %45, %46 : vector<2x96xf32>
    %48 = vector.extract_strided_slice %43 {offsets = [0, 0], sizes = [2, 32], strides = [1, 1]} : vector<2x96xf32> to vector<2x32xf32>
    %49 = vector.extract_strided_slice %43 {offsets = [0, 32], sizes = [2, 32], strides = [1, 1]} : vector<2x96xf32> to vector<2x32xf32>
    %50 = vector.extract_strided_slice %43 {offsets = [0, 64], sizes = [2, 32], strides = [1, 1]} : vector<2x96xf32> to vector<2x32xf32>
    %51 = vector.extract_strided_slice %47 {offsets = [0, 0], sizes = [2, 32], strides = [1, 1]} : vector<2x96xf32> to vector<2x32xf32>
    %52 = vector.extract_strided_slice %47 {offsets = [0, 32], sizes = [2, 32], strides = [1, 1]} : vector<2x96xf32> to vector<2x32xf32>
    %53 = vector.extract_strided_slice %47 {offsets = [0, 64], sizes = [2, 32], strides = [1, 1]} : vector<2x96xf32> to vector<2x32xf32>
    %54 = arith.addf %48, %51 : vector<2x32xf32>
    %55 = arith.negf %54 : vector<2x32xf32>
    %56 = math.exp %55 : vector<2x32xf32>
    %cst_16 = arith.constant 1.000000e+00 : f32
    %57 = vector.broadcast %cst_16 : f32 to vector<2x32xf32>
    %58 = arith.addf %57, %56 : vector<2x32xf32>
    %59 = arith.divf %57, %58 : vector<2x32xf32>
    %60 = arith.addf %49, %52 : vector<2x32xf32>
    %61 = arith.negf %60 : vector<2x32xf32>
    %62 = math.exp %61 : vector<2x32xf32>
    %cst_17 = arith.constant 1.000000e+00 : f32
    %63 = vector.broadcast %cst_17 : f32 to vector<2x32xf32>
    %64 = arith.addf %63, %62 : vector<2x32xf32>
    %65 = arith.divf %63, %64 : vector<2x32xf32>
    %66 = arith.mulf %59, %53 : vector<2x32xf32>
    %67 = arith.addf %50, %66 : vector<2x32xf32>
    %68 = math.tanh %67 : vector<2x32xf32>
    %cst_18 = arith.constant 1.000000e+00 : f32
    %69 = vector.broadcast %cst_18 : f32 to vector<2x32xf32>
    %70 = arith.subf %69, %65 : vector<2x32xf32>
    %71 = arith.mulf %70, %68 : vector<2x32xf32>
    %72 = arith.mulf %65, %39 : vector<2x32xf32>
    %73 = arith.addf %71, %72 : vector<2x32xf32>
    %74 = vector.shape_cast %73 : vector<2x32xf32> to vector<2x1x32xf32>
    %c0_19 = arith.constant 0 : index
    %c1 = arith.constant 1 : index
    %c0_20 = arith.constant 0 : index
    %75 = vector.load %arg4[%c0_19, %c1, %c0_20] : memref<2x8x32xf32, #tpu.memory_space<vmem>>, vector<2x1x32xf32>
    tpu.vector_store %arg4[%c0_19, %c1, %c0_20], %74 {strides = array<i32>} : memref<2x8x32xf32, #tpu.memory_space<vmem>>, vector<2x1x32xf32>,
    %76 = vector.extract_strided_slice %6 {offsets = [0, 2, 0], sizes = [2, 1, 96], strides = [1, 1, 1]} : vector<2x8x96xf32> to vector<2x1x96xf32>
    %77 = vector.shape_cast %76 : vector<2x1x96xf32> to vector<2x96xf32>
    %78 = arith.truncf %73 : vector<2x32xf32> to vector<2x32xbf16>
    %cst_21 = arith.constant dense<0.000000e+00> : vector<2x96xf32>
    %79 = tpu.matmul %78, %4, %cst_21 {dimension_numbers = #tpu.dot_dimension_numbers<[1], [0], [0], [1], [0, 0, 1, 1], [], []>} : vector<2x32xbf16>, vector<32x96xbf16>, vector<2x96xf32> -> vector<2x96xf32>
    %80 = vector.broadcast %5 : vector<1x96xf32> to vector<2x96xf32>
    %81 = arith.addf %79, %80 : vector<2x96xf32>
    %82 = vector.extract_strided_slice %77 {offsets = [0, 0], sizes = [2, 32], strides = [1, 1]} : vector<2x96xf32> to vector<2x32xf32>
    %83 = vector.extract_strided_slice %77 {offsets = [0, 32], sizes = [2, 32], strides = [1, 1]} : vector<2x96xf32> to vector<2x32xf32>
    %84 = vector.extract_strided_slice %77 {offsets = [0, 64], sizes = [2, 32], strides = [1, 1]} : vector<2x96xf32> to vector<2x32xf32>
    %85 = vector.extract_strided_slice %81 {offsets = [0, 0], sizes = [2, 32], strides = [1, 1]} : vector<2x96xf32> to vector<2x32xf32>
    %86 = vector.extract_strided_slice %81 {offsets = [0, 32], sizes = [2, 32], strides = [1, 1]} : vector<2x96xf32> to vector<2x32xf32>
    %87 = vector.extract_strided_slice %81 {offsets = [0, 64], sizes = [2, 32], strides = [1, 1]} : vector<2x96xf32> to vector<2x32xf32>
    %88 = arith.addf %82, %85 : vector<2x32xf32>
    %89 = arith.negf %88 : vector<2x32xf32>
    %90 = math.exp %89 : vector<2x32xf32>
    %cst_22 = arith.constant 1.000000e+00 : f32
    %91 = vector.broadcast %cst_22 : f32 to vector<2x32xf32>
    %92 = arith.addf %91, %90 : vector<2x32xf32>
    %93 = arith.divf %91, %92 : vector<2x32xf32>
    %94 = arith.addf %83, %86 : vector<2x32xf32>
    %95 = arith.negf %94 : vector<2x32xf32>
    %96 = math.exp %95 : vector<2x32xf32>
    %cst_23 = arith.constant 1.000000e+00 : f32
    %97 = vector.broadcast %cst_23 : f32 to vector<2x32xf32>
    %98 = arith.addf %97, %96 : vector<2x32xf32>
    %99 = arith.divf %97, %98 : vector<2x32xf32>
    %100 = arith.mulf %93, %87 : vector<2x32xf32>
    %101 = arith.addf %84, %100 : vector<2x32xf32>
    %102 = math.tanh %101 : vector<2x32xf32>
    %cst_24 = arith.constant 1.000000e+00 : f32
    %103 = vector.broadcast %cst_24 : f32 to vector<2x32xf32>
    %104 = arith.subf %103, %99 : vector<2x32xf32>
    %105 = arith.mulf %104, %102 : vector<2x32xf32>
    %106 = arith.mulf %99, %73 : vector<2x32xf32>
    %107 = arith.addf %105, %106 : vector<2x32xf32>
    %108 = vector.shape_cast %107 : vector<2x32xf32> to vector<2x1x32xf32>
    %c0_25 = arith.constant 0 : index
    %c2 = arith.constant 2 : index
    %c0_26 = arith.constant 0 : index
    %109 = vector.load %arg4[%c0_25, %c2, %c0_26] : memref<2x8x32xf32, #tpu.memory_space<vmem>>, vector<2x1x32xf32>
    tpu.vector_store %arg4[%c0_25, %c2, %c0_26], %108 {strides = array<i32>} : memref<2x8x32xf32, #tpu.memory_space<vmem>>, vector<2x1x32xf32>,
    %110 = vector.extract_strided_slice %6 {offsets = [0, 3, 0], sizes = [2, 1, 96], strides = [1, 1, 1]} : vector<2x8x96xf32> to vector<2x1x96xf32>
    %111 = vector.shape_cast %110 : vector<2x1x96xf32> to vector<2x96xf32>
    %112 = arith.truncf %107 : vector<2x32xf32> to vector<2x32xbf16>
    %cst_27 = arith.constant dense<0.000000e+00> : vector<2x96xf32>
    %113 = tpu.matmul %112, %4, %cst_27 {dimension_numbers = #tpu.dot_dimension_numbers<[1], [0], [0], [1], [0, 0, 1, 1], [], []>} : vector<2x32xbf16>, vector<32x96xbf16>, vector<2x96xf32> -> vector<2x96xf32>
    %114 = vector.broadcast %5 : vector<1x96xf32> to vector<2x96xf32>
    %115 = arith.addf %113, %114 : vector<2x96xf32>
    %116 = vector.extract_strided_slice %111 {offsets = [0, 0], sizes = [2, 32], strides = [1, 1]} : vector<2x96xf32> to vector<2x32xf32>
    %117 = vector.extract_strided_slice %111 {offsets = [0, 32], sizes = [2, 32], strides = [1, 1]} : vector<2x96xf32> to vector<2x32xf32>
    %118 = vector.extract_strided_slice %111 {offsets = [0, 64], sizes = [2, 32], strides = [1, 1]} : vector<2x96xf32> to vector<2x32xf32>
    %119 = vector.extract_strided_slice %115 {offsets = [0, 0], sizes = [2, 32], strides = [1, 1]} : vector<2x96xf32> to vector<2x32xf32>
    %120 = vector.extract_strided_slice %115 {offsets = [0, 32], sizes = [2, 32], strides = [1, 1]} : vector<2x96xf32> to vector<2x32xf32>
    %121 = vector.extract_strided_slice %115 {offsets = [0, 64], sizes = [2, 32], strides = [1, 1]} : vector<2x96xf32> to vector<2x32xf32>
    %122 = arith.addf %116, %119 : vector<2x32xf32>
    %123 = arith.negf %122 : vector<2x32xf32>
    %124 = math.exp %123 : vector<2x32xf32>
    %cst_28 = arith.constant 1.000000e+00 : f32
    %125 = vector.broadcast %cst_28 : f32 to vector<2x32xf32>
    %126 = arith.addf %125, %124 : vector<2x32xf32>
    %127 = arith.divf %125, %126 : vector<2x32xf32>
    %128 = arith.addf %117, %120 : vector<2x32xf32>
    %129 = arith.negf %128 : vector<2x32xf32>
    %130 = math.exp %129 : vector<2x32xf32>
    %cst_29 = arith.constant 1.000000e+00 : f32
    %131 = vector.broadcast %cst_29 : f32 to vector<2x32xf32>
    %132 = arith.addf %131, %130 : vector<2x32xf32>
    %133 = arith.divf %131, %132 : vector<2x32xf32>
    %134 = arith.mulf %127, %121 : vector<2x32xf32>
    %135 = arith.addf %118, %134 : vector<2x32xf32>
    %136 = math.tanh %135 : vector<2x32xf32>
    %cst_30 = arith.constant 1.000000e+00 : f32
    %137 = vector.broadcast %cst_30 : f32 to vector<2x32xf32>
    %138 = arith.subf %137, %133 : vector<2x32xf32>
    %139 = arith.mulf %138, %136 : vector<2x32xf32>
    %140 = arith.mulf %133, %107 : vector<2x32xf32>
    %141 = arith.addf %139, %140 : vector<2x32xf32>
    %142 = vector.shape_cast %141 : vector<2x32xf32> to vector<2x1x32xf32>
    %c0_31 = arith.constant 0 : index
    %c3 = arith.constant 3 : index
    %c0_32 = arith.constant 0 : index
    %143 = vector.load %arg4[%c0_31, %c3, %c0_32] : memref<2x8x32xf32, #tpu.memory_space<vmem>>, vector<2x1x32xf32>
    tpu.vector_store %arg4[%c0_31, %c3, %c0_32], %142 {strides = array<i32>} : memref<2x8x32xf32, #tpu.memory_space<vmem>>, vector<2x1x32xf32>,
    %144 = vector.extract_strided_slice %6 {offsets = [0, 4, 0], sizes = [2, 1, 96], strides = [1, 1, 1]} : vector<2x8x96xf32> to vector<2x1x96xf32>
    %145 = vector.shape_cast %144 : vector<2x1x96xf32> to vector<2x96xf32>
    %146 = arith.truncf %141 : vector<2x32xf32> to vector<2x32xbf16>
    %cst_33 = arith.constant dense<0.000000e+00> : vector<2x96xf32>
    %147 = tpu.matmul %146, %4, %cst_33 {dimension_numbers = #tpu.dot_dimension_numbers<[1], [0], [0], [1], [0, 0, 1, 1], [], []>} : vector<2x32xbf16>, vector<32x96xbf16>, vector<2x96xf32> -> vector<2x96xf32>
    %148 = vector.broadcast %5 : vector<1x96xf32> to vector<2x96xf32>
    %149 = arith.addf %147, %148 : vector<2x96xf32>
    %150 = vector.extract_strided_slice %145 {offsets = [0, 0], sizes = [2, 32], strides = [1, 1]} : vector<2x96xf32> to vector<2x32xf32>
    %151 = vector.extract_strided_slice %145 {offsets = [0, 32], sizes = [2, 32], strides = [1, 1]} : vector<2x96xf32> to vector<2x32xf32>
    %152 = vector.extract_strided_slice %145 {offsets = [0, 64], sizes = [2, 32], strides = [1, 1]} : vector<2x96xf32> to vector<2x32xf32>
    %153 = vector.extract_strided_slice %149 {offsets = [0, 0], sizes = [2, 32], strides = [1, 1]} : vector<2x96xf32> to vector<2x32xf32>
    %154 = vector.extract_strided_slice %149 {offsets = [0, 32], sizes = [2, 32], strides = [1, 1]} : vector<2x96xf32> to vector<2x32xf32>
    %155 = vector.extract_strided_slice %149 {offsets = [0, 64], sizes = [2, 32], strides = [1, 1]} : vector<2x96xf32> to vector<2x32xf32>
    %156 = arith.addf %150, %153 : vector<2x32xf32>
    %157 = arith.negf %156 : vector<2x32xf32>
    %158 = math.exp %157 : vector<2x32xf32>
    %cst_34 = arith.constant 1.000000e+00 : f32
    %159 = vector.broadcast %cst_34 : f32 to vector<2x32xf32>
    %160 = arith.addf %159, %158 : vector<2x32xf32>
    %161 = arith.divf %159, %160 : vector<2x32xf32>
    %162 = arith.addf %151, %154 : vector<2x32xf32>
    %163 = arith.negf %162 : vector<2x32xf32>
    %164 = math.exp %163 : vector<2x32xf32>
    %cst_35 = arith.constant 1.000000e+00 : f32
    %165 = vector.broadcast %cst_35 : f32 to vector<2x32xf32>
    %166 = arith.addf %165, %164 : vector<2x32xf32>
    %167 = arith.divf %165, %166 : vector<2x32xf32>
    %168 = arith.mulf %161, %155 : vector<2x32xf32>
    %169 = arith.addf %152, %168 : vector<2x32xf32>
    %170 = math.tanh %169 : vector<2x32xf32>
    %cst_36 = arith.constant 1.000000e+00 : f32
    %171 = vector.broadcast %cst_36 : f32 to vector<2x32xf32>
    %172 = arith.subf %171, %167 : vector<2x32xf32>
    %173 = arith.mulf %172, %170 : vector<2x32xf32>
    %174 = arith.mulf %167, %141 : vector<2x32xf32>
    %175 = arith.addf %173, %174 : vector<2x32xf32>
    %176 = vector.shape_cast %175 : vector<2x32xf32> to vector<2x1x32xf32>
    %c0_37 = arith.constant 0 : index
    %c4 = arith.constant 4 : index
    %c0_38 = arith.constant 0 : index
    %177 = vector.load %arg4[%c0_37, %c4, %c0_38] : memref<2x8x32xf32, #tpu.memory_space<vmem>>, vector<2x1x32xf32>
    tpu.vector_store %arg4[%c0_37, %c4, %c0_38], %176 {strides = array<i32>} : memref<2x8x32xf32, #tpu.memory_space<vmem>>, vector<2x1x32xf32>,
    %178 = vector.extract_strided_slice %6 {offsets = [0, 5, 0], sizes = [2, 1, 96], strides = [1, 1, 1]} : vector<2x8x96xf32> to vector<2x1x96xf32>
    %179 = vector.shape_cast %178 : vector<2x1x96xf32> to vector<2x96xf32>
    %180 = arith.truncf %175 : vector<2x32xf32> to vector<2x32xbf16>
    %cst_39 = arith.constant dense<0.000000e+00> : vector<2x96xf32>
    %181 = tpu.matmul %180, %4, %cst_39 {dimension_numbers = #tpu.dot_dimension_numbers<[1], [0], [0], [1], [0, 0, 1, 1], [], []>} : vector<2x32xbf16>, vector<32x96xbf16>, vector<2x96xf32> -> vector<2x96xf32>
    %182 = vector.broadcast %5 : vector<1x96xf32> to vector<2x96xf32>
    %183 = arith.addf %181, %182 : vector<2x96xf32>
    %184 = vector.extract_strided_slice %179 {offsets = [0, 0], sizes = [2, 32], strides = [1, 1]} : vector<2x96xf32> to vector<2x32xf32>
    %185 = vector.extract_strided_slice %179 {offsets = [0, 32], sizes = [2, 32], strides = [1, 1]} : vector<2x96xf32> to vector<2x32xf32>
    %186 = vector.extract_strided_slice %179 {offsets = [0, 64], sizes = [2, 32], strides = [1, 1]} : vector<2x96xf32> to vector<2x32xf32>
    %187 = vector.extract_strided_slice %183 {offsets = [0, 0], sizes = [2, 32], strides = [1, 1]} : vector<2x96xf32> to vector<2x32xf32>
    %188 = vector.extract_strided_slice %183 {offsets = [0, 32], sizes = [2, 32], strides = [1, 1]} : vector<2x96xf32> to vector<2x32xf32>
    %189 = vector.extract_strided_slice %183 {offsets = [0, 64], sizes = [2, 32], strides = [1, 1]} : vector<2x96xf32> to vector<2x32xf32>
    %190 = arith.addf %184, %187 : vector<2x32xf32>
    %191 = arith.negf %190 : vector<2x32xf32>
    %192 = math.exp %191 : vector<2x32xf32>
    %cst_40 = arith.constant 1.000000e+00 : f32
    %193 = vector.broadcast %cst_40 : f32 to vector<2x32xf32>
    %194 = arith.addf %193, %192 : vector<2x32xf32>
    %195 = arith.divf %193, %194 : vector<2x32xf32>
    %196 = arith.addf %185, %188 : vector<2x32xf32>
    %197 = arith.negf %196 : vector<2x32xf32>
    %198 = math.exp %197 : vector<2x32xf32>
    %cst_41 = arith.constant 1.000000e+00 : f32
    %199 = vector.broadcast %cst_41 : f32 to vector<2x32xf32>
    %200 = arith.addf %199, %198 : vector<2x32xf32>
    %201 = arith.divf %199, %200 : vector<2x32xf32>
    %202 = arith.mulf %195, %189 : vector<2x32xf32>
    %203 = arith.addf %186, %202 : vector<2x32xf32>
    %204 = math.tanh %203 : vector<2x32xf32>
    %cst_42 = arith.constant 1.000000e+00 : f32
    %205 = vector.broadcast %cst_42 : f32 to vector<2x32xf32>
    %206 = arith.subf %205, %201 : vector<2x32xf32>
    %207 = arith.mulf %206, %204 : vector<2x32xf32>
    %208 = arith.mulf %201, %175 : vector<2x32xf32>
    %209 = arith.addf %207, %208 : vector<2x32xf32>
    %210 = vector.shape_cast %209 : vector<2x32xf32> to vector<2x1x32xf32>
    %c0_43 = arith.constant 0 : index
    %c5 = arith.constant 5 : index
    %c0_44 = arith.constant 0 : index
    %211 = vector.load %arg4[%c0_43, %c5, %c0_44] : memref<2x8x32xf32, #tpu.memory_space<vmem>>, vector<2x1x32xf32>
    tpu.vector_store %arg4[%c0_43, %c5, %c0_44], %210 {strides = array<i32>} : memref<2x8x32xf32, #tpu.memory_space<vmem>>, vector<2x1x32xf32>,
    %212 = vector.extract_strided_slice %6 {offsets = [0, 6, 0], sizes = [2, 1, 96], strides = [1, 1, 1]} : vector<2x8x96xf32> to vector<2x1x96xf32>
    %213 = vector.shape_cast %212 : vector<2x1x96xf32> to vector<2x96xf32>
    %214 = arith.truncf %209 : vector<2x32xf32> to vector<2x32xbf16>
    %cst_45 = arith.constant dense<0.000000e+00> : vector<2x96xf32>
    %215 = tpu.matmul %214, %4, %cst_45 {dimension_numbers = #tpu.dot_dimension_numbers<[1], [0], [0], [1], [0, 0, 1, 1], [], []>} : vector<2x32xbf16>, vector<32x96xbf16>, vector<2x96xf32> -> vector<2x96xf32>
    %216 = vector.broadcast %5 : vector<1x96xf32> to vector<2x96xf32>
    %217 = arith.addf %215, %216 : vector<2x96xf32>
    %218 = vector.extract_strided_slice %213 {offsets = [0, 0], sizes = [2, 32], strides = [1, 1]} : vector<2x96xf32> to vector<2x32xf32>
    %219 = vector.extract_strided_slice %213 {offsets = [0, 32], sizes = [2, 32], strides = [1, 1]} : vector<2x96xf32> to vector<2x32xf32>
    %220 = vector.extract_strided_slice %213 {offsets = [0, 64], sizes = [2, 32], strides = [1, 1]} : vector<2x96xf32> to vector<2x32xf32>
    %221 = vector.extract_strided_slice %217 {offsets = [0, 0], sizes = [2, 32], strides = [1, 1]} : vector<2x96xf32> to vector<2x32xf32>
    %222 = vector.extract_strided_slice %217 {offsets = [0, 32], sizes = [2, 32], strides = [1, 1]} : vector<2x96xf32> to vector<2x32xf32>
    %223 = vector.extract_strided_slice %217 {offsets = [0, 64], sizes = [2, 32], strides = [1, 1]} : vector<2x96xf32> to vector<2x32xf32>
    %224 = arith.addf %218, %221 : vector<2x32xf32>
    %225 = arith.negf %224 : vector<2x32xf32>
    %226 = math.exp %225 : vector<2x32xf32>
    %cst_46 = arith.constant 1.000000e+00 : f32
    %227 = vector.broadcast %cst_46 : f32 to vector<2x32xf32>
    %228 = arith.addf %227, %226 : vector<2x32xf32>
    %229 = arith.divf %227, %228 : vector<2x32xf32>
    %230 = arith.addf %219, %222 : vector<2x32xf32>
    %231 = arith.negf %230 : vector<2x32xf32>
    %232 = math.exp %231 : vector<2x32xf32>
    %cst_47 = arith.constant 1.000000e+00 : f32
    %233 = vector.broadcast %cst_47 : f32 to vector<2x32xf32>
    %234 = arith.addf %233, %232 : vector<2x32xf32>
    %235 = arith.divf %233, %234 : vector<2x32xf32>
    %236 = arith.mulf %229, %223 : vector<2x32xf32>
    %237 = arith.addf %220, %236 : vector<2x32xf32>
    %238 = math.tanh %237 : vector<2x32xf32>
    %cst_48 = arith.constant 1.000000e+00 : f32
    %239 = vector.broadcast %cst_48 : f32 to vector<2x32xf32>
    %240 = arith.subf %239, %235 : vector<2x32xf32>
    %241 = arith.mulf %240, %238 : vector<2x32xf32>
    %242 = arith.mulf %235, %209 : vector<2x32xf32>
    %243 = arith.addf %241, %242 : vector<2x32xf32>
    %244 = vector.shape_cast %243 : vector<2x32xf32> to vector<2x1x32xf32>
    %c0_49 = arith.constant 0 : index
    %c6 = arith.constant 6 : index
    %c0_50 = arith.constant 0 : index
    %245 = vector.load %arg4[%c0_49, %c6, %c0_50] : memref<2x8x32xf32, #tpu.memory_space<vmem>>, vector<2x1x32xf32>
    tpu.vector_store %arg4[%c0_49, %c6, %c0_50], %244 {strides = array<i32>} : memref<2x8x32xf32, #tpu.memory_space<vmem>>, vector<2x1x32xf32>,
    %246 = vector.extract_strided_slice %6 {offsets = [0, 7, 0], sizes = [2, 1, 96], strides = [1, 1, 1]} : vector<2x8x96xf32> to vector<2x1x96xf32>
    %247 = vector.shape_cast %246 : vector<2x1x96xf32> to vector<2x96xf32>
    %248 = arith.truncf %243 : vector<2x32xf32> to vector<2x32xbf16>
    %cst_51 = arith.constant dense<0.000000e+00> : vector<2x96xf32>
    %249 = tpu.matmul %248, %4, %cst_51 {dimension_numbers = #tpu.dot_dimension_numbers<[1], [0], [0], [1], [0, 0, 1, 1], [], []>} : vector<2x32xbf16>, vector<32x96xbf16>, vector<2x96xf32> -> vector<2x96xf32>
    %250 = vector.broadcast %5 : vector<1x96xf32> to vector<2x96xf32>
    %251 = arith.addf %249, %250 : vector<2x96xf32>
    %252 = vector.extract_strided_slice %247 {offsets = [0, 0], sizes = [2, 32], strides = [1, 1]} : vector<2x96xf32> to vector<2x32xf32>
    %253 = vector.extract_strided_slice %247 {offsets = [0, 32], sizes = [2, 32], strides = [1, 1]} : vector<2x96xf32> to vector<2x32xf32>
    %254 = vector.extract_strided_slice %247 {offsets = [0, 64], sizes = [2, 32], strides = [1, 1]} : vector<2x96xf32> to vector<2x32xf32>
    %255 = vector.extract_strided_slice %251 {offsets = [0, 0], sizes = [2, 32], strides = [1, 1]} : vector<2x96xf32> to vector<2x32xf32>
    %256 = vector.extract_strided_slice %251 {offsets = [0, 32], sizes = [2, 32], strides = [1, 1]} : vector<2x96xf32> to vector<2x32xf32>
    %257 = vector.extract_strided_slice %251 {offsets = [0, 64], sizes = [2, 32], strides = [1, 1]} : vector<2x96xf32> to vector<2x32xf32>
    %258 = arith.addf %252, %255 : vector<2x32xf32>
    %259 = arith.negf %258 : vector<2x32xf32>
    %260 = math.exp %259 : vector<2x32xf32>
    %cst_52 = arith.constant 1.000000e+00 : f32
    %261 = vector.broadcast %cst_52 : f32 to vector<2x32xf32>
    %262 = arith.addf %261, %260 : vector<2x32xf32>
    %263 = arith.divf %261, %262 : vector<2x32xf32>
    %264 = arith.addf %253, %256 : vector<2x32xf32>
    %265 = arith.negf %264 : vector<2x32xf32>
    %266 = math.exp %265 : vector<2x32xf32>
    %cst_53 = arith.constant 1.000000e+00 : f32
    %267 = vector.broadcast %cst_53 : f32 to vector<2x32xf32>
    %268 = arith.addf %267, %266 : vector<2x32xf32>
    %269 = arith.divf %267, %268 : vector<2x32xf32>
    %270 = arith.mulf %263, %257 : vector<2x32xf32>
    %271 = arith.addf %254, %270 : vector<2x32xf32>
    %272 = math.tanh %271 : vector<2x32xf32>
    %cst_54 = arith.constant 1.000000e+00 : f32
    %273 = vector.broadcast %cst_54 : f32 to vector<2x32xf32>
    %274 = arith.subf %273, %269 : vector<2x32xf32>
    %275 = arith.mulf %274, %272 : vector<2x32xf32>
    %276 = arith.mulf %269, %243 : vector<2x32xf32>
    %277 = arith.addf %275, %276 : vector<2x32xf32>
    %278 = vector.shape_cast %277 : vector<2x32xf32> to vector<2x1x32xf32>
    %c0_55 = arith.constant 0 : index
    %c7 = arith.constant 7 : index
    %c0_56 = arith.constant 0 : index
    %279 = vector.load %arg4[%c0_55, %c7, %c0_56] : memref<2x8x32xf32, #tpu.memory_space<vmem>>, vector<2x1x32xf32>
    tpu.vector_store %arg4[%c0_55, %c7, %c0_56], %278 {strides = array<i32>} : memref<2x8x32xf32, #tpu.memory_space<vmem>>, vector<2x1x32xf32>,
    %c0_57 = arith.constant 0 : index
    %c0_58 = arith.constant 0 : index
    %280 = vector.load %arg5[%c0_57, %c0_58] : memref<2x32xf32, #tpu.memory_space<vmem>>, vector<2x32xf32>
    tpu.vector_store %arg5[%c0_57, %c0_58], %277 {strides = array<i32>} : memref<2x32xf32, #tpu.memory_space<vmem>>, vector<2x32xf32>,
    return
  }
  func.func @transform_0(%arg0: i32) -> (i32, i32, i32) {
    %c0_i32 = arith.constant 0 : i32
    %c0_i32_0 = arith.constant 0 : i32
    %c0_i32_1 = arith.constant 0 : i32
    return %c0_i32, %arg0, %c0_i32_0 : i32, i32, i32
  }
  func.func @transform_1(%arg0: i32) -> (i32, i32) {
    %c0_i32 = arith.constant 0 : i32
    %c0_i32_0 = arith.constant 0 : i32
    %c0_i32_1 = arith.constant 0 : i32
    return %c0_i32, %c0_i32_0 : i32, i32
  }
  func.func @transform_2(%arg0: i32) -> (i32, i32) {
    %c0_i32 = arith.constant 0 : i32
    %c0_i32_0 = arith.constant 0 : i32
    %c0_i32_1 = arith.constant 0 : i32
    return %c0_i32, %c0_i32_0 : i32, i32
  }
  func.func @transform_3(%arg0: i32) -> (i32, i32, i32) {
    %c0_i32 = arith.constant 0 : i32
    %c0_i32_0 = arith.constant 0 : i32
    %c0_i32_1 = arith.constant 0 : i32
    return %c0_i32, %arg0, %c0_i32_0 : i32, i32, i32
  }
}

module attributes {stable_mosaic.version = 11 : i64} {
  func.func @_attn_cls_kernel(%arg0: memref<2x8x32xf32, #tpu.memory_space<vmem>>, %arg1: memref<2x8xf32, #tpu.memory_space<vmem>>, %arg2: memref<1x32xf32, #tpu.memory_space<vmem>>, %arg3: memref<1x1xf32, #tpu.memory_space<vmem>>, %arg4: memref<32x2xf32, #tpu.memory_space<vmem>>, %arg5: memref<1x2xf32, #tpu.memory_space<vmem>>, %arg6: memref<2x2xf32, #tpu.memory_space<vmem>>) attributes {dimension_semantics = [], scalar_prefetch = 0 : i64, scratch_operands = 0 : i64, tpu.core_type = #tpu.core_type<tc>} {
    %c0 = arith.constant 0 : index
    %c0_0 = arith.constant 0 : index
    %c0_1 = arith.constant 0 : index
    %0 = vector.load %arg0[%c0, %c0_0, %c0_1] : memref<2x8x32xf32, #tpu.memory_space<vmem>>, vector<2x8x32xf32>
    %c0_2 = arith.constant 0 : index
    %c0_3 = arith.constant 0 : index
    %1 = vector.load %arg2[%c0_2, %c0_3] : memref<1x32xf32, #tpu.memory_space<vmem>>, vector<1x32xf32>
    %2 = vector.shape_cast %1 : vector<1x32xf32> to vector<1x1x32xf32>
    %3 = vector.broadcast %2 : vector<1x1x32xf32> to vector<2x8x32xf32>
    %4 = arith.mulf %0, %3 : vector<2x8x32xf32>
    %cst = arith.constant dense<0.000000e+00> : vector<2x8xf32>
    %5 = vector.multi_reduction <add>, %4, %cst [2] : vector<2x8x32xf32> to vector<2x8xf32>
    %c0_4 = arith.constant 0 : index
    %c0_5 = arith.constant 0 : index
    %6 = vector.load %arg3[%c0_4, %c0_5] : memref<1x1xf32, #tpu.memory_space<vmem>>, vector<1x1xf32>
    %7 = vector.broadcast %6 : vector<1x1xf32> to vector<2x8xf32>
    %8 = arith.addf %5, %7 : vector<2x8xf32>
    %c0_6 = arith.constant 0 : index
    %c0_7 = arith.constant 0 : index
    %9 = vector.load %arg1[%c0_6, %c0_7] : memref<2x8xf32, #tpu.memory_space<vmem>>, vector<2x8xf32>
    %cst_8 = arith.constant 5.000000e-01 : f32
    %10 = vector.broadcast %cst_8 : f32 to vector<2x8xf32>
    %11 = arith.cmpf ogt, %9, %10 : vector<2x8xf32>
    %cst_9 = arith.constant 0xFF800000 : f32
    %12 = vector.broadcast %cst_9 : f32 to vector<2x8xf32>
    %13 = arith.select %11, %8, %12 : vector<2x8xi1>, vector<2x8xf32>
    %cst_10 = arith.constant dense<0xFF800000> : vector<2xf32>
    %14 = vector.multi_reduction <maximumf>, %13, %cst_10 [1] : vector<2x8xf32> to vector<2xf32>
    %15 = vector.shape_cast %14 : vector<2xf32> to vector<2x1xf32>
    %cst_11 = arith.constant 0xFF800000 : f32
    %16 = vector.broadcast %cst_11 : f32 to vector<2x1xf32>
    %17 = arith.cmpf ogt, %15, %16 : vector<2x1xf32>
    %cst_12 = arith.constant 0.000000e+00 : f32
    %18 = vector.broadcast %cst_12 : f32 to vector<2x1xf32>
    %19 = arith.select %17, %15, %18 : vector<2x1xi1>, vector<2x1xf32>
    %20 = vector.broadcast %19 : vector<2x1xf32> to vector<2x8xf32>
    %21 = arith.subf %13, %20 : vector<2x8xf32>
    %22 = math.exp %21 : vector<2x8xf32>
    %cst_13 = arith.constant dense<0.000000e+00> : vector<2xf32>
    %23 = vector.multi_reduction <add>, %22, %cst_13 [1] : vector<2x8xf32> to vector<2xf32>
    %24 = vector.shape_cast %23 : vector<2xf32> to vector<2x1xf32>
    %cst_14 = arith.constant 0.000000e+00 : f32
    %25 = vector.broadcast %cst_14 : f32 to vector<2x1xf32>
    %26 = arith.cmpf ogt, %24, %25 : vector<2x1xf32>
    %cst_15 = arith.constant 1.000000e+00 : f32
    %27 = vector.broadcast %cst_15 : f32 to vector<2x1xf32>
    %28 = arith.select %26, %24, %27 : vector<2x1xi1>, vector<2x1xf32>
    %29 = tpu.reciprocal %28 {approx = true} : vector<2x1xf32> -> vector<2x1xf32>
    %30 = vector.broadcast %29 : vector<2x1xf32> to vector<2x8xf32>
    %31 = arith.mulf %22, %30 : vector<2x8xf32>
    %32 = vector.shape_cast %31 : vector<2x8xf32> to vector<2x8x1xf32>
    %33 = vector.broadcast %32 : vector<2x8x1xf32> to vector<2x8x32xf32>
    %34 = arith.mulf %0, %33 : vector<2x8x32xf32>
    %cst_16 = arith.constant dense<0.000000e+00> : vector<2x32xf32>
    %35 = vector.multi_reduction <add>, %34, %cst_16 [1] : vector<2x8x32xf32> to vector<2x32xf32>
    %c0_17 = arith.constant 0 : index
    %c0_18 = arith.constant 0 : index
    %36 = vector.load %arg4[%c0_17, %c0_18] : memref<32x2xf32, #tpu.memory_space<vmem>>, vector<32x2xf32>
    %cst_19 = arith.constant dense<0.000000e+00> : vector<2x2xf32>
    %37 = tpu.matmul %35, %36, %cst_19 {dimension_numbers = #tpu.dot_dimension_numbers<[1], [0], [0], [1], [0, 0, 1, 1], [], []>} : vector<2x32xf32>, vector<32x2xf32>, vector<2x2xf32> -> vector<2x2xf32>
    %c0_20 = arith.constant 0 : index
    %c0_21 = arith.constant 0 : index
    %38 = vector.load %arg5[%c0_20, %c0_21] : memref<1x2xf32, #tpu.memory_space<vmem>>, vector<1x2xf32>
    %39 = vector.broadcast %38 : vector<1x2xf32> to vector<2x2xf32>
    %40 = arith.addf %37, %39 : vector<2x2xf32>
    %c0_22 = arith.constant 0 : index
    %c0_23 = arith.constant 0 : index
    %41 = vector.load %arg6[%c0_22, %c0_23] : memref<2x2xf32, #tpu.memory_space<vmem>>, vector<2x2xf32>
    tpu.vector_store %arg6[%c0_22, %c0_23], %40 {strides = array<i32>} : memref<2x2xf32, #tpu.memory_space<vmem>>, vector<2x2xf32>,
    return
  }
}

</mosaic_0001>

<bundles_post_ra>
// kernel: network_forward.5
= control target key start
LH: loop header
LB: loop body
LE: loop exit
PB: predicated region body
PF: predicated region fallthrough
CT: control target
= control target key end

     0   :  { %10 = vsyncpa [#allocation3], 0  ;;  %s382_s0 = inlined_call_operand.vmem [shape: f32[3,3], index: 0, kind: input, shape index: {}]   ;;  %s383_s1 = inlined_call_operand.vmem [shape: f32[3], index: 1, kind: input, shape index: {}]   ;;  %s384_s2 = inlined_call_operand.vmem [shape: f32[16,32], index: 2, kind: input, shape index: {}]   ;;  %s385_s3 = inlined_call_operand.vmem [shape: f32[3,32,32], index: 3, kind: input, shape index: {}]   ;;  %s386_s4 = inlined_call_operand.vmem [shape: f32[3,1,32], index: 4, kind: input, shape index: {}]   ;;  %s387_s5 = inlined_call_operand.vmem [shape: f32[16,32], index: 5, kind: output, shape index: {}]  }
   0x1   :  { %s17_s20 = sshll.u32 %s382_s0, 4  ;;  %s18_s20 = int_to_ptr.vmem [resolvable:$true] %s17_s20 }
   0x2   :  { %11 = vsyncpa [#allocation5], 0  ;;  %s26_s23 = sshll.u32 %s383_s1, 4  ;;  %s249_s24 = smov [#allocation2]   ;;  %s27_s23 = int_to_ptr.vmem [resolvable:$true] %s26_s23 }
   0x3   :  { %20 = dma.vmem_to_smem %s18_s20, 64, %s249_s24, [#allocation3]  }
   0x4   :  { %s250_s25 = smov [#allocation4]  }
   0x5   :  { %29 = dma.vmem_to_smem %s27_s23, 16, %s250_s25, [#allocation5]  }
   0x6   :  { %245 = dma.done.wait [#allocation3], 64  }
   0x7   :  { %246 = vsyncadd [#allocation3], 4294967232 }
   0x8   :  { %247 = dma.done.wait [#allocation5], 16  }
   0x9   :  { %248 = vsyncadd [#allocation5], 4294967280 }
   0xa   :  { %44 = sfence }
   0xb   :  { %v50_v0 = vld [vmem:[%s385_s3 + $0x10] sm:$0xff]  ;;  %v51_v1 = vld [vmem:[%s385_s3 + $0x18] sm:$0xff]  ;;  %v48_v2 = vld [vmem:[%s385_s3] sm:$0xff]  ;;  %vm59_vm0 = vcmask 261120   ;;  %s196_s0 = sld [smem:[#allocation2 + $0x1]] }
   0xc   :  { %v54_v3 = vpack.c.bf16 %v51_v1, %v50_v0  ;;  %v49_v4 = vld [vmem:[%s385_s3 + $0x8] sm:$0xff]  ;;  %v302_v6 = vld [vmem:[%s384_s2] sm:$0xff]  ;;  %v200_v9 = vld [vmem:[%s385_s3 + $0x30] sm:$0xff]  ;;  %s197_s28 = sld [smem:[#allocation2 + $0x2]] }
   0xd   :  { %v53_v5 = vpack.c.bf16 %v49_v4, %v48_v2  ;;  %v307_v7 = vld [vmem:[%s384_s2 + $0x8] sm:$0xff]  ;;  %v201_v10 = vld [vmem:[%s385_s3 + $0x38] sm:$0xff]  ;;  %v208_v12 = vld [vmem:[%s385_s3 + $0x50] sm:$0xff]  ;;  %s346_s1 = sld [smem:[#allocation2 + $0x81]] }
   0xe   :  { %69 = vmatpush.bf16.msra.mxu0 %v54_v3  ;;  %v52_v8 = vpack.c.bf16 %v307_v7, %v302_v6  ;;  %v95_v11 = vpack.c.bf16 %v201_v10, %v200_v9  ;;  %v209_v13 = vld [vmem:[%s385_s3 + $0x58] sm:$0xff]  ;;  %v198_v15 = vld [vmem:[%s385_s3 + $0x20] sm:$0xff]  ;;  %v199_v16 = vld [vmem:[%s385_s3 + $0x28] sm:$0xff]  ;;  %s348_s30 = sld [smem:[#allocation2 + $0x82]] }
   0xf   :  { %v134_v14 = vpack.c.bf16 %v209_v13, %v208_v12  ;;  %v94_v17 = vpack.c.bf16 %v199_v16, %v198_v15  ;;  %v206_v18 = vld [vmem:[%s385_s3 + $0x40] sm:$0xff]  ;;  %v207_v19 = vld [vmem:[%s385_s3 + $0x48] sm:$0xff]  ;;  %s350_s6 = sld [smem:[#allocation4]] }
  0x10   :  { %107 = vmatpush.bf16.msra.mxu1 %v95_v11  ;;  %v133_v20 = vpack.c.bf16 %v207_v19, %v206_v18  ;;  %v218_v21 = vld [vmem:[%s386_s4] ss:$0 sm:$0xff]  ;;  %v219_v37 = vld [vmem:[%s386_s4 + $0x1] ss:$0 sm:$0xff]  ;;  %s352_s7 = sld [smem:[#allocation2 + $0x101]] }
  0x11   :  { %149 = vmatpush.bf16.msra.mxu2 %v134_v14  ;;  %v80_v25 = vstv %s196_s0  ;;  %s354_s8 = sld [smem:[#allocation2 + $0x102]]  ;;  %v220_v41 = vld [vmem:[%s386_s4 + $0x2] ss:$0 sm:$0xff] }
  0x12   :  { %70 = vmatpush.bf16.msra.mxu0 %v53_v5  ;;  %v84_v26 = vstv %s197_s28  ;;  %v81_v29 = vmul.f32 %v80_v25, %v302_v6  ;;  %v82_v32 = vmul.f32 %v80_v25, %v307_v7  ;;  %s356_s9 = sld [smem:[#allocation4 + $0x1]] }
  0x13   :  { %v118_v42 = vstv %s346_s1  ;;  %s363_s12 = sld [smem:[#allocation4 + $0x2]] }
  0x14   :  { %108 = vmatpush.bf16.msra.mxu1 %v94_v17  ;;  %v122_v43 = vstv %s348_s30  ;;  %v119_v46 = vmul.f32 %v118_v42, %v302_v6  ;;  %v120_v3 = vmul.f32 %v118_v42, %v307_v7 }
  0x15   :  { %195 = vmatmul.msk.bf16.vlgmr.msra.gmra.mxu0 %vm59_vm0, %v52_v8  ;;  %150 = vmatpush.bf16.msra.mxu2 %v133_v20  ;;  %v172_v51 = vstv %s350_s6 }
  0x16   :  { %v160_v49 = vstv %s352_s7  ;;  %v173_v58 = vmul.f32 %v172_v51, %v302_v6  ;;  %v174_v12 = vmul.f32 %v172_v51, %v307_v7 }
  0x17   :  { %203 = vmatmul.msk.bf16.vlgmr.msra.gmra.mxu1 %vm59_vm0, %v52_v8  ;;  %v164_v50 = vstv %s354_s8 }
  0x18   :  { %v176_v52 = vstv %s356_s9 }
  0x19   :  { %v182_v62 = vstv %s363_s12 }
  0x92   :  { %v72_v22 = vpop.f32.mrf.mxu0 }
  0x93   :  { %v73_v23 = vadd.f32 %v218_v21, %v72_v22 }
  0x94   :  { %v110_v38 = vpop.f32.mrf.mxu1 }
  0x95   :  { %v77_v24 = vmax.f32 %v73_v23, 0.0  ;;  %v111_v39 = vadd.f32 %v219_v37, %v110_v38 }
  0x97   :  { %v85_v30 = vmul.f32 %v84_v26, %v77_v24  ;;  %v115_v40 = vmax.f32 %v111_v39, 0.0 }
  0x99   :  { %v87_v34 = vadd.f32 %v85_v30, %v81_v29  ;;  %v123_v47 = vmul.f32 %v122_v43, %v115_v40 }
  0x9a   :  { %v74_v27 = vpop.f32.mrf.mxu0 }
  0x9b   :  { %v75_v28 = vadd.f32 %v218_v21, %v74_v27  ;;  %v125_v55 = vadd.f32 %v123_v47, %v119_v46  ;;  %v161_v56 = vmul.f32 %v160_v49, %v87_v34  ;;  %v177_v59 = vmul.f32 %v176_v52, %v87_v34 }
  0x9c   :  { %v112_v44 = vpop.f32.mrf.mxu1 }
  0x9d   :  { %v78_v31 = vmax.f32 %v75_v28, 0.0  ;;  %v113_v53 = vadd.f32 %v219_v37, %v112_v44  ;;  %v179_v2 = vadd.f32 %v177_v59, %v173_v58 }
  0x9f   :  { %v86_v33 = vmul.f32 %v84_v26, %v78_v31  ;;  %v116_v60 = vmax.f32 %v113_v53, 0.0 }
  0xa1   :  { %v88_v35 = vadd.f32 %v86_v33, %v82_v32  ;;  %v124_v4 = vmul.f32 %v122_v43, %v116_v60 }
  0xa3   :  { %v132_v36 = vpack.c.bf16 %v88_v35, %v87_v34  ;;  %v162_v10 = vmul.f32 %v160_v49, %v88_v35  ;;  %v178_v13 = vmul.f32 %v176_v52, %v88_v35  ;;  %v126_v6 = vadd.f32 %v124_v4, %v120_v3 }
  0xa5   :  { %211 = vmatmul.msk.bf16.vlgmr.msra.gmra.mxu2 %vm59_vm0, %v132_v36  ;;  %v180_v16 = vadd.f32 %v178_v13, %v174_v12 }
 0x128   :  { %v152_v45 = vpop.f32.mrf.mxu2 }
 0x129   :  { %v153_v48 = vadd.f32 %v220_v41, %v152_v45 }
 0x12b   :  { %v157_v54 = vmax.f32 %v153_v48, 0.0 }
 0x12d   :  { %v165_v57 = vmul.f32 %v164_v50, %v157_v54 }
 0x12f   :  { %v167_v61 = vadd.f32 %v165_v57, %v161_v56 }
 0x130   :  { %v154_v63 = vpop.f32.mrf.mxu2 }
 0x131   :  { %v169_v0 = vadd.f32 %v167_v61, %v125_v55  ;;  %v155_v1 = vadd.f32 %v220_v41, %v154_v63 }
 0x133   :  { %v183_v5 = vmul.f32 %v182_v62, %v169_v0  ;;  %v158_v8 = vmax.f32 %v155_v1, 0.0 }
 0x135   :  { %v185_v9 = vadd.f32 %v183_v5, %v179_v2  ;;  %v166_v11 = vmul.f32 %v164_v50, %v158_v8 }
 0x137   :  { %187 = vst.msk [vmem:[%s387_s5] sm:$0xff] %vm59_vm0, %v185_v9  ;;  %v168_v14 = vadd.f32 %v166_v11, %v162_v10 }
 0x139   :  { %v170_v15 = vadd.f32 %v168_v14, %v126_v6 }
 0x13b   :  { %v184_v17 = vmul.f32 %v182_v62, %v170_v15 }
 0x13d   :  { %v186_v18 = vadd.f32 %v184_v17, %v180_v16 }
 0x13f   :  { %188 = vst.msk [vmem:[%s387_s5 + $0x8] sm:$0xff] %vm59_vm0, %v186_v18 }
 0x140   :  { %193 = vsyncpa [#allocation3], 1 }
 0x141   :  { %194 = vsyncpa [#allocation5], 1 }

// kernel: network_forward.7
= control target key start
LH: loop header
LB: loop body
LE: loop exit
PB: predicated region body
PF: predicated region fallthrough
CT: control target
= control target key end

     0   :  { %16 = vsyncpa [#allocation3], 0  ;;  %s551_s0 = inlined_call_operand.vmem [shape: f32[3,3], index: 0, kind: input, shape index: {}]   ;;  %s552_s1 = inlined_call_operand.vmem [shape: f32[3], index: 1, kind: input, shape index: {}]   ;;  %s553_s2 = inlined_call_operand.vmem [shape: f32[16,32], index: 2, kind: input, shape index: {}]   ;;  %s554_s3 = inlined_call_operand.vmem [shape: f32[16,32], index: 3, kind: input, shape index: {}]   ;;  %s555_s4 = inlined_call_operand.vmem [shape: f32[32,32], index: 4, kind: input, shape index: {}]   ;;  %s556_s5 = inlined_call_operand.vmem [shape: f32[32,32], index: 5, kind: input, shape index: {}]   ;;  %s557_s6 = inlined_call_operand.vmem [shape: f32[1,32], index: 6, kind: input, shape index: {}]   ;;  %s558_s7 = inlined_call_operand.vmem [shape: f32[3,32,32], index: 7, kind: input, shape index: {}]   ;;  %s559_s8 = inlined_call_operand.vmem [shape: f32[3,1,32], index: 8, kind: input, shape index: {}]   ;;  %s560_s9 = inlined_call_operand.vmem [shape: f32[32,96], index: 9, kind: input, shape index: {}]   ;;  %s561_s10 = inlined_call_operand.vmem [shape: f32[1,96], index: 10, kind: input, shape index: {}]   ;;  %s562_s11 = inlined_call_operand.vmem [shape: f32[16,96], index: 11, kind: output, shape index: {}]  }
   0x1   :  { %s23_s19 = sshll.u32 %s551_s0, 4  ;;  %s24_s19 = int_to_ptr.vmem [resolvable:$true] %s23_s19 }
   0x2   :  { %17 = vsyncpa [#allocation5], 0  ;;  %s32_s22 = sshll.u32 %s552_s1, 4  ;;  %s357_s23 = smov [#allocation2]   ;;  %s33_s22 = int_to_ptr.vmem [resolvable:$true] %s32_s22 }
   0x3   :  { %26 = dma.vmem_to_smem %s24_s19, 64, %s357_s23, [#allocation3]  }
   0x4   :  { %s358_s24 = smov [#allocation4]  }
   0x5   :  { %35 = dma.vmem_to_smem %s33_s22, 16, %s358_s24, [#allocation5]  }
   0x6   :  { %353 = dma.done.wait [#allocation3], 64  }
   0x7   :  { %354 = vsyncadd [#allocation3], 4294967232 }
   0x8   :  { %355 = dma.done.wait [#allocation5], 16  }
   0x9   :  { %356 = vsyncadd [#allocation5], 4294967280 }
   0xa   :  { %62 = sfence }
   0xb   :  { %v77_v0 = vld [vmem:[%s556_s5 + $0x10] sm:$0xff]  ;;  %v78_v1 = vld [vmem:[%s556_s5 + $0x18] sm:$0xff]  ;;  %v75_v5 = vld [vmem:[%s556_s5] sm:$0xff]  ;;  %vm82_vm0 = vcmask 261120   ;;  %s245_s0 = sld [smem:[#allocation4]]  ;;  %vm289_vm1 = vcmask 785408  }
   0xc   :  { %v68_v2 = vld [vmem:[%s555_s4 + $0x10] sm:$0xff]  ;;  %v81_v3 = vpack.c.bf16 %v78_v1, %v77_v0  ;;  %v69_v4 = vld [vmem:[%s555_s4 + $0x18] sm:$0xff]  ;;  %v76_v6 = vld [vmem:[%s556_s5 + $0x8] sm:$0xff]  ;;  %s319_s28 = sld [smem:[#allocation4 + $0x1]] }
   0xd   :  { %v72_v7 = vpack.c.bf16 %v69_v4, %v68_v2  ;;  %v66_v8 = vld [vmem:[%s555_s4] sm:$0xff]  ;;  %v67_v9 = vld [vmem:[%s555_s4 + $0x8] sm:$0xff]  ;;  %v80_v11 = vpack.c.bf16 %v76_v6, %v75_v5  ;;  %v125_v18 = vld [vmem:[%s558_s7 + $0x10] sm:$0xff]  ;;  %s302_s4 = sld [smem:[#allocation2 + $0x2]] }
   0xe   :  { %v73_v10 = vld [vmem:[%s554_s3] sm:$0xff]  ;;  %92 = vmatpush.bf16.msra.mxu0 %v81_v3  ;;  %v74_v12 = vld [vmem:[%s554_s3 + $0x8] sm:$0xff]  ;;  %v71_v15 = vpack.c.bf16 %v67_v9, %v66_v8  ;;  %v126_v19 = vld [vmem:[%s558_s7 + $0x18] sm:$0xff]  ;;  %s301_s3 = sld [smem:[#allocation2 + $0x1]] }
   0xf   :  { %v64_v13 = vld [vmem:[%s553_s2] sm:$0xff]  ;;  %v65_v14 = vld [vmem:[%s553_s2 + $0x8] sm:$0xff]  ;;  %109 = vmatpush.bf16.msra.mxu1 %v72_v7  ;;  %v79_v16 = vpack.c.bf16 %v74_v12, %v73_v10  ;;  %v305_v20 = vld [vmem:[%s558_s7 + $0x30] sm:$0xff]  ;;  %v129_v21 = vpack.c.bf16 %v126_v19, %v125_v18  ;;  %s533_s18 = sld [smem:[#allocation2 + $0x81]] }
  0x10   :  { %v70_v17 = vpack.c.bf16 %v65_v14, %v64_v13  ;;  %v306_v22 = vld [vmem:[%s558_s7 + $0x38] sm:$0xff]  ;;  %v123_v24 = vld [vmem:[%s558_s7] sm:$0xff]  ;;  %v124_v25 = vld [vmem:[%s558_s7 + $0x8] sm:$0xff]  ;;  %s310_s19 = sld [smem:[#allocation2 + $0x82]] }
  0x11   :  { %v169_v23 = vpack.c.bf16 %v306_v22, %v305_v20  ;;  %143 = vmatpush.bf16.msra.mxu2 %v129_v21  ;;  %v303_v26 = vld [vmem:[%s558_s7 + $0x20] sm:$0xff]  ;;  %v128_v27 = vpack.c.bf16 %v124_v25, %v123_v24  ;;  %v304_v28 = vld [vmem:[%s558_s7 + $0x28] sm:$0xff]  ;;  %v313_v40 = vld [vmem:[%s558_s7 + $0x50] sm:$0xff]  ;;  %v246_v54 = vstv %s245_s0  ;;  %s317_s20 = sld [smem:[#allocation2 + $0x101]] }
  0x12   :  { %93 = vmatpush.bf16.msra.mxu0 %v80_v11  ;;  %v168_v29 = vpack.c.bf16 %v304_v28, %v303_v26  ;;  %v324_v33 = vld [vmem:[%s557_s6] ss:$0 sm:$0xff]  ;;  %v314_v41 = vld [vmem:[%s558_s7 + $0x58] sm:$0xff]  ;;  %v312_v44 = vld [vmem:[%s558_s7 + $0x48] sm:$0xff]  ;;  %v250_v55 = vstv %s319_s28  ;;  %s318_s21 = sld [smem:[#allocation2 + $0x102]] }
  0x13   :  { %110 = vmatpush.bf16.msra.mxu1 %v71_v15  ;;  %181 = vmatpush.bf16.msra.mxu3 %v169_v23  ;;  %v208_v42 = vpack.c.bf16 %v314_v41, %v313_v40  ;;  %v311_v43 = vld [vmem:[%s558_s7 + $0x40] sm:$0xff]  ;;  %v158_v50 = vstv %s302_s4  ;;  %v263_v6 = vld [vmem:[%s560_s9 + $0x10] sm:$0xff]  ;;  %v264_v7 = vld [vmem:[%s560_s9 + $0x18] sm:$0xff] }
  0x14   :  { %v207_v45 = vpack.c.bf16 %v312_v44, %v311_v43  ;;  %v325_v46 = vld [vmem:[%s559_s8] ss:$0 sm:$0xff]  ;;  %v154_v49 = vstv %s301_s3  ;;  %v267_v8 = vpack.c.bf16 %v264_v7, %v263_v6  ;;  %v262_v10 = vld [vmem:[%s560_s9 + $0x8] sm:$0xff]  ;;  %v326_v13 = vld [vmem:[%s559_s8 + $0x1] ss:$0 sm:$0xff] }
  0x15   :  { %298 = vmatmul.msk.bf16.vlgmr.msra.gmra.mxu0 %vm82_vm0, %v79_v16  ;;  %144 = vmatpush.bf16.msra.mxu2 %v128_v27  ;;  %v261_v9 = vld [vmem:[%s560_s9] sm:$0xff]  ;;  %s320_s9 = sld [smem:[#allocation4 + $0x2]]  ;;  %v192_v21 = vstv %s533_s18 }
  0x16   :  { %299 = vmatmul.msk.bf16.vlgmr.msra.gmra.mxu1 %vm82_vm0, %v70_v17  ;;  %223 = vmatpush.bf16.msrb.mxu0 %v208_v42  ;;  %v266_v11 = vpack.c.bf16 %v262_v10, %v261_v9  ;;  %v327_v15 = vld [vmem:[%s559_s8 + $0x2] ss:$0 sm:$0xff]  ;;  %v196_v17 = vstv %s310_s19 }
  0x17   :  { %182 = vmatpush.bf16.msra.mxu3 %v168_v29  ;;  %281 = vmatpush.bf16.msrb.mxu1 %v267_v8  ;;  %v234_v22 = vstv %s317_s20 }
  0x18   :  { %v238_v23 = vstv %s318_s21 }
  0x1a   :  { %224 = vmatpush.bf16.msrb.mxu0 %v207_v45 }
  0x1b   :  { %282 = vmatpush.bf16.msrb.mxu1 %v266_v11 }
  0x92   :  { %v95_v30 = vpop.f32.mrf.mxu0 }
  0x93   :  { %v112_v31 = vpop.f32.mrf.mxu1 }
  0x94   :  { %v113_v32 = vadd.f32 %v112_v31, %v95_v30 }
  0x96   :  { %v490_v37 = vadd.f32 %v324_v33, %v113_v32 }
  0x98   :  { %v155_v52 = vmul.f32 %v154_v49, %v490_v37  ;;  %v247_v58 = vmul.f32 %v246_v54, %v490_v37  ;;  %v193_v27 = vmul.f32 %v192_v21, %v490_v37 }
  0x9a   :  { %v97_v34 = vpop.f32.mrf.mxu0 }
  0x9b   :  { %v114_v35 = vpop.f32.mrf.mxu1 }
  0x9c   :  { %v115_v36 = vadd.f32 %v114_v35, %v97_v34 }
  0x9e   :  { %v492_v38 = vadd.f32 %v324_v33, %v115_v36  ;;  %v256_v33 = vstv %s320_s9 }
  0xa0   :  { %v127_v39 = vpack.c.bf16 %v492_v38, %v490_v37  ;;  %v156_v63 = vmul.f32 %v154_v49, %v492_v38  ;;  %v248_v2 = vmul.f32 %v246_v54, %v492_v38  ;;  %v194_v42 = vmul.f32 %v192_v21, %v492_v38 }
  0xa2   :  { %300 = vmatmul.msk.bf16.vlgmr.msra.gmra.mxu2 %vm82_vm0, %v127_v39  ;;  %308 = vmatmul.msk.bf16.vlgmr.msra.gmra.mxu3 %vm82_vm0, %v127_v39 }
 0x125   :  { %v146_v47 = vpop.f32.mrf.mxu2  ;;  %v184_v12 = vpop.f32.mrf.mxu3 }
 0x126   :  { %v147_v48 = vadd.f32 %v325_v46, %v146_v47  ;;  %v185_v14 = vadd.f32 %v326_v13, %v184_v12 }
 0x128   :  { %v151_v51 = vmax.f32 %v147_v48, 0.0  ;;  %v189_v16 = vmax.f32 %v185_v14, 0.0 }
 0x12a   :  { %v159_v53 = vmul.f32 %v158_v50, %v151_v51  ;;  %v197_v24 = vmul.f32 %v196_v17, %v189_v16  ;;  %v328_v51 = vld [vmem:[%s561_s10] ss:$0 sm:$0xff] }
 0x12c   :  { %v161_v56 = vadd.f32 %v159_v53, %v155_v52  ;;  %v199_v30 = vadd.f32 %v197_v24, %v193_v27 }
 0x12d   :  { %v148_v57 = vpop.f32.mrf.mxu2  ;;  %v186_v18 = vpop.f32.mrf.mxu3 }
 0x12e   :  { %v251_v59 = vmul.f32 %v250_v55, %v161_v56  ;;  %v149_v60 = vadd.f32 %v325_v46, %v148_v57  ;;  %v187_v25 = vadd.f32 %v326_v13, %v186_v18  ;;  %v235_v28 = vmul.f32 %v234_v22, %v161_v56 }
 0x130   :  { %v152_v61 = vmax.f32 %v149_v60, 0.0  ;;  %v253_v62 = vadd.f32 %v251_v59, %v247_v58  ;;  %v190_v31 = vmax.f32 %v187_v25, 0.0 }
 0x132   :  { %v160_v0 = vmul.f32 %v158_v50, %v152_v61  ;;  %v198_v39 = vmul.f32 %v196_v17, %v190_v31 }
 0x134   :  { %v162_v1 = vadd.f32 %v160_v0, %v156_v63  ;;  %v200_v46 = vadd.f32 %v198_v39, %v194_v42 }
 0x136   :  { %v252_v3 = vmul.f32 %v250_v55, %v162_v1  ;;  %v206_v4 = vpack.c.bf16 %v162_v1, %v161_v56  ;;  %v236_v43 = vmul.f32 %v234_v22, %v162_v1 }
 0x138   :  { %316 = vmatmul.msk.bf16.vlgmr.msrb.gmra.mxu0 %vm82_vm0, %v206_v4  ;;  %v254_v5 = vadd.f32 %v252_v3, %v248_v2 }
 0x1b5   :  { %v226_v19 = vpop.f32.mrf.mxu0 }
 0x1b6   :  { %v227_v20 = vadd.f32 %v327_v15, %v226_v19 }
 0x1b8   :  { %v231_v26 = vmax.f32 %v227_v20, 0.0 }
 0x1ba   :  { %v239_v29 = vmul.f32 %v238_v23, %v231_v26 }
 0x1bc   :  { %v241_v32 = vadd.f32 %v239_v29, %v235_v28 }
 0x1bd   :  { %v228_v34 = vpop.f32.mrf.mxu0 }
 0x1be   :  { %v243_v35 = vadd.f32 %v241_v32, %v199_v30  ;;  %v229_v36 = vadd.f32 %v327_v15, %v228_v34 }
 0x1c0   :  { %v257_v40 = vmul.f32 %v256_v33, %v243_v35  ;;  %v232_v41 = vmax.f32 %v229_v36, 0.0 }
 0x1c2   :  { %v240_v44 = vmul.f32 %v238_v23, %v232_v41  ;;  %v259_v45 = vadd.f32 %v257_v40, %v253_v62 }
 0x1c4   :  { %v242_v47 = vadd.f32 %v240_v44, %v236_v43 }
 0x1c6   :  { %v244_v37 = vadd.f32 %v242_v47, %v200_v46 }
 0x1c8   :  { %v258_v48 = vmul.f32 %v256_v33, %v244_v37 }
 0x1ca   :  { %v260_v49 = vadd.f32 %v258_v48, %v254_v5 }
 0x1cc   :  { %v265_v50 = vpack.c.bf16 %v260_v49, %v259_v45 }
 0x1ce   :  { %321 = vmatmul.msk.bf16.vlgmr.msrb.gmra.mxu1 %vm82_vm0, %v265_v50 }
 0x24b   :  { %v284_v52 = vpop.f32.mrf.mxu1 }
 0x24c   :  { %v285_v53 = vadd.f32 %v328_v51, %v284_v52 }
 0x24e   :  { %290 = vst.msk [vmem:[%s562_s11] sm:$0xff] %vm289_vm1, %v285_v53 }
 0x253   :  { %v286_v38 = vpop.f32.mrf.mxu1 }
 0x254   :  { %v287_v54 = vadd.f32 %v328_v51, %v286_v38 }
 0x256   :  { %291 = vst.msk [vmem:[%s562_s11 + $0x8] sm:$0xff] %vm289_vm1, %v287_v54 }
 0x257   :  { %296 = vsyncpa [#allocation3], 1 }
 0x258   :  { %297 = vsyncpa [#allocation5], 1 }

// kernel: network_forward.6
= control target key start
LH: loop header
LB: loop body
LE: loop exit
PB: predicated region body
PF: predicated region fallthrough
CT: control target
= control target key end

     0   :  { %14 = vsyncpa [#allocation3], 0  ;;  %s509_s0 = inlined_call_operand.vmem [shape: f32[3,3], index: 0, kind: input, shape index: {}]   ;;  %s510_s1 = inlined_call_operand.vmem [shape: f32[3], index: 1, kind: input, shape index: {}]   ;;  %s511_s2 = inlined_call_operand.vmem [shape: f32[16,1], index: 2, kind: input, shape index: {}]   ;;  %s512_s3 = inlined_call_operand.vmem [shape: f32[1,64], index: 3, kind: input, shape index: {}]   ;;  %s513_s4 = inlined_call_operand.vmem [shape: f32[1,64], index: 4, kind: input, shape index: {}]   ;;  %s514_s5 = inlined_call_operand.vmem [shape: f32[64,32], index: 5, kind: input, shape index: {}]   ;;  %s515_s6 = inlined_call_operand.vmem [shape: f32[1,32], index: 6, kind: input, shape index: {}]   ;;  %s516_s7 = inlined_call_operand.vmem [shape: f32[3,32,32], index: 7, kind: input, shape index: {}]   ;;  %s517_s8 = inlined_call_operand.vmem [shape: f32[3,1,32], index: 8, kind: input, shape index: {}]   ;;  %s518_s9 = inlined_call_operand.vmem [shape: f32[16,32], index: 9, kind: output, shape index: {}]  }
   0x1   :  { %s21_s11 = sshll.u32 %s509_s0, 4  ;;  %s22_s11 = int_to_ptr.vmem [resolvable:$true] %s21_s11 }
   0x2   :  { %15 = vsyncpa [#allocation5], 0  ;;  %s30_s14 = sshll.u32 %s510_s1, 4  ;;  %s334_s15 = smov [#allocation2]   ;;  %s31_s14 = int_to_ptr.vmem [resolvable:$true] %s30_s14 }
   0x3   :  { %24 = dma.vmem_to_smem %s22_s11, 64, %s334_s15, [#allocation3]  }
   0x4   :  { %s335_s16 = smov [#allocation4]  }
   0x5   :  { %33 = dma.vmem_to_smem %s31_s14, 16, %s335_s16, [#allocation5]  }
   0x6   :  { %330 = dma.done.wait [#allocation3], 64  }
   0x7   :  { %331 = vsyncadd [#allocation3], 4294967232 }
   0x8   :  { %332 = dma.done.wait [#allocation5], 16  }
   0x9   :  { %333 = vsyncadd [#allocation5], 4294967280 }
   0xa   :  { %56 = sfence }
   0xb   :  { %v58_v0 = vld [vmem:[%s511_s2] sm:$0xff]  ;;  %v336_v1 = vmov 0   ;;  %v59_v2 = vld [vmem:[%s511_s2 + $0x8] sm:$0xff]  ;;  %v94_v3 = vld [vmem:[%s514_s5 + $0x30] sm:$0xff]  ;;  %vm105_vm0 = vcmask 523264   ;;  %vm134_vm1 = vcmask 261120  }
   0xc   :  { %295 = vset.pattern.permute.xlu0 %v336_v1  ;;  %v95_v4 = vld [vmem:[%s514_s5 + $0x38] sm:$0xff]  ;;  %v92_v6 = vld [vmem:[%s514_s5 + $0x20] sm:$0xff]  ;;  %v93_v7 = vld [vmem:[%s514_s5 + $0x28] sm:$0xff]  ;;  %s272_s15 = sld [smem:[#allocation2 + $0x1]] }
   0xd   :  { %63 = vperm.xlu0 %295, %v58_v0   ;;  %v100_v5 = vpack.c.bf16 %v95_v4, %v94_v3  ;;  %v99_v8 = vpack.c.bf16 %v93_v7, %v92_v6  ;;  %v90_v9 = vld [vmem:[%s514_s5 + $0x10] sm:$0xff]  ;;  %v91_v10 = vld [vmem:[%s514_s5 + $0x18] sm:$0xff]  ;;  %v88_v12 = vld [vmem:[%s514_s5] sm:$0xff]  ;;  %s273_s16 = sld [smem:[#allocation2 + $0x2]] }
   0xe   :  { %v98_v11 = vpack.c.bf16 %v91_v10, %v90_v9  ;;  %v89_v13 = vld [vmem:[%s514_s5 + $0x8] sm:$0xff]  ;;  %v296_v15 = vld [vmem:[%s512_s3] ss:$0 sm:$0xff]  ;;  %v125_v30 = vld [vmem:[%s516_s7 + $0x10] sm:$0xff]  ;;  %s246_s3 = sld [smem:[#allocation4]] }
   0xf   :  { %113 = vmatpush.bf16.msra.mxu0 %v100_v5  ;;  %v97_v14 = vpack.c.bf16 %v89_v13, %v88_v12  ;;  %v297_v17 = vld [vmem:[%s513_s4] ss:$0 sm:$0xff]  ;;  %v126_v31 = vld [vmem:[%s516_s7 + $0x18] sm:$0xff]  ;;  %v276_v32 = vld [vmem:[%s516_s7 + $0x30] sm:$0xff]  ;;  %s290_s17 = sld [smem:[#allocation4 + $0x1]] }
  0x10   :  { %v129_v33 = vpack.c.bf16 %v126_v31, %v125_v30  ;;  %v277_v34 = vld [vmem:[%s516_s7 + $0x38] sm:$0xff]  ;;  %v123_v36 = vld [vmem:[%s516_s7] sm:$0xff]  ;;  %v124_v37 = vld [vmem:[%s516_s7 + $0x8] sm:$0xff]  ;;  %s487_s0 = sld [smem:[#allocation2 + $0x81]] }
  0x11   :  { %v170_v35 = vpack.c.bf16 %v277_v34, %v276_v32  ;;  %v274_v38 = vld [vmem:[%s516_s7 + $0x20] sm:$0xff]  ;;  %v128_v39 = vpack.c.bf16 %v124_v37, %v123_v36  ;;  %v275_v40 = vld [vmem:[%s516_s7 + $0x28] sm:$0xff]  ;;  %v284_v48 = vld [vmem:[%s516_s7 + $0x50] sm:$0xff]  ;;  %s281_s19 = sld [smem:[#allocation2 + $0x82]] }
  0x12   :  { %144 = vmatpush.bf16.msra.mxu1 %v129_v33  ;;  %v169_v41 = vpack.c.bf16 %v275_v40, %v274_v38  ;;  %v298_v43 = vld [vmem:[%s515_s6] ss:$0 sm:$0xff]  ;;  %v285_v49 = vld [vmem:[%s516_s7 + $0x58] sm:$0xff]  ;;  %v283_v52 = vld [vmem:[%s516_s7 + $0x48] sm:$0xff]  ;;  %v155_v57 = vstv %s272_s15  ;;  %s489_s1 = sld [smem:[#allocation2 + $0x101]] }
  0x13   :  { %114 = vmatpush.bf16.msra.mxu0 %v99_v8  ;;  %182 = vmatpush.bf16.msra.mxu2 %v170_v35  ;;  %v209_v50 = vpack.c.bf16 %v285_v49, %v284_v48  ;;  %v282_v51 = vld [vmem:[%s516_s7 + $0x40] sm:$0xff]  ;;  %v159_v58 = vstv %s273_s16  ;;  %s491_s20 = sld [smem:[#allocation2 + $0x102]] }
  0x14   :  { %v208_v53 = vpack.c.bf16 %v283_v52, %v282_v51  ;;  %v299_v54 = vld [vmem:[%s517_s8] ss:$0 sm:$0xff]  ;;  %v247_v62 = vstv %s246_s3  ;;  %s291_s23 = sld [smem:[#allocation4 + $0x2]] }
  0x15   :  { %68 = vperm.xlu0 %295, %v59_v2   ;;  %224 = vmatpush.bf16.msra.mxu3 %v209_v50  ;;  %v251_v63 = vstv %s290_s17 }
  0x16   :  { %145 = vmatpush.bf16.msra.mxu1 %v128_v39 }
  0x17   :  { %115 = vmatpush.bf16.msra.mxu0 %v98_v11  ;;  %183 = vmatpush.bf16.msra.mxu2 %v169_v41 }
  0x19   :  { %225 = vmatpush.bf16.msra.mxu3 %v208_v53 }
  0x1a   :  { %v257_v35 = vstv %s291_s23 }
  0x1b   :  { %116 = vmatpush.bf16.msra.mxu0 %v97_v14 }
  0x7f   :  { %v64_v16 = vpop.permute.xlu0 %63 }
  0x80   :  { %v74_v18 = vmul.f32 %v296_v15, %v64_v16 }
  0x82   :  { %v80_v19 = vadd.f32 %v297_v17, %v74_v18 }
  0x84   :  { %v82_v21 = vmul.f32 %v80_v19, %v80_v19  ;;  %v197_v19 = vstv %s281_s19 }
  0x86   :  { %302 = vtanh.f32 %v82_v21 }
  0x87   :  { %v69_v20 = vpop.permute.xlu0 %68 }
  0x88   :  { %v75_v22 = vmul.f32 %v296_v15, %v69_v20  ;;  %v300_v15 = vld [vmem:[%s517_s8 + $0x1] ss:$0 sm:$0xff] }
  0x8a   :  { %v81_v23 = vadd.f32 %v297_v17, %v75_v22  ;;  %v301_v17 = vld [vmem:[%s517_s8 + $0x2] ss:$0 sm:$0xff] }
  0x8c   :  { %v83_v24 = vmul.f32 %v81_v23, %v81_v23  ;;  %v303_v25 = vpop.eup %302  ;;  %v193_v23 = vstv %s487_s0 }
  0x8d   :  { %v86_v27 = vsub.f32 1.0, %v303_v25  ;;  %v239_v25 = vstv %s491_s20 }
  0x8e   :  { %304 = vtanh.f32 %v83_v24  ;;  %v235_v24 = vstv %s489_s1 }
  0x94   :  { %v305_v26 = vpop.eup %304 }
  0x95   :  { %v87_v28 = vsub.f32 1.0, %v305_v26 }
  0x97   :  { %v96_v29 = vpack.c.bf16 %v87_v28, %v86_v27 }
  0x99   :  { %270 = vmatmul.msk.bf16.vlgmr.msra.gmra.mxu0 %vm105_vm0, %v96_v29 }
 0x116   :  { %v118_v42 = vpop.f32.mrf.mxu0 }
 0x117   :  { %v456_v45 = vadd.f32 %v298_v43, %v118_v42 }
 0x119   :  { %v156_v60 = vmul.f32 %v155_v57, %v456_v45  ;;  %v248_v2 = vmul.f32 %v247_v62, %v456_v45  ;;  %v194_v29 = vmul.f32 %v193_v23, %v456_v45 }
 0x11e   :  { %v120_v44 = vpop.f32.mrf.mxu0 }
 0x11f   :  { %v458_v46 = vadd.f32 %v298_v43, %v120_v44 }
 0x121   :  { %v127_v47 = vpack.c.bf16 %v458_v46, %v456_v45  ;;  %v157_v7 = vmul.f32 %v155_v57, %v458_v46  ;;  %v249_v10 = vmul.f32 %v247_v62, %v458_v46  ;;  %v195_v42 = vmul.f32 %v193_v23, %v458_v46 }
 0x123   :  { %271 = vmatmul.msk.bf16.vlgmr.msra.gmra.mxu1 %vm134_vm1, %v127_v47  ;;  %279 = vmatmul.msk.bf16.vlgmr.msra.gmra.mxu2 %vm134_vm1, %v127_v47 }
 0x1a0   :  { %v147_v55 = vpop.f32.mrf.mxu1 }
 0x1a1   :  { %v148_v56 = vadd.f32 %v299_v54, %v147_v55 }
 0x1a3   :  { %v152_v59 = vmax.f32 %v148_v56, 0.0 }
 0x1a5   :  { %v160_v61 = vmul.f32 %v159_v58, %v152_v59 }
 0x1a6   :  { %v185_v14 = vpop.f32.mrf.mxu2 }
 0x1a7   :  { %v162_v0 = vadd.f32 %v160_v61, %v156_v60  ;;  %v186_v16 = vadd.f32 %v300_v15, %v185_v14 }
 0x1a8   :  { %v149_v1 = vpop.f32.mrf.mxu1 }
 0x1a9   :  { %v252_v3 = vmul.f32 %v251_v63, %v162_v0  ;;  %v150_v4 = vadd.f32 %v299_v54, %v149_v1  ;;  %v190_v18 = vmax.f32 %v186_v16, 0.0  ;;  %v236_v30 = vmul.f32 %v235_v24, %v162_v0 }
 0x1ab   :  { %v254_v5 = vadd.f32 %v252_v3, %v248_v2  ;;  %v153_v6 = vmax.f32 %v150_v4, 0.0  ;;  %v198_v26 = vmul.f32 %v197_v19, %v190_v18 }
 0x1ad   :  { %v161_v8 = vmul.f32 %v159_v58, %v153_v6  ;;  %v200_v32 = vadd.f32 %v198_v26, %v194_v29 }
 0x1ae   :  { %v187_v20 = vpop.f32.mrf.mxu2 }
 0x1af   :  { %v163_v9 = vadd.f32 %v161_v8, %v157_v7  ;;  %v188_v27 = vadd.f32 %v300_v15, %v187_v20 }
 0x1b1   :  { %v253_v11 = vmul.f32 %v251_v63, %v163_v9  ;;  %v207_v12 = vpack.c.bf16 %v163_v9, %v162_v0  ;;  %v191_v33 = vmax.f32 %v188_v27, 0.0  ;;  %v237_v44 = vmul.f32 %v235_v24, %v163_v9 }
 0x1b3   :  { %v255_v13 = vadd.f32 %v253_v11, %v249_v10  ;;  %287 = vmatmul.msk.bf16.vlgmr.msra.gmra.mxu3 %vm134_vm1, %v207_v12  ;;  %v199_v39 = vmul.f32 %v197_v19, %v191_v33 }
 0x1b5   :  { %v201_v48 = vadd.f32 %v199_v39, %v195_v42 }
 0x236   :  { %v227_v21 = vpop.f32.mrf.mxu3 }
 0x237   :  { %v228_v22 = vadd.f32 %v301_v17, %v227_v21 }
 0x239   :  { %v232_v28 = vmax.f32 %v228_v22, 0.0 }
 0x23b   :  { %v240_v31 = vmul.f32 %v239_v25, %v232_v28 }
 0x23d   :  { %v242_v34 = vadd.f32 %v240_v31, %v236_v30 }
 0x23e   :  { %v229_v36 = vpop.f32.mrf.mxu3 }
 0x23f   :  { %v244_v37 = vadd.f32 %v242_v34, %v200_v32  ;;  %v230_v38 = vadd.f32 %v301_v17, %v229_v36 }
 0x241   :  { %v258_v40 = vmul.f32 %v257_v35, %v244_v37  ;;  %v233_v41 = vmax.f32 %v230_v38, 0.0 }
 0x243   :  { %v260_v43 = vadd.f32 %v258_v40, %v254_v5  ;;  %v241_v47 = vmul.f32 %v239_v25, %v233_v41 }
 0x245   :  { %262 = vst.msk [vmem:[%s518_s9] sm:$0xff] %vm134_vm1, %v260_v43  ;;  %v243_v45 = vadd.f32 %v241_v47, %v237_v44 }
 0x247   :  { %v245_v49 = vadd.f32 %v243_v45, %v201_v48 }
 0x249   :  { %v259_v50 = vmul.f32 %v257_v35, %v245_v49 }
 0x24b   :  { %v261_v51 = vadd.f32 %v259_v50, %v255_v13 }
 0x24d   :  { %263 = vst.msk [vmem:[%s518_s9 + $0x8] sm:$0xff] %vm134_vm1, %v261_v51 }
 0x24e   :  { %268 = vsyncpa [#allocation3], 1 }
 0x24f   :  { %269 = vsyncpa [#allocation5], 1 }

// kernel: network_forward.8
= control target key start
LH: loop header
LB: loop body
LE: loop exit
PB: predicated region body
PF: predicated region fallthrough
CT: control target
= control target key end

     0   :  { %vm19_vm0 = vcmask 254976   ;;  %v1155_v3 = vmov 0.0   ;;  %vm35_vm1 = vcmask 261120   ;;  %s1156_s21 = smov 64   ;;  %s1157_s26 = smov 32   ;;  %vm158_vm10 = vcmask 1041409   ;;  %s1497_s1 = inlined_call_operand.vmem [shape: f32[32,96], index: 1, kind: input, shape index: {}]   ;;  %s1498_s2 = inlined_call_operand.vmem [shape: f32[1,96], index: 2, kind: input, shape index: {}]   ;;  %s1499_s0 = inlined_call_operand.vmem [shape: f32[2,8,96], index: 0, kind: input, shape index: {}]   ;;  %s1500_s3 = inlined_call_operand.vmem [shape: f32[2,8,32], index: 3, kind: output, shape index: {}]  }
   0x1   :  { %v23_v0 = vld [vmem:[%s1497_s1 + $0x10] sm:$0xff]  ;;  %v24_v1 = vld [vmem:[%s1497_s1 + $0x18] sm:$0xff]  ;;  %v21_v2 = vld [vmem:[%s1497_s1] sm:$0xff]  ;;  %20 = vst.msk [vmem:[#allocation2] sm:$0x3] %vm19_vm0, %v1155_v3  ;;  %s1158_s27 = smov 96  }
   0x2   :  { %v26_v4 = vpack.c.bf16 %v24_v1, %v23_v0  ;;  %v22_v5 = vld [vmem:[%s1497_s1 + $0x8] sm:$0xff]  ;;  %v1199_v9 = vld [vmem:[%s1498_s2] ss:$0 sm:$0xff] }
   0x3   :  { %v25_v6 = vpack.c.bf16 %v22_v5, %v21_v2  ;;  %v1207_v14 = vld [vmem:[%s1499_s0 + $0x8] sm:$0xff]  ;;  %v1213_v17 = vld [vmem:[%s1499_s0] sm:$0xff] }
   0x4   :  { %45 = vmatpush.bf16.msra.mxu0 %v26_v4  ;;  %172 = vmatpush.bf16.msra.mxu1 %v26_v4 }
   0x5   :  { %294 = vmatpush.bf16.msra.mxu2 %v26_v4  ;;  %418 = vmatpush.bf16.msra.mxu3 %v26_v4 }
   0x8   :  { %46 = vmatpush.bf16.msra.mxu0 %v25_v6  ;;  %v1191_v7 = vld [vmem:[#allocation2] sm:$0x3]  ;;  %173 = vmatpush.bf16.msra.mxu1 %v25_v6 }
   0x9   :  { %v31_v8 = vpack.c.bf16 %v1191_v7, %v1191_v7  ;;  %295 = vmatpush.bf16.msra.mxu2 %v25_v6  ;;  %419 = vmatpush.bf16.msra.mxu3 %v25_v6  ;;  %v129_v53 = vrot.slane %v1191_v7, 1 }
   0xb   :  { %1027 = vmatmul.msk.bf16.vlgmr.msra.gmra.mxu0 %vm35_vm1, %v31_v8 }
   0xc   :  { %542 = vmatpush.bf16.msrb.mxu0 %v26_v4  ;;  %666 = vmatpush.bf16.msrb.mxu1 %v26_v4 }
   0xd   :  { %790 = vmatpush.bf16.msrb.mxu2 %v26_v4  ;;  %914 = vmatpush.bf16.msrb.mxu3 %v26_v4 }
  0x10   :  { %543 = vmatpush.bf16.msrb.mxu0 %v25_v6  ;;  %667 = vmatpush.bf16.msrb.mxu1 %v25_v6 }
  0x11   :  { %791 = vmatpush.bf16.msrb.mxu2 %v25_v6  ;;  %915 = vmatpush.bf16.msrb.mxu3 %v25_v6 }
  0x88   :  { %v48_v10 = vpop.f32.mrf.mxu0 }
  0x89   :  { %v49_v11 = vadd.f32 %v1199_v9, %v48_v10 }
  0x8b   :  { %v53_v12 = vrot.slane %v49_v11, 1  ;;  %v56_v18 = vadd.f32 %v49_v11, %v1213_v17 }
  0x8d   :  { %98 = vrot.lane.b32.xlu0 %v53_v12, %s1156_s21  ;;  %v57_v15 = vadd.f32 %v53_v12, %v1207_v14  ;;  %v1028_v19 = vmul.f32 -1.442695, %v56_v18 }
  0x8f   :  { %v1029_v16 = vmul.f32 -1.442695, %v57_v15 }
  0x90   :  { %v50_v13 = vpop.f32.mrf.mxu0 }
  0x91   :  { %1056 = vpow2.f32 %v1029_v16 }
  0x92   :  { %1058 = vpow2.f32 %v1028_v19 }
  0x95   :  { %96 = vrot.lane.b32.xlu0 %v49_v11, %s1156_s21 }
  0x97   :  { %v1057_v20 = vpop.eup %1056 }
  0x98   :  { %v65_v21 = vadd.f32 1.0, %v1057_v20  ;;  %v1059_v22 = vpop.eup %1058 }
  0x99   :  { %v64_v23 = vadd.f32 1.0, %v1059_v22 }
  0x9a   :  { %1060 = vrcp.f32 %v65_v21  ;;  %v92_v32 = vand.u32 2147483648, %v65_v21  ;;  %vm86_vm3 = vweird.f32 %v65_v21  ;;  %v90_v33 = vand.u32 2147483647, %v65_v21 }
  0x9b   :  { %1062 = vrcp.f32 %v64_v23  ;;  %v77_v41 = vand.u32 2147483648, %v64_v23  ;;  %vm71_vm7 = vweird.f32 %v64_v23  ;;  %v75_v42 = vand.u32 2147483647, %v64_v23 }
  0x9c   :  { %v93_v36 = vor.u32 1.1754944e-38, %v92_v32  ;;  %vm91_vm5 = vcmp.eq.f32.partialorder %v90_v33, 8.507059e+37 }
  0x9d   :  { %v78_v44 = vor.u32 1.1754944e-38, %v77_v41  ;;  %vm76_vm9 = vcmp.eq.f32.partialorder %v75_v42, 8.507059e+37 }
  0xa0   :  { %v1061_v24 = vpop.eup %1060 }
  0xa1   :  { %v82_v25 = vmul.f32 %v1061_v24, %v65_v21  ;;  %v1063_v27 = vpop.eup %1062  ;;  %vm87_vm2 = vweird.f32 %v1061_v24 }
  0xa2   :  { %v67_v29 = vmul.f32 %v1063_v27, %v64_v23  ;;  %vm88_vm4 = vmor %vm86_vm3, %vm87_vm2  ;;  %vm72_vm6 = vweird.f32 %v1063_v27 }
  0xa3   :  { %v83_v26 = vsub.f32 1.0, %v82_v25  ;;  %vm73_vm8 = vmor %vm71_vm7, %vm72_vm6 }
  0xa4   :  { %v68_v31 = vsub.f32 1.0, %v67_v29 }
  0xa5   :  { %v84_v28 = vmul.f32 %v1061_v24, %v83_v26 }
  0xa6   :  { %v69_v35 = vmul.f32 %v1063_v27, %v68_v31 }
  0xa7   :  { %v85_v30 = vadd.f32 %v1061_v24, %v84_v28 }
  0xa8   :  { %v70_v40 = vadd.f32 %v1063_v27, %v69_v35 }
  0xa9   :  { %v89_v34 = vsel %vm88_vm4, %v1061_v24, %v85_v30 }
  0xaa   :  { %v94_v38 = vsel %vm91_vm5, %v93_v36, %v89_v34  ;;  %v74_v43 = vsel %vm73_vm8, %v1063_v27, %v70_v40 }
  0xab   :  { %v79_v46 = vsel %vm76_vm9, %v78_v44, %v74_v43  ;;  %v117_v57 = vsub.f32 1.0, %v94_v38 }
  0xac   :  { %v116_v63 = vsub.f32 1.0, %v79_v46 }
  0xff   :  { %v99_v37 = vpop.permute.xlu0 %98 }
 0x100   :  { %v103_v39 = vmul.f32 %v99_v37, %v94_v38 }
 0x102   :  { %108 = vrot.lane.b32.xlu1 %v103_v39, %s1156_s21 }
 0x107   :  { %v97_v45 = vpop.permute.xlu0 %96 }
 0x108   :  { %v102_v47 = vmul.f32 %v97_v45, %v79_v46 }
 0x10a   :  { %106 = vrot.lane.b32.xlu1 %v102_v47, %s1156_s21 }
 0x112   :  { %130 = vrot.lane.b32.xlu1 %v1191_v7, %s1157_s26 }
 0x174   :  { %v109_v48 = vpop.permute.xlu1 %108 }
 0x175   :  { %v113_v49 = vadd.f32 %v109_v48, %v1207_v14 }
 0x177   :  { %1064 = vtanh.f32 %v113_v49 }
 0x17c   :  { %v107_v50 = vpop.permute.xlu1 %106 }
 0x17d   :  { %v1065_v51 = vpop.eup %1064  ;;  %v112_v52 = vadd.f32 %v107_v50, %v1213_v17 }
 0x17e   :  { %122 = vrot.lane.b32.xlu2 %v1065_v51, %s1158_s27 }
 0x17f   :  { %1066 = vtanh.f32 %v112_v52 }
 0x184   :  { %v131_v61 = vpop.permute.xlu1 %130 }
 0x185   :  { %v1067_v54 = vpop.eup %1066  ;;  %v136_v1 = vmul.f32 %v131_v61, %v79_v46 }
 0x186   :  { %132 = vrot.lane.b32.xlu2 %v129_v53, %s1157_s26  ;;  %120 = vrot.lane.b32.xlu0 %v1067_v54, %s1158_s27 }
 0x1d8   :  { %v123_v55 = vpop.permute.xlu2 %122 }
 0x1d9   :  { %v127_v59 = vmul.f32 %v123_v55, %v117_v57 }
 0x1e0   :  { %v133_v56 = vpop.permute.xlu2 %132 }
 0x1e1   :  { %v137_v58 = vmul.f32 %v133_v56, %v94_v38 }
 0x1e3   :  { %v1224_v60 = vadd.f32 %v137_v58, %v127_v59 }
 0x1e5   :  { %v152_v62 = vpack.c.bf16 %v1224_v60, %v1224_v60  ;;  %v256_v57 = vrot.slane %v1224_v60, 7 }
 0x1e7   :  { %v156_v3 = vunpack.c.l.b16 %v152_v62 }
 0x1e9   :  { %v157_v6 = vrot.slane %v156_v3, 7 }
 0x1f8   :  { %v121_v0 = vpop.permute.xlu0 %120 }
 0x1f9   :  { %v126_v2 = vmul.f32 %v121_v0, %v116_v63 }
 0x1fb   :  { %v1228_v4 = vadd.f32 %v136_v1, %v126_v2 }
 0x1fd   :  { %v151_v5 = vpack.c.bf16 %v1228_v4, %v1228_v4  ;;  %v255_v63 = vrot.slane %v1228_v4, 7 }
 0x1ff   :  { %v155_v7 = vunpack.c.l.b16 %v151_v5 }
 0x201   :  { %v159_v8 = vsel %vm158_vm10, %v157_v6, %v155_v7 }
 0x202   :  { %v160_v10 = vpack.c.b16 %v159_v8, %v159_v8 }
 0x204   :  { %161 = vrot.lane.b32.xlu2 %v160_v10, %s1158_s27 }
 0x25e   :  { %v162_v11 = vpop.permute.xlu2 %161 }
 0x25f   :  { %1030 = vmatmul.msk.bf16.vlgmr.msra.gmra.mxu1 %vm35_vm1, %v162_v11 }
 0x2dc   :  { %v175_v12 = vpop.f32.mrf.mxu1 }
 0x2dd   :  { %v176_v13 = vadd.f32 %v1199_v9, %v175_v12 }
 0x2df   :  { %225 = vrot.lane.b32.xlu1 %v176_v13, %s1156_s21  ;;  %v180_v15 = vrot.slane %v176_v13, 7  ;;  %v184_v18 = vadd.f32 %v176_v13, %v1207_v14 }
 0x2e1   :  { %223 = vrot.lane.b32.xlu0 %v180_v15, %s1156_s21  ;;  %v183_v19 = vadd.f32 %v180_v15, %v1213_v17  ;;  %v1032_v20 = vmul.f32 -1.442695, %v184_v18 }
 0x2e3   :  { %v1031_v21 = vmul.f32 -1.442695, %v183_v19  ;;  %1068 = vpow2.f32 %v1032_v20 }
 0x2e4   :  { %v177_v16 = vpop.f32.mrf.mxu1 }
 0x2e5   :  { %1070 = vpow2.f32 %v1031_v21 }
 0x2e9   :  { %v1069_v22 = vpop.eup %1068 }
 0x2ea   :  { %v192_v24 = vadd.f32 1.0, %v1069_v22 }
 0x2eb   :  { %v1071_v23 = vpop.eup %1070 }
 0x2ec   :  { %v191_v25 = vadd.f32 1.0, %v1071_v23  ;;  %1072 = vrcp.f32 %v192_v24  ;;  %v219_v35 = vand.u32 2147483648, %v192_v24  ;;  %vm213_vm12 = vweird.f32 %v192_v24 }
 0x2ed   :  { %v217_v36 = vand.u32 2147483647, %v192_v24 }
 0x2ee   :  { %1074 = vrcp.f32 %v191_v25  ;;  %v204_v38 = vand.u32 2147483648, %v191_v25  ;;  %vm198_vm15 = vweird.f32 %v191_v25  ;;  %v202_v40 = vand.u32 2147483647, %v191_v25 }
 0x2ef   :  { %v220_v41 = vor.u32 1.1754944e-38, %v219_v35  ;;  %vm218_vm2 = vcmp.eq.f32.partialorder %v217_v36, 8.507059e+37 }
 0x2f0   :  { %v205_v45 = vor.u32 1.1754944e-38, %v204_v38  ;;  %vm203_vm3 = vcmp.eq.f32.partialorder %v202_v40, 8.507059e+37 }
 0x2f2   :  { %v1073_v26 = vpop.eup %1072 }
 0x2f3   :  { %v209_v28 = vmul.f32 %v1073_v26, %v192_v24  ;;  %vm214_vm11 = vweird.f32 %v1073_v26 }
 0x2f4   :  { %v1075_v27 = vpop.eup %1074  ;;  %vm215_vm14 = vmor %vm213_vm12, %vm214_vm11 }
 0x2f5   :  { %v194_v29 = vmul.f32 %v1075_v27, %v191_v25  ;;  %v210_v30 = vsub.f32 1.0, %v209_v28  ;;  %vm199_vm13 = vweird.f32 %v1075_v27 }
 0x2f6   :  { %vm200_vm0 = vmor %vm198_vm15, %vm199_vm13 }
 0x2f7   :  { %v195_v31 = vsub.f32 1.0, %v194_v29  ;;  %v211_v32 = vmul.f32 %v1073_v26, %v210_v30 }
 0x2f9   :  { %v196_v33 = vmul.f32 %v1075_v27, %v195_v31  ;;  %v212_v34 = vadd.f32 %v1073_v26, %v211_v32 }
 0x2fb   :  { %v197_v37 = vadd.f32 %v1075_v27, %v196_v33  ;;  %v216_v39 = vsel %vm215_vm14, %v1073_v26, %v212_v34 }
 0x2fc   :  { %v221_v44 = vsel %vm218_vm2, %v220_v41, %v216_v39 }
 0x2fd   :  { %v201_v42 = vsel %vm200_vm0, %v1075_v27, %v197_v37  ;;  %v244_v56 = vsub.f32 1.0, %v221_v44  ;;  %v260_v59 = vmul.f32 %v256_v57, %v221_v44 }
 0x2fe   :  { %v206_v48 = vsel %vm203_vm3, %v205_v45, %v201_v42 }
 0x2ff   :  { %v243_v62 = vsub.f32 1.0, %v206_v48  ;;  %v259_v2 = vmul.f32 %v255_v63, %v206_v48 }
 0x351   :  { %v226_v43 = vpop.permute.xlu1 %225 }
 0x352   :  { %v230_v46 = vmul.f32 %v226_v43, %v221_v44 }
 0x353   :  { %v224_v47 = vpop.permute.xlu0 %223 }
 0x354   :  { %v229_v49 = vmul.f32 %v224_v47, %v206_v48  ;;  %235 = vrot.lane.b32.xlu0 %v230_v46, %s1156_s21 }
 0x356   :  { %233 = vrot.lane.b32.xlu2 %v229_v49, %s1156_s21 }
 0x3b0   :  { %v234_v50 = vpop.permute.xlu2 %233 }
 0x3b1   :  { %v239_v51 = vadd.f32 %v234_v50, %v1213_v17 }
 0x3b3   :  { %1076 = vtanh.f32 %v239_v51 }
 0x3b9   :  { %v1077_v52 = vpop.eup %1076 }
 0x3ba   :  { %247 = vrot.lane.b32.xlu1 %v1077_v52, %s1158_s27 }
 0x3c6   :  { %v236_v53 = vpop.permute.xlu0 %235 }
 0x3c7   :  { %v240_v54 = vadd.f32 %v236_v53, %v1207_v14 }
 0x3c9   :  { %1078 = vtanh.f32 %v240_v54 }
 0x3cf   :  { %v1079_v55 = vpop.eup %1078 }
 0x3d0   :  { %249 = vrot.lane.b32.xlu2 %v1079_v55, %s1158_s27 }
 0x42a   :  { %v250_v58 = vpop.permute.xlu2 %249 }
 0x42b   :  { %v254_v61 = vmul.f32 %v250_v58, %v244_v56 }
 0x42c   :  { %v248_v0 = vpop.permute.xlu1 %247 }
 0x42d   :  { %v1248_v1 = vadd.f32 %v260_v59, %v254_v61  ;;  %v253_v3 = vmul.f32 %v248_v0, %v243_v62 }
 0x42f   :  { %v1250_v5 = vadd.f32 %v259_v2, %v253_v3  ;;  %v275_v6 = vpack.c.bf16 %v1248_v1, %v1248_v1  ;;  %v379_v0 = vrot.slane %v1248_v1, 7 }
 0x431   :  { %v274_v7 = vpack.c.bf16 %v1250_v5, %v1250_v5  ;;  %v279_v10 = vunpack.c.l.b16 %v275_v6  ;;  %v378_v62 = vrot.slane %v1250_v5, 7 }
 0x433   :  { %v278_v8 = vunpack.c.l.b16 %v274_v7 }
 0x435   :  { %v280_v11 = vrot.slane %v278_v8, 1 }
 0x437   :  { %v281_v12 = vsel %vm158_vm10, %v279_v10, %v280_v11 }
 0x438   :  { %v282_v13 = vpack.c.b16 %v281_v12, %v281_v12 }
 0x43a   :  { %283 = vrot.lane.b32.xlu0 %v282_v13, %s1158_s27 }
 0x4ac   :  { %v284_v15 = vpop.permute.xlu0 %283 }
 0x4ad   :  { %1033 = vmatmul.msk.bf16.vlgmr.msra.gmra.mxu2 %vm35_vm1, %v284_v15 }
 0x530   :  { %v297_v16 = vpop.f32.mrf.mxu2 }
 0x531   :  { %v298_v18 = vadd.f32 %v1199_v9, %v297_v16 }
 0x533   :  { %v302_v19 = vrot.slane %v298_v18, 6  ;;  %v303_v20 = vrot.slane %v298_v18, 7 }
 0x535   :  { %348 = vrot.lane.b32.xlu2 %v303_v20, %s1156_s21  ;;  %346 = vrot.lane.b32.xlu1 %v302_v19, %s1156_s21  ;;  %v307_v22 = vadd.f32 %v303_v20, %v1207_v14  ;;  %v306_v26 = vadd.f32 %v302_v19, %v1213_v17 }
 0x537   :  { %v1035_v23 = vmul.f32 -1.442695, %v307_v22  ;;  %v1034_v28 = vmul.f32 -1.442695, %v306_v26 }
 0x538   :  { %v299_v21 = vpop.f32.mrf.mxu2 }
 0x539   :  { %1080 = vpow2.f32 %v1035_v23 }
 0x53f   :  { %v1081_v24 = vpop.eup %1080 }
 0x540   :  { %v315_v25 = vadd.f32 1.0, %v1081_v24 }
 0x542   :  { %1082 = vrcp.f32 %v315_v25  ;;  %v342_v35 = vand.u32 2147483648, %v315_v25  ;;  %vm336_vm5 = vweird.f32 %v315_v25  ;;  %v340_v36 = vand.u32 2147483647, %v315_v25 }
 0x543   :  { %1084 = vpow2.f32 %v1034_v28 }
 0x544   :  { %v343_v38 = vor.u32 1.1754944e-38, %v342_v35  ;;  %vm341_vm7 = vcmp.eq.f32.partialorder %v340_v36, 8.507059e+37 }
 0x548   :  { %v1083_v27 = vpop.eup %1082 }
 0x549   :  { %v332_v29 = vmul.f32 %v1083_v27, %v315_v25  ;;  %v1085_v31 = vpop.eup %1084  ;;  %vm337_vm4 = vweird.f32 %v1083_v27 }
 0x54a   :  { %v314_v33 = vadd.f32 1.0, %v1085_v31  ;;  %vm338_vm6 = vmor %vm336_vm5, %vm337_vm4 }
 0x54b   :  { %v333_v30 = vsub.f32 1.0, %v332_v29 }
 0x54c   :  { %1086 = vrcp.f32 %v314_v33  ;;  %v327_v47 = vand.u32 2147483648, %v314_v33  ;;  %vm321_vm9 = vweird.f32 %v314_v33  ;;  %v325_v48 = vand.u32 2147483647, %v314_v33 }
 0x54d   :  { %v334_v32 = vmul.f32 %v1083_v27, %v333_v30 }
 0x54e   :  { %v328_v50 = vor.u32 1.1754944e-38, %v327_v47  ;;  %vm326_vm12 = vcmp.eq.f32.partialorder %v325_v48, 8.507059e+37 }
 0x54f   :  { %v335_v34 = vadd.f32 %v1083_v27, %v334_v32 }
 0x551   :  { %v339_v37 = vsel %vm338_vm6, %v1083_v27, %v335_v34 }
 0x552   :  { %v344_v40 = vsel %vm341_vm7, %v343_v38, %v339_v37  ;;  %v1087_v42 = vpop.eup %1086 }
 0x553   :  { %v317_v43 = vmul.f32 %v1087_v42, %v314_v33  ;;  %vm322_vm8 = vweird.f32 %v1087_v42  ;;  %v367_v63 = vsub.f32 1.0, %v344_v40  ;;  %v383_v8 = vmul.f32 %v379_v0, %v344_v40 }
 0x554   :  { %vm323_vm11 = vmor %vm321_vm9, %vm322_vm8 }
 0x555   :  { %v318_v44 = vsub.f32 1.0, %v317_v43 }
 0x557   :  { %v319_v45 = vmul.f32 %v1087_v42, %v318_v44 }
 0x559   :  { %v320_v46 = vadd.f32 %v1087_v42, %v319_v45 }
 0x55b   :  { %v324_v49 = vsel %vm323_vm11, %v1087_v42, %v320_v46 }
 0x55c   :  { %v329_v52 = vsel %vm326_vm12, %v328_v50, %v324_v49 }
 0x55d   :  { %v366_v61 = vsub.f32 1.0, %v329_v52  ;;  %v382_v6 = vmul.f32 %v378_v62, %v329_v52 }
 0x58f   :  { %v349_v39 = vpop.permute.xlu2 %348 }
 0x590   :  { %v353_v41 = vmul.f32 %v349_v39, %v344_v40 }
 0x592   :  { %358 = vrot.lane.b32.xlu1 %v353_v41, %s1156_s21 }
 0x5a7   :  { %v347_v51 = vpop.permute.xlu1 %346 }
 0x5a8   :  { %v352_v53 = vmul.f32 %v347_v51, %v329_v52 }
 0x5aa   :  { %356 = vrot.lane.b32.xlu0 %v352_v53, %s1156_s21 }
 0x604   :  { %v359_v54 = vpop.permute.xlu1 %358 }
 0x605   :  { %v363_v55 = vadd.f32 %v359_v54, %v1207_v14 }
 0x607   :  { %1088 = vtanh.f32 %v363_v55 }
 0x60d   :  { %v1089_v56 = vpop.eup %1088 }
 0x60e   :  { %372 = vrot.lane.b32.xlu0 %v1089_v56, %s1158_s27 }
 0x61c   :  { %v357_v57 = vpop.permute.xlu0 %356 }
 0x61d   :  { %v362_v58 = vadd.f32 %v357_v57, %v1213_v17 }
 0x61f   :  { %1090 = vtanh.f32 %v362_v58 }
 0x625   :  { %v1091_v59 = vpop.eup %1090 }
 0x626   :  { %370 = vrot.lane.b32.xlu2 %v1091_v59, %s1158_s27 }
 0x680   :  { %v371_v2 = vpop.permute.xlu2 %370  ;;  %v373_v3 = vpop.permute.xlu0 %372 }
 0x681   :  { %v376_v7 = vmul.f32 %v371_v2, %v366_v61  ;;  %v377_v10 = vmul.f32 %v373_v3, %v367_v63 }
 0x683   :  { %v1272_v11 = vadd.f32 %v382_v6, %v376_v7  ;;  %v1274_v12 = vadd.f32 %v383_v8, %v377_v10 }
 0x685   :  { %v397_v13 = vpack.c.bf16 %v1272_v11, %v1272_v11  ;;  %v398_v15 = vpack.c.bf16 %v1274_v12, %v1274_v12  ;;  %v503_v8 = vrot.slane %v1274_v12, 7 }
 0x687   :  { %v401_v16 = vunpack.c.l.b16 %v397_v13  ;;  %v402_v18 = vunpack.c.l.b16 %v398_v15  ;;  %v502_v13 = vrot.slane %v1272_v11, 7 }
 0x689   :  { %v403_v19 = vrot.slane %v401_v16, 2  ;;  %v404_v20 = vrot.slane %v402_v18, 1 }
 0x68b   :  { %v405_v21 = vsel %vm158_vm10, %v404_v20, %v403_v19 }
 0x68c   :  { %v406_v22 = vpack.c.b16 %v405_v21, %v405_v21 }
 0x68e   :  { %407 = vrot.lane.b32.xlu1 %v406_v22, %s1158_s27 }
 0x700   :  { %v408_v23 = vpop.permute.xlu1 %407 }
 0x701   :  { %1036 = vmatmul.msk.bf16.vlgmr.msra.gmra.mxu3 %vm35_vm1, %v408_v23 }
 0x784   :  { %v421_v24 = vpop.f32.mrf.mxu3 }
 0x785   :  { %v422_v25 = vadd.f32 %v1199_v9, %v421_v24 }
 0x787   :  { %v426_v26 = vrot.slane %v422_v25, 5  ;;  %v427_v27 = vrot.slane %v422_v25, 6 }
 0x789   :  { %472 = vrot.lane.b32.xlu0 %v427_v27, %s1156_s21  ;;  %470 = vrot.lane.b32.xlu2 %v426_v26, %s1156_s21  ;;  %v430_v29 = vadd.f32 %v426_v26, %v1213_v17  ;;  %v431_v33 = vadd.f32 %v427_v27, %v1207_v14 }
 0x78b   :  { %v1037_v30 = vmul.f32 -1.442695, %v430_v29  ;;  %v1038_v35 = vmul.f32 -1.442695, %v431_v33 }
 0x78c   :  { %v423_v28 = vpop.f32.mrf.mxu3 }
 0x78d   :  { %1092 = vpow2.f32 %v1037_v30 }
 0x793   :  { %v1093_v31 = vpop.eup %1092 }
 0x794   :  { %v438_v32 = vadd.f32 1.0, %v1093_v31 }
 0x796   :  { %1094 = vrcp.f32 %v438_v32  ;;  %v451_v42 = vand.u32 2147483648, %v438_v32  ;;  %vm445_vm14 = vweird.f32 %v438_v32  ;;  %v449_v43 = vand.u32 2147483647, %v438_v32 }
 0x797   :  { %1096 = vpow2.f32 %v1038_v35 }
 0x798   :  { %v452_v45 = vor.u32 1.1754944e-38, %v451_v42  ;;  %vm450_vm0 = vcmp.eq.f32.partialorder %v449_v43, 8.507059e+37 }
 0x79c   :  { %v1095_v34 = vpop.eup %1094 }
 0x79d   :  { %v441_v36 = vmul.f32 %v1095_v34, %v438_v32  ;;  %v1097_v38 = vpop.eup %1096  ;;  %vm446_vm13 = vweird.f32 %v1095_v34 }
 0x79e   :  { %v439_v40 = vadd.f32 1.0, %v1097_v38  ;;  %vm447_vm15 = vmor %vm445_vm14, %vm446_vm13 }
 0x79f   :  { %v442_v37 = vsub.f32 1.0, %v441_v36 }
 0x7a0   :  { %1098 = vrcp.f32 %v439_v40  ;;  %v466_v54 = vand.u32 2147483648, %v439_v40  ;;  %vm460_vm3 = vweird.f32 %v439_v40  ;;  %v464_v55 = vand.u32 2147483647, %v439_v40 }
 0x7a1   :  { %v443_v39 = vmul.f32 %v1095_v34, %v442_v37 }
 0x7a2   :  { %v467_v57 = vor.u32 1.1754944e-38, %v466_v54  ;;  %vm465_vm5 = vcmp.eq.f32.partialorder %v464_v55, 8.507059e+37 }
 0x7a3   :  { %v444_v41 = vadd.f32 %v1095_v34, %v443_v39 }
 0x7a5   :  { %v448_v44 = vsel %vm447_vm15, %v1095_v34, %v444_v41 }
 0x7a6   :  { %v453_v47 = vsel %vm450_vm0, %v452_v45, %v448_v44  ;;  %v1099_v49 = vpop.eup %1098 }
 0x7a7   :  { %v456_v50 = vmul.f32 %v1099_v49, %v439_v40  ;;  %vm461_vm2 = vweird.f32 %v1099_v49  ;;  %v490_v10 = vsub.f32 1.0, %v453_v47  ;;  %v506_v20 = vmul.f32 %v502_v13, %v453_v47 }
 0x7a8   :  { %vm462_vm4 = vmor %vm460_vm3, %vm461_vm2 }
 0x7a9   :  { %v457_v51 = vsub.f32 1.0, %v456_v50 }
 0x7ab   :  { %v458_v52 = vmul.f32 %v1099_v49, %v457_v51 }
 0x7ad   :  { %v459_v53 = vadd.f32 %v1099_v49, %v458_v52 }
 0x7af   :  { %v463_v56 = vsel %vm462_vm4, %v1099_v49, %v459_v53 }
 0x7b0   :  { %v468_v59 = vsel %vm465_vm5, %v467_v57, %v463_v56 }
 0x7b1   :  { %v491_v7 = vsub.f32 1.0, %v468_v59  ;;  %v507_v18 = vmul.f32 %v503_v8, %v468_v59 }
 0x7e3   :  { %v471_v46 = vpop.permute.xlu2 %470 }
 0x7e4   :  { %v476_v48 = vmul.f32 %v471_v46, %v453_v47 }
 0x7e6   :  { %480 = vrot.lane.b32.xlu1 %v476_v48, %s1156_s21 }
 0x7fb   :  { %v473_v58 = vpop.permute.xlu0 %472 }
 0x7fc   :  { %v477_v61 = vmul.f32 %v473_v58, %v468_v59 }
 0x7fe   :  { %482 = vrot.lane.b32.xlu2 %v477_v61, %s1156_s21 }
 0x858   :  { %v483_v62 = vpop.permute.xlu2 %482  ;;  %v481_v63 = vpop.permute.xlu1 %480 }
 0x859   :  { %v487_v0 = vadd.f32 %v483_v62, %v1207_v14  ;;  %v486_v2 = vadd.f32 %v481_v63, %v1213_v17 }
 0x85b   :  { %1100 = vtanh.f32 %v487_v0 }
 0x85c   :  { %1102 = vtanh.f32 %v486_v2 }
 0x861   :  { %v1101_v3 = vpop.eup %1100 }
 0x862   :  { %v1103_v6 = vpop.eup %1102  ;;  %496 = vrot.lane.b32.xlu1 %v1101_v3, %s1158_s27 }
 0x863   :  { %494 = vrot.lane.b32.xlu0 %v1103_v6, %s1158_s27 }
 0x8d4   :  { %v497_v15 = vpop.permute.xlu1 %496 }
 0x8d5   :  { %v495_v16 = vpop.permute.xlu0 %494  ;;  %v501_v19 = vmul.f32 %v497_v15, %v491_v7 }
 0x8d6   :  { %v500_v21 = vmul.f32 %v495_v16, %v490_v10 }
 0x8d7   :  { %v1296_v22 = vadd.f32 %v507_v18, %v501_v19 }
 0x8d8   :  { %v1298_v23 = vadd.f32 %v506_v20, %v500_v21 }
 0x8d9   :  { %v522_v24 = vpack.c.bf16 %v1296_v22, %v1296_v22 }
 0x8da   :  { %v521_v25 = vpack.c.bf16 %v1298_v23, %v1298_v23 }
 0x8db   :  { %v526_v26 = vunpack.c.l.b16 %v522_v24  ;;  %v626_v24 = vrot.slane %v1298_v23, 7 }
 0x8dc   :  { %v525_v27 = vunpack.c.l.b16 %v521_v25 }
 0x8dd   :  { %v528_v28 = vrot.slane %v526_v26, 2  ;;  %v627_v26 = vrot.slane %v1296_v22, 7 }
 0x8de   :  { %v527_v29 = vrot.slane %v525_v27, 3 }
 0x8e0   :  { %v529_v30 = vsel %vm158_vm10, %v528_v28, %v527_v29 }
 0x8e1   :  { %v530_v31 = vpack.c.b16 %v529_v30, %v529_v30 }
 0x8e3   :  { %531 = vrot.lane.b32.xlu2 %v530_v31, %s1158_s27 }
 0x93d   :  { %v532_v32 = vpop.permute.xlu2 %531 }
 0x93e   :  { %1039 = vmatmul.msk.bf16.vlgmr.msrb.gmra.mxu0 %vm35_vm1, %v532_v32 }
 0x9bb   :  { %v545_v33 = vpop.f32.mrf.mxu0 }
 0x9bc   :  { %v546_v34 = vadd.f32 %v1199_v9, %v545_v33 }
 0x9be   :  { %v550_v35 = vrot.slane %v546_v34, 4  ;;  %v551_v36 = vrot.slane %v546_v34, 5 }
 0x9c0   :  { %596 = vrot.lane.b32.xlu1 %v551_v36, %s1156_s21  ;;  %594 = vrot.lane.b32.xlu0 %v550_v35, %s1156_s21  ;;  %v554_v38 = vadd.f32 %v550_v35, %v1213_v17  ;;  %v555_v39 = vadd.f32 %v551_v36, %v1207_v14 }
 0x9c2   :  { %v1040_v40 = vmul.f32 -1.442695, %v554_v38  ;;  %v1041_v41 = vmul.f32 -1.442695, %v555_v39 }
 0x9c3   :  { %v547_v37 = vpop.f32.mrf.mxu0 }
 0x9c4   :  { %1104 = vpow2.f32 %v1040_v40 }
 0x9c5   :  { %1106 = vpow2.f32 %v1041_v41 }
 0x9ca   :  { %v1105_v42 = vpop.eup %1104 }
 0x9cb   :  { %v1107_v43 = vpop.eup %1106  ;;  %v562_v44 = vadd.f32 1.0, %v1105_v42 }
 0x9cc   :  { %v563_v45 = vadd.f32 1.0, %v1107_v43 }
 0x9cd   :  { %1108 = vrcp.f32 %v562_v44  ;;  %vm569_vm8 = vweird.f32 %v562_v44  ;;  %v575_v57 = vand.u32 2147483648, %v562_v44  ;;  %v573_v59 = vand.u32 2147483647, %v562_v44 }
 0x9ce   :  { %1110 = vrcp.f32 %v563_v45  ;;  %v590_v56 = vand.u32 2147483648, %v563_v45  ;;  %vm584_vm9 = vweird.f32 %v563_v45  ;;  %v588_v58 = vand.u32 2147483647, %v563_v45 }
 0x9cf   :  { %v576_v0 = vor.u32 1.1754944e-38, %v575_v57  ;;  %vm574_vm14 = vcmp.eq.f32.partialorder %v573_v59, 8.507059e+37 }
 0x9d0   :  { %v591_v63 = vor.u32 1.1754944e-38, %v590_v56  ;;  %vm589_vm13 = vcmp.eq.f32.partialorder %v588_v58, 8.507059e+37 }
 0x9d3   :  { %v1109_v46 = vpop.eup %1108 }
 0x9d4   :  { %v1111_v47 = vpop.eup %1110  ;;  %v565_v49 = vmul.f32 %v1109_v46, %v562_v44  ;;  %vm570_vm6 = vweird.f32 %v1109_v46 }
 0x9d5   :  { %v580_v48 = vmul.f32 %v1111_v47, %v563_v45  ;;  %vm585_vm7 = vweird.f32 %v1111_v47  ;;  %vm571_vm11 = vmor %vm569_vm8, %vm570_vm6 }
 0x9d6   :  { %v566_v51 = vsub.f32 1.0, %v565_v49  ;;  %vm586_vm12 = vmor %vm584_vm9, %vm585_vm7 }
 0x9d7   :  { %v581_v50 = vsub.f32 1.0, %v580_v48 }
 0x9d8   :  { %v567_v53 = vmul.f32 %v1109_v46, %v566_v51 }
 0x9d9   :  { %v582_v52 = vmul.f32 %v1111_v47, %v581_v50 }
 0x9da   :  { %v568_v55 = vadd.f32 %v1109_v46, %v567_v53 }
 0x9db   :  { %v583_v54 = vadd.f32 %v1111_v47, %v582_v52 }
 0x9dc   :  { %v572_v62 = vsel %vm571_vm11, %v1109_v46, %v568_v55 }
 0x9dd   :  { %v587_v61 = vsel %vm586_vm12, %v1111_v47, %v583_v54  ;;  %v577_v7 = vsel %vm574_vm14, %v576_v0, %v572_v62 }
 0x9de   :  { %v592_v3 = vsel %vm589_vm13, %v591_v63, %v587_v61  ;;  %v614_v21 = vsub.f32 1.0, %v577_v7  ;;  %v630_v29 = vmul.f32 %v626_v24, %v577_v7 }
 0x9df   :  { %v615_v25 = vsub.f32 1.0, %v592_v3  ;;  %v631_v31 = vmul.f32 %v627_v26, %v592_v3 }
 0xa32   :  { %v597_v2 = vpop.permute.xlu1 %596  ;;  %v595_v6 = vpop.permute.xlu0 %594 }
 0xa33   :  { %v601_v8 = vmul.f32 %v597_v2, %v592_v3  ;;  %v600_v10 = vmul.f32 %v595_v6, %v577_v7 }
 0xa35   :  { %606 = vrot.lane.b32.xlu0 %v601_v8, %s1156_s21  ;;  %604 = vrot.lane.b32.xlu2 %v600_v10, %s1156_s21 }
 0xa8f   :  { %v605_v13 = vpop.permute.xlu2 %604 }
 0xa90   :  { %v610_v15 = vadd.f32 %v605_v13, %v1213_v17 }
 0xa92   :  { %1112 = vtanh.f32 %v610_v15 }
 0xa98   :  { %v1113_v16 = vpop.eup %1112 }
 0xa99   :  { %618 = vrot.lane.b32.xlu1 %v1113_v16, %s1158_s27 }
 0xaa7   :  { %v607_v18 = vpop.permute.xlu0 %606 }
 0xaa8   :  { %v611_v19 = vadd.f32 %v607_v18, %v1207_v14 }
 0xaaa   :  { %1114 = vtanh.f32 %v611_v19 }
 0xab0   :  { %v1115_v20 = vpop.eup %1114 }
 0xab1   :  { %620 = vrot.lane.b32.xlu2 %v1115_v20, %s1158_s27 }
 0xb0b   :  { %v619_v27 = vpop.permute.xlu1 %618  ;;  %v621_v28 = vpop.permute.xlu2 %620 }
 0xb0c   :  { %v624_v30 = vmul.f32 %v619_v27, %v614_v21  ;;  %v625_v32 = vmul.f32 %v621_v28, %v615_v25 }
 0xb0e   :  { %v1320_v33 = vadd.f32 %v630_v29, %v624_v30  ;;  %v1322_v34 = vadd.f32 %v631_v31, %v625_v32 }
 0xb10   :  { %v645_v35 = vpack.c.bf16 %v1320_v33, %v1320_v33  ;;  %v646_v36 = vpack.c.bf16 %v1322_v34, %v1322_v34 }
 0xb12   :  { %v649_v37 = vunpack.c.l.b16 %v645_v35  ;;  %v650_v38 = vunpack.c.l.b16 %v646_v36  ;;  %v750_v36 = vrot.slane %v1320_v33, 7 }
 0xb14   :  { %v651_v39 = vrot.slane %v649_v37, 4  ;;  %v652_v40 = vrot.slane %v650_v38, 3  ;;  %v751_v38 = vrot.slane %v1322_v34, 7 }
 0xb16   :  { %v653_v41 = vsel %vm158_vm10, %v652_v40, %v651_v39 }
 0xb17   :  { %v654_v42 = vpack.c.b16 %v653_v41, %v653_v41 }
 0xb19   :  { %655 = vrot.lane.b32.xlu0 %v654_v42, %s1158_s27 }
 0xb8b   :  { %v656_v43 = vpop.permute.xlu0 %655 }
 0xb8c   :  { %1042 = vmatmul.msk.bf16.vlgmr.msrb.gmra.mxu1 %vm35_vm1, %v656_v43 }
 0xc09   :  { %v669_v44 = vpop.f32.mrf.mxu1 }
 0xc0a   :  { %v670_v45 = vadd.f32 %v1199_v9, %v669_v44 }
 0xc0c   :  { %v674_v46 = vrot.slane %v670_v45, 3  ;;  %v675_v47 = vrot.slane %v670_v45, 4 }
 0xc0e   :  { %720 = vrot.lane.b32.xlu2 %v675_v47, %s1156_s21  ;;  %718 = vrot.lane.b32.xlu1 %v674_v46, %s1156_s21  ;;  %v679_v49 = vadd.f32 %v675_v47, %v1207_v14  ;;  %v678_v53 = vadd.f32 %v674_v46, %v1213_v17 }
 0xc10   :  { %v1044_v50 = vmul.f32 -1.442695, %v679_v49  ;;  %v1043_v55 = vmul.f32 -1.442695, %v678_v53 }
 0xc11   :  { %v671_v48 = vpop.f32.mrf.mxu1 }
 0xc12   :  { %1116 = vpow2.f32 %v1044_v50 }
 0xc18   :  { %v1117_v51 = vpop.eup %1116 }
 0xc19   :  { %v687_v52 = vadd.f32 1.0, %v1117_v51 }
 0xc1b   :  { %1118 = vrcp.f32 %v687_v52  ;;  %v714_v62 = vand.u32 2147483648, %v687_v52  ;;  %vm708_vm0 = vweird.f32 %v687_v52  ;;  %v712_v63 = vand.u32 2147483647, %v687_v52 }
 0xc1c   :  { %1120 = vpow2.f32 %v1043_v55  ;;  %v1358_v55 = vld [vmem:[%s1498_s2] ss:$0 sm:$0xff] }
 0xc1d   :  { %v715_v2 = vor.u32 1.1754944e-38, %v714_v62  ;;  %vm713_vm3 = vcmp.eq.f32.partialorder %v712_v63, 8.507059e+37 }
 0xc21   :  { %v1119_v54 = vpop.eup %1118 }
 0xc22   :  { %v704_v56 = vmul.f32 %v1119_v54, %v687_v52  ;;  %v1121_v57 = vpop.eup %1120  ;;  %vm709_vm15 = vweird.f32 %v1119_v54 }
 0xc23   :  { %v686_v59 = vadd.f32 1.0, %v1121_v57  ;;  %vm710_vm2 = vmor %vm708_vm0, %vm709_vm15 }
 0xc24   :  { %v705_v9 = vsub.f32 1.0, %v704_v56 }
 0xc25   :  { %1122 = vrcp.f32 %v686_v59  ;;  %v699_v18 = vand.u32 2147483648, %v686_v59  ;;  %vm693_vm5 = vweird.f32 %v686_v59  ;;  %v697_v19 = vand.u32 2147483647, %v686_v59 }
 0xc26   :  { %v706_v58 = vmul.f32 %v1119_v54, %v705_v9 }
 0xc27   :  { %v700_v21 = vor.u32 1.1754944e-38, %v699_v18  ;;  %vm698_vm7 = vcmp.eq.f32.partialorder %v697_v19, 8.507059e+37 }
 0xc28   :  { %v707_v61 = vadd.f32 %v1119_v54, %v706_v58 }
 0xc2a   :  { %v711_v0 = vsel %vm710_vm2, %v1119_v54, %v707_v61 }
 0xc2b   :  { %v716_v6 = vsel %vm713_vm3, %v715_v2, %v711_v0  ;;  %v1123_v8 = vpop.eup %1122  ;;  %v1372_v2 = vld [vmem:[%s1499_s0 + $0x8] sm:$0xff] }
 0xc2c   :  { %v689_v10 = vmul.f32 %v1123_v8, %v686_v59  ;;  %vm694_vm4 = vweird.f32 %v1123_v8  ;;  %v739_v37 = vsub.f32 1.0, %v716_v6  ;;  %v755_v42 = vmul.f32 %v751_v38, %v716_v6  ;;  %v1366_v59 = vld [vmem:[%s1499_s0] sm:$0xff] }
 0xc2d   :  { %vm695_vm6 = vmor %vm693_vm5, %vm694_vm4 }
 0xc2e   :  { %v690_v13 = vsub.f32 1.0, %v689_v10 }
 0xc30   :  { %v691_v15 = vmul.f32 %v1123_v8, %v690_v13 }
 0xc32   :  { %v692_v16 = vadd.f32 %v1123_v8, %v691_v15 }
 0xc34   :  { %v696_v20 = vsel %vm695_vm6, %v1123_v8, %v692_v16 }
 0xc35   :  { %v701_v25 = vsel %vm698_vm7, %v700_v21, %v696_v20 }
 0xc36   :  { %v738_v35 = vsub.f32 1.0, %v701_v25 }
 0xc68   :  { %v721_v3 = vpop.permute.xlu2 %720 }
 0xc69   :  { %v725_v7 = vmul.f32 %v721_v3, %v716_v6 }
 0xc6b   :  { %730 = vrot.lane.b32.xlu1 %v725_v7, %s1156_s21 }
 0xc80   :  { %v719_v24 = vpop.permute.xlu1 %718 }
 0xc81   :  { %v724_v26 = vmul.f32 %v719_v24, %v701_v25 }
 0xc83   :  { %728 = vrot.lane.b32.xlu0 %v724_v26, %s1156_s21 }
 0xcdd   :  { %v731_v27 = vpop.permute.xlu1 %730 }
 0xcde   :  { %v735_v28 = vadd.f32 %v731_v27, %v1207_v14  ;;  %v754_v14 = vmul.f32 %v750_v36, %v701_v25 }
 0xce0   :  { %1124 = vtanh.f32 %v735_v28 }
 0xce6   :  { %v1125_v29 = vpop.eup %1124 }
 0xce7   :  { %744 = vrot.lane.b32.xlu0 %v1125_v29, %s1158_s27 }
 0xcf5   :  { %v729_v30 = vpop.permute.xlu0 %728 }
 0xcf6   :  { %v734_v31 = vadd.f32 %v729_v30, %v1213_v17 }
 0xcf8   :  { %1126 = vtanh.f32 %v734_v31 }
 0xcfe   :  { %v1127_v32 = vpop.eup %1126 }
 0xcff   :  { %742 = vrot.lane.b32.xlu2 %v1127_v32, %s1158_s27 }
 0xd59   :  { %v743_v39 = vpop.permute.xlu2 %742  ;;  %v745_v40 = vpop.permute.xlu0 %744 }
 0xd5a   :  { %v748_v41 = vmul.f32 %v743_v39, %v738_v35  ;;  %v749_v43 = vmul.f32 %v745_v40, %v739_v37 }
 0xd5c   :  { %v1344_v44 = vadd.f32 %v754_v14, %v748_v41  ;;  %v1346_v45 = vadd.f32 %v755_v42, %v749_v43 }
 0xd5e   :  { %v769_v17 = vpack.c.bf16 %v1344_v44, %v1344_v44  ;;  %v770_v46 = vpack.c.bf16 %v1346_v45, %v1346_v45 }
 0xd60   :  { %v773_v47 = vunpack.c.l.b16 %v769_v17  ;;  %v774_v48 = vunpack.c.l.b16 %v770_v46 }
 0xd62   :  { %v775_v49 = vrot.slane %v773_v47, 5  ;;  %v776_v50 = vrot.slane %v774_v48, 4 }
 0xd64   :  { %v777_v51 = vsel %vm158_vm10, %v776_v50, %v775_v49  ;;  %v875_v49 = vrot.slane %v1346_v45, 7 }
 0xd65   :  { %v778_v52 = vpack.c.b16 %v777_v51, %v777_v51  ;;  %v874_v51 = vrot.slane %v1344_v44, 7 }
 0xd67   :  { %779 = vrot.lane.b32.xlu1 %v778_v52, %s1158_s27 }
 0xdd9   :  { %v780_v53 = vpop.permute.xlu1 %779 }
 0xdda   :  { %1045 = vmatmul.msk.bf16.vlgmr.msrb.gmra.mxu2 %vm35_vm1, %v780_v53 }
 0xe5d   :  { %v793_v54 = vpop.f32.mrf.mxu2 }
 0xe5e   :  { %v794_v56 = vadd.f32 %v1358_v55, %v793_v54 }
 0xe60   :  { %v798_v9 = vrot.slane %v794_v56, 2  ;;  %v799_v57 = vrot.slane %v794_v56, 3 }
 0xe62   :  { %844 = vrot.lane.b32.xlu0 %v799_v57, %s1156_s21  ;;  %842 = vrot.lane.b32.xlu2 %v798_v9, %s1156_s21  ;;  %v802_v61 = vadd.f32 %v1366_v59, %v798_v9  ;;  %v803_v3 = vadd.f32 %v1372_v2, %v799_v57 }
 0xe64   :  { %v1046_v62 = vmul.f32 -1.442695, %v802_v61  ;;  %v1047_v7 = vmul.f32 -1.442695, %v803_v3 }
 0xe65   :  { %v795_v58 = vpop.f32.mrf.mxu2 }
 0xe66   :  { %1128 = vpow2.f32 %v1046_v62 }
 0xe6c   :  { %v1129_v63 = vpop.eup %1128 }
 0xe6d   :  { %v810_v0 = vadd.f32 1.0, %v1129_v63 }
 0xe6f   :  { %1130 = vrcp.f32 %v810_v0  ;;  %v823_v19 = vand.u32 2147483648, %v810_v0  ;;  %vm817_vm9 = vweird.f32 %v810_v0  ;;  %v821_v20 = vand.u32 2147483647, %v810_v0 }
 0xe70   :  { %1132 = vpow2.f32 %v1047_v7 }
 0xe71   :  { %v824_v24 = vor.u32 1.1754944e-38, %v823_v19  ;;  %vm822_vm12 = vcmp.eq.f32.partialorder %v821_v20, 8.507059e+37 }
 0xe75   :  { %v1131_v6 = vpop.eup %1130 }
 0xe76   :  { %v813_v8 = vmul.f32 %v1131_v6, %v810_v0  ;;  %v1133_v13 = vpop.eup %1132  ;;  %vm818_vm8 = vweird.f32 %v1131_v6 }
 0xe77   :  { %v811_v16 = vadd.f32 1.0, %v1133_v13  ;;  %vm819_vm11 = vmor %vm817_vm9, %vm818_vm8  ;;  %vm148_vm8 = vcmask 253952   ;;  %vm271_vm9 = vcmask 254977  }
 0xe78   :  { %v814_v10 = vsub.f32 1.0, %v813_v8 }
 0xe79   :  { %1134 = vrcp.f32 %v811_v16  ;;  %v838_v35 = vand.u32 2147483648, %v811_v16  ;;  %vm832_vm14 = vweird.f32 %v811_v16  ;;  %v836_v36 = vand.u32 2147483647, %v811_v16 }
 0xe7a   :  { %v815_v15 = vmul.f32 %v1131_v6, %v814_v10 }
 0xe7b   :  { %v839_v38 = vor.u32 1.1754944e-38, %v838_v35  ;;  %vm837_vm0 = vcmp.eq.f32.partialorder %v836_v36, 8.507059e+37 }
 0xe7c   :  { %v816_v18 = vadd.f32 %v1131_v6, %v815_v15 }
 0xe7e   :  { %v820_v21 = vsel %vm819_vm11, %v1131_v6, %v816_v18  ;;  %vm518_vm11 = vcmask 257027  }
 0xe7f   :  { %v825_v26 = vsel %vm822_vm12, %v824_v24, %v820_v21  ;;  %v1135_v28 = vpop.eup %1134  ;;  %vm642_vm12 = vcmask 258052  }
 0xe80   :  { %v828_v29 = vmul.f32 %v1135_v28, %v811_v16  ;;  %vm833_vm13 = vweird.f32 %v1135_v28  ;;  %v862_v50 = vsub.f32 1.0, %v825_v26  ;;  %v878_v9 = vmul.f32 %v874_v51, %v825_v26 }
 0xe81   :  { %vm834_vm15 = vmor %vm832_vm14, %vm833_vm13  ;;  %vm890_vm13 = vcmask 260102   ;;  %vm394_vm14 = vcmask 256002  }
 0xe82   :  { %v829_v30 = vsub.f32 1.0, %v828_v29 }
 0xe84   :  { %v830_v31 = vmul.f32 %v1135_v28, %v829_v30 }
 0xe86   :  { %v831_v32 = vadd.f32 %v1135_v28, %v830_v31 }
 0xe88   :  { %v835_v37 = vsel %vm834_vm15, %v1135_v28, %v831_v32  ;;  %vm766_vm15 = vcmask 259077  }
 0xe89   :  { %v840_v40 = vsel %vm837_vm0, %v839_v38, %v835_v37  ;;  %vm1014_vm0 = vcmask 261127  }
 0xe8a   :  { %v863_v48 = vsub.f32 1.0, %v840_v40  ;;  %v879_v54 = vmul.f32 %v875_v49, %v840_v40 }
 0xebc   :  { %v843_v25 = vpop.permute.xlu2 %842 }
 0xebd   :  { %v848_v27 = vmul.f32 %v843_v25, %v825_v26 }
 0xebf   :  { %852 = vrot.lane.b32.xlu1 %v848_v27, %s1156_s21 }
 0xed4   :  { %v845_v39 = vpop.permute.xlu0 %844 }
 0xed5   :  { %v849_v14 = vmul.f32 %v845_v39, %v840_v40 }
 0xed7   :  { %854 = vrot.lane.b32.xlu2 %v849_v14, %s1156_s21 }
 0xf31   :  { %v855_v41 = vpop.permute.xlu2 %854  ;;  %v853_v42 = vpop.permute.xlu1 %852 }
 0xf32   :  { %v859_v43 = vadd.f32 %v1372_v2, %v855_v41  ;;  %v858_v17 = vadd.f32 %v1366_v59, %v853_v42 }
 0xf34   :  { %1136 = vtanh.f32 %v859_v43 }
 0xf35   :  { %1138 = vtanh.f32 %v858_v17 }
 0xf3a   :  { %v1137_v46 = vpop.eup %1136 }
 0xf3b   :  { %v1139_v47 = vpop.eup %1138  ;;  %868 = vrot.lane.b32.xlu1 %v1137_v46, %s1158_s27 }
 0xf3c   :  { %866 = vrot.lane.b32.xlu0 %v1139_v47, %s1158_s27 }
 0xfad   :  { %v869_v52 = vpop.permute.xlu1 %868 }
 0xfae   :  { %v867_v53 = vpop.permute.xlu0 %866  ;;  %v873_v56 = vmul.f32 %v869_v52, %v863_v48 }
 0xfaf   :  { %v872_v57 = vmul.f32 %v867_v53, %v862_v50 }
 0xfb0   :  { %v1383_v58 = vadd.f32 %v879_v54, %v873_v56 }
 0xfb1   :  { %v1385_v61 = vadd.f32 %v878_v9, %v872_v57 }
 0xfb2   :  { %v894_v62 = vpack.c.bf16 %v1383_v58, %v1383_v58 }
 0xfb3   :  { %v893_v63 = vpack.c.bf16 %v1385_v61, %v1385_v61 }
 0xfb4   :  { %v898_v0 = vunpack.c.l.b16 %v894_v62 }
 0xfb5   :  { %v897_v3 = vunpack.c.l.b16 %v893_v63 }
 0xfb6   :  { %v900_v6 = vrot.slane %v898_v0, 5 }
 0xfb7   :  { %v899_v7 = vrot.slane %v897_v3, 6 }
 0xfb9   :  { %v901_v8 = vsel %vm158_vm10, %v900_v6, %v899_v7 }
 0xfba   :  { %v902_v10 = vpack.c.b16 %v901_v8, %v901_v8 }
 0xfbc   :  { %903 = vrot.lane.b32.xlu2 %v902_v10, %s1158_s27 }
0x1016   :  { %v904_v13 = vpop.permute.xlu2 %903 }
0x1017   :  { %1048 = vmatmul.msk.bf16.vlgmr.msrb.gmra.mxu3 %vm35_vm1, %v904_v13 }
0x109a   :  { %v917_v15 = vpop.f32.mrf.mxu3 }
0x109b   :  { %v918_v16 = vadd.f32 %v1358_v55, %v917_v15 }
0x109d   :  { %v922_v18 = vrot.slane %v918_v16, 1  ;;  %v923_v19 = vrot.slane %v918_v16, 2 }
0x109f   :  { %968 = vrot.lane.b32.xlu0 %v923_v19, %s1156_s21  ;;  %966 = vrot.lane.b32.xlu1 %v922_v18, %s1156_s21  ;;  %v926_v21 = vadd.f32 %v1366_v59, %v922_v18  ;;  %v927_v24 = vadd.f32 %v1372_v2, %v923_v19 }
0x10a1   :  { %v1049_v25 = vmul.f32 -1.442695, %v926_v21  ;;  %v1050_v26 = vmul.f32 -1.442695, %v927_v24 }
0x10a2   :  { %v919_v20 = vpop.f32.mrf.mxu3 }
0x10a3   :  { %1140 = vpow2.f32 %v1049_v25 }
0x10a4   :  { %1142 = vpow2.f32 %v1050_v26 }
0x10a9   :  { %v1141_v27 = vpop.eup %1140 }
0x10aa   :  { %v1143_v28 = vpop.eup %1142  ;;  %v934_v29 = vadd.f32 1.0, %v1141_v27 }
0x10ab   :  { %v935_v30 = vadd.f32 1.0, %v1143_v28 }
0x10ac   :  { %1144 = vrcp.f32 %v934_v29  ;;  %vm941_vm2 = vweird.f32 %v934_v29  ;;  %v947_v42 = vand.u32 2147483648, %v934_v29  ;;  %v945_v17 = vand.u32 2147483647, %v934_v29 }
0x10ad   :  { %1146 = vrcp.f32 %v935_v30  ;;  %v962_v41 = vand.u32 2147483648, %v935_v30  ;;  %vm956_vm3 = vweird.f32 %v935_v30  ;;  %v960_v43 = vand.u32 2147483647, %v935_v30 }
0x10ae   :  { %v948_v49 = vor.u32 1.1754944e-38, %v947_v42  ;;  %vm946_vm7 = vcmp.eq.f32.partialorder %v945_v17, 8.507059e+37 }
0x10af   :  { %v963_v48 = vor.u32 1.1754944e-38, %v962_v41  ;;  %vm961_vm6 = vcmp.eq.f32.partialorder %v960_v43, 8.507059e+37 }
0x10b2   :  { %v1145_v55 = vpop.eup %1144 }
0x10b3   :  { %v1147_v31 = vpop.eup %1146  ;;  %v937_v35 = vmul.f32 %v1145_v55, %v934_v29  ;;  %vm942_vm1 = vweird.f32 %v1145_v55 }
0x10b4   :  { %v952_v32 = vmul.f32 %v1147_v31, %v935_v30  ;;  %vm957_vm10 = vweird.f32 %v1147_v31  ;;  %vm943_vm4 = vmor %vm941_vm2, %vm942_vm1 }
0x10b5   :  { %v938_v37 = vsub.f32 1.0, %v937_v35  ;;  %vm958_vm5 = vmor %vm956_vm3, %vm957_vm10 }
0x10b6   :  { %v953_v36 = vsub.f32 1.0, %v952_v32 }
0x10b7   :  { %v939_v39 = vmul.f32 %v1145_v55, %v938_v37 }
0x10b8   :  { %v954_v38 = vmul.f32 %v1147_v31, %v953_v36 }
0x10b9   :  { %v940_v14 = vadd.f32 %v1145_v55, %v939_v39 }
0x10ba   :  { %v955_v40 = vadd.f32 %v1147_v31, %v954_v38 }
0x10bb   :  { %v944_v47 = vsel %vm943_vm4, %v1145_v55, %v940_v14 }
0x10bc   :  { %v959_v46 = vsel %vm958_vm5, %v1147_v31, %v955_v40  ;;  %v949_v53 = vsel %vm946_vm7, %v948_v49, %v944_v47 }
0x10bd   :  { %v964_v51 = vsel %vm961_vm6, %v963_v48, %v959_v46 }
0x1111   :  { %v969_v50 = vpop.permute.xlu0 %968  ;;  %v967_v52 = vpop.permute.xlu1 %966 }
0x1112   :  { %v973_v54 = vmul.f32 %v969_v50, %v964_v51  ;;  %v972_v56 = vmul.f32 %v967_v52, %v949_v53 }
0x1114   :  { %978 = vrot.lane.b32.xlu2 %v973_v54, %s1156_s21  ;;  %976 = vrot.lane.b32.xlu0 %v972_v56, %s1156_s21 }
0x111c   :  { %142 = vrot.lane.b32.xlu0 %v1228_v4, %s1158_s27 }
0x1124   :  { %267 = vrot.lane.b32.xlu0 %v1248_v1, %s1158_s27 }
0x112c   :  { %512 = vrot.lane.b32.xlu0 %v1298_v23, %s1158_s27 }
0x1134   :  { %638 = vrot.lane.b32.xlu0 %v1322_v34, %s1158_s27 }
0x113c   :  { %884 = vrot.lane.b32.xlu0 %v1385_v61, %s1158_s27 }
0x116e   :  { %v979_v9 = vpop.permute.xlu2 %978 }
0x116f   :  { %v983_v57 = vadd.f32 %v1372_v2, %v979_v9  ;;  %v998_v2 = vrot.slane %v1385_v61, 7 }
0x1171   :  { %1148 = vtanh.f32 %v983_v57  ;;  %v1002_v6 = vmul.f32 %v998_v2, %v949_v53 }
0x1177   :  { %v1149_v62 = vpop.eup %1148 }
0x1178   :  { %992 = vrot.lane.b32.xlu1 %v1149_v62, %s1158_s27 }
0x1180   :  { %144 = vrot.lane.b32.xlu1 %v1224_v60, %s1158_s27 }
0x1186   :  { %v977_v4 = vpop.permute.xlu0 %976 }
0x1187   :  { %v982_v1 = vadd.f32 %v1366_v59, %v977_v4  ;;  %v986_v59 = vsub.f32 1.0, %v949_v53 }
0x1188   :  { %388 = vrot.lane.b32.xlu1 %v1272_v11, %s1158_s27 }
0x1189   :  { %1150 = vtanh.f32 %v982_v1 }
0x118e   :  { %v143_v23 = vpop.permute.xlu0 %142 }
0x118f   :  { %v1151_v34 = vpop.eup %1150  ;;  %149 = vst.msk [vmem:[%s1500_s3] sm:$0x1] %vm148_vm8, %v143_v23 }
0x1190   :  { %514 = vrot.lane.b32.xlu1 %v1296_v22, %s1158_s27  ;;  %990 = vrot.lane.b32.xlu2 %v1151_v34, %s1158_s27 }
0x1196   :  { %v268_v60 = vpop.permute.xlu0 %267 }
0x1197   :  { %273 = vst.msk [vmem:[%s1500_s3 + $0x8] sm:$0x2] %vm271_vm9, %v268_v60 }
0x1198   :  { %760 = vrot.lane.b32.xlu1 %v1344_v44, %s1158_s27  ;;  %265 = vrot.lane.b32.xlu2 %v1250_v5, %s1158_s27  ;;  %v999_v44 = vrot.slane %v1383_v58, 7 }
0x119a   :  { %v1003_v3 = vmul.f32 %v999_v44, %v964_v51 }
0x119e   :  { %v513_v11 = vpop.permute.xlu0 %512 }
0x119f   :  { %519 = vst.msk [vmem:[%s1500_s3] sm:$0x8] %vm518_vm11, %v513_v11 }
0x11a0   :  { %886 = vrot.lane.b32.xlu1 %v1383_v58, %s1158_s27  ;;  %390 = vrot.lane.b32.xlu2 %v1274_v12, %s1158_s27  ;;  %v987_v12 = vsub.f32 1.0, %v964_v51 }
0x11a6   :  { %v639_v22 = vpop.permute.xlu0 %638 }
0x11a7   :  { %644 = vst.msk [vmem:[%s1500_s3 + $0x8] sm:$0x10] %vm642_vm12, %v639_v22 }
0x11a8   :  { %636 = vrot.lane.b32.xlu2 %v1320_v33, %s1158_s27 }
0x11ae   :  { %v885_v5 = vpop.permute.xlu0 %884 }
0x11af   :  { %891 = vst.msk [vmem:[%s1500_s3] sm:$0x40] %vm890_vm13, %v885_v5 }
0x11b0   :  { %762 = vrot.lane.b32.xlu2 %v1346_v45, %s1158_s27 }
0x11ea   :  { %v993_v63 = vpop.permute.xlu1 %992  ;;  %v991_v0 = vpop.permute.xlu2 %990 }
0x11eb   :  { %v997_v33 = vmul.f32 %v993_v63, %v987_v12  ;;  %v996_v7 = vmul.f32 %v991_v0, %v986_v59 }
0x11ed   :  { %v1005_v8 = vadd.f32 %v1003_v3, %v997_v33  ;;  %v1004_v10 = vadd.f32 %v1002_v6, %v996_v7 }
0x11ef   :  { %1010 = vrot.lane.b32.xlu0 %v1005_v8, %s1158_s27  ;;  %1008 = vrot.lane.b32.xlu2 %v1004_v10, %s1158_s27  ;;  %v1017_v13 = vrot.slane %v1005_v8, 7 }
0x11f1   :  { %1018 = vrot.lane.b32.xlu1 %v1017_v13, %s1158_s27 }
0x11f2   :  { %v145_v45 = vpop.permute.xlu1 %144  ;;  %v266_v58 = vpop.permute.xlu2 %265 }
0x11f3   :  { %150 = vst.msk [vmem:[%s1500_s3 + $0x8] sm:$0x1] %vm148_vm8, %v145_v45 }
0x11f4   :  { %272 = vst.msk [vmem:[%s1500_s3] sm:$0x2] %vm271_vm9, %v266_v58 }
0x11fa   :  { %v389_v61 = vpop.permute.xlu1 %388  ;;  %v391_v15 = vpop.permute.xlu2 %390 }
0x11fb   :  { %395 = vst.msk [vmem:[%s1500_s3] sm:$0x4] %vm394_vm14, %v389_v61 }
0x11fc   :  { %396 = vst.msk [vmem:[%s1500_s3 + $0x8] sm:$0x4] %vm394_vm14, %v391_v15 }
0x1202   :  { %v515_v16 = vpop.permute.xlu1 %514  ;;  %v637_v18 = vpop.permute.xlu2 %636 }
0x1203   :  { %520 = vst.msk [vmem:[%s1500_s3 + $0x8] sm:$0x8] %vm518_vm11, %v515_v16 }
0x1204   :  { %643 = vst.msk [vmem:[%s1500_s3] sm:$0x10] %vm642_vm12, %v637_v18 }
0x120a   :  { %v761_v19 = vpop.permute.xlu1 %760  ;;  %v763_v20 = vpop.permute.xlu2 %762 }
0x120b   :  { %767 = vst.msk [vmem:[%s1500_s3] sm:$0x20] %vm766_vm15, %v761_v19 }
0x120c   :  { %768 = vst.msk [vmem:[%s1500_s3 + $0x8] sm:$0x20] %vm766_vm15, %v763_v20 }
0x1212   :  { %v887_v21 = vpop.permute.xlu1 %886 }
0x1213   :  { %892 = vst.msk [vmem:[%s1500_s3 + $0x8] sm:$0x40] %vm890_vm13, %v887_v21 }
0x1249   :  { %v1009_v24 = vpop.permute.xlu2 %1008 }
0x124a   :  { %1015 = vst.msk [vmem:[%s1500_s3] sm:$0x80] %vm1014_vm0, %v1009_v24 }
0x124b   :  { %1021 = vst.msk [vmem:[#allocation2 - $0x7] sm:$0x80] %vm1014_vm0, %v1009_v24 }
0x1261   :  { %v1011_v25 = vpop.permute.xlu0 %1010 }
0x1262   :  { %1016 = vst.msk [vmem:[%s1500_s3 + $0x8] sm:$0x80] %vm1014_vm0, %v1011_v25 }
0x1263   :  { %v1019_v26 = vpop.permute.xlu1 %1018 }
0x1264   :  { %1022 = vst.msk [vmem:[#allocation2 + $0x1] sm:$0x1] %vm148_vm8, %v1019_v26 }

// kernel: network_forward.9
= control target key start
LH: loop header
LB: loop body
LE: loop exit
PB: predicated region body
PF: predicated region fallthrough
CT: control target
= control target key end

     0   :  { %s279_s0 = inlined_call_operand.vmem [shape: f32[2,8,32], index: 0, kind: input, shape index: {}]   ;;  %s280_s1 = inlined_call_operand.vmem [shape: f32[2,8], index: 1, kind: input, shape index: {}]   ;;  %s281_s2 = inlined_call_operand.vmem [shape: f32[1,32], index: 2, kind: input, shape index: {}]   ;;  %s282_s3 = inlined_call_operand.<no memory space> [shape: f32[1,1], index: 3, kind: input, shape index: {}]   ;;  %s283_s4 = inlined_call_operand.vmem [shape: f32[32,2], index: 4, kind: input, shape index: {}]   ;;  %s284_s5 = inlined_call_operand.vmem [shape: f32[1,2], index: 5, kind: input, shape index: {}]   ;;  %s285_s6 = inlined_call_operand.hbm [shape: f32[2,2], index: 6, kind: output, shape index: {}]  }
   0x1   :  { %v11_v0 = vstv %s282_s3 }
   0x2   :  { %12 = vst [vmem:[#allocation2] sm:$0x1] %v11_v0 }
   0x3   :  { %v241_v1 = vld [vmem:[%s279_s0] sm:$0xff]  ;;  %v198_v3 = vmov 0   ;;  %vm34_vm0 = vcmask 261120  }
   0x4   :  { %v165_v2 = vld [vmem:[%s281_s2] ss:$0 sm:$0xff]  ;;  %162 = vset.pattern.permute.xlu1 %v198_v3 }
   0x5   :  { %v32_v5 = vmul.f32 %v165_v2, %v241_v1 }
   0x9   :  { %v166_v4 = vld [vmem:[#allocation2] ss:$0 sm:$0xff] }
   0xa   :  { %13 = vsyncpa [#allocation4], 0  ;;  %45 = vperm.xlu1 %162, %v166_v4   ;;  %v27_v6 = vld [vmem:[%s279_s0 + $0x8] sm:$0xff]  ;;  %v35_v7 = vsel %vm34_vm0, %v32_v5, 0.0  ;;  %v54_v11 = vlaneseq  ;;  %v50_v16 = vld [vmem:[%s280_s1] sm:$0x3] }
   0xb   :  { %36 = vadd.xlane.f32.xlu0 %v35_v7  ;;  %v33_v8 = vmul.f32 %v165_v2, %v27_v6  ;;  %vm58_vm1 = vcmask 1041409   ;;  %vm51_vm2 = vcmp.gt.f32.partialorder %v50_v16, 0.5  ;;  %vm62_vm3 = vcmask 58368   ;;  %v111_v36 = vld [vmem:[%s283_s4 + $0x18] sm:$0xff]  ;;  %v110_v37 = vld [vmem:[%s283_s4 + $0x10] sm:$0xff]  ;;  %v109_v38 = vld [vmem:[%s283_s4 + $0x8] sm:$0xff] }
   0xc   :  { %v55_v13 = vand.u32 127, %v54_v11  ;;  %v80_v29 = vshrl.u32 %v54_v11, 7  ;;  %133 = vmatpush.msra.mxu0 %v111_v36  ;;  %v108_v39 = vld [vmem:[%s283_s4] sm:$0xff]  ;;  %s199_s12 = smov [#allocation3]   ;;  %s150_s16 = sshll.u32 %s285_s6, 4  ;;  %vm141_vm6 = vcmask 9216   ;;  %s151_s16 = int_to_ptr.hbm [resolvable:$true] %s150_s16 }
   0xd   :  { %v38_v9 = vsel %vm34_vm0, %v33_v8, 0.0  ;;  %v167_v59 = vld [vmem:[%s284_s5] ss:$0 sm:$0xff]  ;;  %s148_s13 = sshll.u32 %s199_s12, 4  ;;  %s149_s13 = int_to_ptr.vmem [resolvable:$true] %s148_s13 }
   0xe   :  { %164 = vset.pattern.permute.xlu0 %v80_v29  ;;  %163 = vset.pattern.permute.xlu2 %v80_v29 }
   0xf   :  { %134 = vmatpush.msra.mxu0 %v110_v37 }
  0x11   :  { %135 = vmatpush.msra.mxu0 %v109_v38 }
  0x13   :  { %39 = vadd.xlane.f32.xlu0 %v38_v9  ;;  %136 = vmatpush.msra.mxu0 %v108_v39 }
  0x7c   :  { %v46_v12 = vpop.permute.xlu1 %45 }
  0x7e   :  { %v37_v10 = vpop.xlane.xlu0 %36 }
  0x7f   :  { %v48_v14 = vadd.f32 %v46_v12, %v37_v10 }
  0x81   :  { %v56_v18 = vperm.slane %v48_v14, %v55_v13 }
  0x86   :  { %v40_v15 = vpop.xlane.xlu0 %39 }
  0x87   :  { %v49_v17 = vadd.f32 %v46_v12, %v40_v15 }
  0x89   :  { %v57_v19 = vperm.slane %v49_v17, %v55_v13 }
  0x8b   :  { %v59_v20 = vsel %vm58_vm1, %v57_v19, %v56_v18 }
  0x8c   :  { %v61_v21 = vsel %vm51_vm2, %v59_v20, -inf }
  0x8d   :  { %v63_v22 = vsel %vm62_vm3, %v61_v21, -inf }
  0x8e   :  { %64 = vmax.xlane.f32.xlu1 %v63_v22 }
 0x101   :  { %v65_v23 = vpop.xlane.xlu1 %64 }
 0x102   :  { %vm66_vm4 = vcmp.gt.f32.partialorder %v65_v23, -inf }
 0x103   :  { %v67_v24 = vsel %vm66_vm4, %v65_v23, 0.0 }
 0x104   :  { %v68_v25 = vsub.f32 %v61_v21, %v67_v24 }
 0x106   :  { %v69_v26 = vmul.f32 1.442695, %v68_v25 }
 0x108   :  { %168 = vpow2.f32 %v69_v26 }
 0x10e   :  { %v169_v27 = vpop.eup %168 }
 0x10f   :  { %v71_v28 = vsel %vm62_vm3, %v169_v27, 0.0 }
 0x110   :  { %72 = vadd.xlane.f32.xlu2 %v71_v28 }
 0x183   :  { %v73_v30 = vpop.xlane.xlu2 %72 }
 0x184   :  { %vm74_vm5 = vcmp.gt.f32.partialorder %v73_v30, 0.0 }
 0x185   :  { %v75_v31 = vsel %vm74_vm5, %v73_v30, 1.0 }
 0x186   :  { %170 = vrcp.f32 %v75_v31 }
 0x18c   :  { %v171_v32 = vpop.eup %170 }
 0x18d   :  { %v77_v33 = vmul.f32 %v171_v32, %v169_v27 }
 0x18f   :  { %v85_v34 = vperm.slane %v77_v33, 1  ;;  %v78_v35 = vperm.slane %v77_v33, 0 }
 0x191   :  { %90 = vperm.xlu0 %164, %v85_v34   ;;  %83 = vperm.xlu2 %163, %v78_v35  }
 0x1eb   :  { %v84_v40 = vpop.permute.xlu2 %83 }
 0x1ec   :  { %v92_v41 = vmul.f32 %v84_v40, %v241_v1 }
 0x1ee   :  { %v94_v42 = vsel %vm34_vm0, %v92_v41, 0.0 }
 0x1ef   :  { %v95_v43 = vrot.slane %v94_v42, 4 }
 0x1f1   :  { %v96_v44 = vadd.f32 %v95_v43, %v94_v42 }
 0x1f3   :  { %v97_v47 = vrot.slane %v96_v44, 2 }
 0x1f5   :  { %v98_v50 = vadd.f32 %v97_v47, %v96_v44 }
 0x1f7   :  { %v99_v53 = vrot.slane %v98_v50, 1 }
 0x1f9   :  { %v100_v56 = vadd.f32 %v99_v53, %v98_v50 }
 0x203   :  { %v91_v45 = vpop.permute.xlu0 %90 }
 0x204   :  { %v93_v46 = vmul.f32 %v91_v45, %v27_v6 }
 0x206   :  { %v101_v48 = vsel %vm34_vm0, %v93_v46, 0.0 }
 0x207   :  { %v102_v49 = vrot.slane %v101_v48, 4 }
 0x209   :  { %v103_v51 = vadd.f32 %v102_v49, %v101_v48 }
 0x20b   :  { %v104_v52 = vrot.slane %v103_v51, 2 }
 0x20d   :  { %v105_v54 = vadd.f32 %v104_v52, %v103_v51 }
 0x20f   :  { %v106_v55 = vrot.slane %v105_v54, 1 }
 0x211   :  { %v107_v57 = vadd.f32 %v106_v55, %v105_v54 }
 0x213   :  { %v118_v58 = vsel %vm58_vm1, %v107_v57, %v100_v56 }
 0x214   :  { %159 = vmatmul.msk.f32.vlgmr.msra.gmra.mxu0 %vm34_vm0, %v118_v58 }
 0x291   :  { %v138_v60 = vpop.f32.mrf.mxu0 }
 0x292   :  { %v139_v61 = vadd.f32 %v167_v59, %v138_v60 }
 0x294   :  { %142 = vst.msk [vmem:[#allocation3] sm:$0x3] %vm141_vm6, %v139_v61 }
 0x295   :  { %153 = dma.vmem_to_hbm [thread:$0]  %s149_s13, 32, %s151_s16, [#allocation4]  }
 0x296   :  { %196 = dma.done.wait [#allocation4], 32  }
 0x297   :  { %197 = vsyncadd [#allocation4], 4294967264 }
 0x298   :  { %158 = vsyncpa [#allocation4], 1 }

</bundles_post_ra>
